<compile_context>
chip_gen: v6e
topology: v6e:2x2x1
jax: 0.10.0
libtpu: 0.0.40
codegen_flags: <defaults>
</compile_context>

<pallas_src>
import functools

import jax
import jax.numpy as jnp
from jax.experimental import pallas as pl
from jax.experimental.pallas import tpu as pltpu

_CONV_K = 6      # conv kernel size along H
_CONV_S = 3      # conv stride along H
_CONV_P = 1      # conv zero padding along H
_N_PAD = 128     # lane-dense padding of the logits dimension


# ------------------------------ Pallas kernel ------------------------------

def _fused_cnn_kernel(x_ref, w1_ref, b1_ref, w2_ref, b2_ref, w3_ref, b3_ref,
                      fcw_ref, fcb_ref,
                      feat_ref, out_ref,
                      a1_ref, a2_ref,
                      *, h1, h2, h3):
    """Whole-network forward for one batch element; everything stays in VMEM."""
    f32 = jnp.float32

    def conv_bn_relu(src_ref, w_ref, b_ref, h_out):
        # src_ref: (H_in + 2P, C_in) zero-padded, channels-last.
        # w_ref:   (K, C_in, C_out)   b_ref: (1, C_out)
        c_out = w_ref.shape[2]
        acc = jnp.zeros((h_out, c_out), f32)
        for k in range(_CONV_K):                          # static unroll (6 taps)
            # rows k, k+3, ..., k+3*(h_out-1): stride-3 sublane read
            xk = src_ref[pl.ds(k, h_out, stride=_CONV_S), :]
            acc = acc + jnp.dot(xk, w_ref[k], preferred_element_type=f32)
        return jnp.maximum(acc + b_ref[...], 0.0)

    def store_padded(dst_ref, act, h_out):
        # dst_ref: (h_out + 2, C); rows 0 and h_out+1 are the conv zero pad.
        zero_row = jnp.zeros((1, dst_ref.shape[1]), f32)
        dst_ref[pl.ds(0, 1), :] = zero_row
        dst_ref[pl.ds(h_out + 1, 1), :] = zero_row
        dst_ref[pl.ds(1, h_out), :] = act

    # layer1 -> layer2 -> layer3 (activations never leave VMEM)
    a1 = conv_bn_relu(x_ref, w1_ref, b1_ref, h1)          # (h1,  64)
    store_padded(a1_ref, a1, h1)
    a2 = conv_bn_relu(a1_ref, w2_ref, b2_ref, h2)         # (h2, 128)
    store_padded(a2_ref, a2, h2)
    a3 = conv_bn_relu(a2_ref, w3_ref, b3_ref, h3)         # (h3, 256)

    # flattened features, lane-dense (h3, 256); wrapper reorders to NCHW flatten
    feat_ref[...] = a3

    # fc: out[n] = b[n] + sum_{h,c} a3[h, c] * Wfc[h, c, n]   (N padded to 128)
    out = fcb_ref[...]                                    # (1, _N_PAD)
    for h in range(h3):                                   # static unroll (6)
        out = out + jnp.dot(a3[h:h + 1, :], fcw_ref[h],
                            preferred_element_type=f32)
    out_ref[...] = out


# --------------------------------- wrapper ---------------------------------

def cnn_forward(x_nchw, params, *, num_classes):
    """Returns (flat_features, logits) with the same semantics as the PyTorch CNN."""
    B, c_in, H, W = x_nchw.shape
    assert W == 1, "WISDM input has W == 1"
    K, S, P = _CONV_K, _CONV_S, _CONV_P
    h1 = (H + 2 * P - K) // S + 1
    h2 = (h1 + 2 * P - K) // S + 1
    h3 = (h2 + 2 * P - K) // S + 1

    c1 = params["w1"].shape[2]
    c2 = params["w2"].shape[2]
    c3 = params["w3"].shape[2]
    assert params["fc_w"].shape == (h3, c3, _N_PAD), params["fc_w"].shape

    # One-time input layout prep (tiny): NCHW -> channels-last, pre-padded H.
    x = jnp.transpose(x_nchw[:, :, :, 0], (0, 2, 1))      # (B, H, C)
    x = jnp.pad(x, ((0, 0), (P, P), (0, 0)))              # (B, H + 2P, C)

    kernel = functools.partial(_fused_cnn_kernel, h1=h1, h2=h2, h3=h3)

    grid_spec = pltpu.PrefetchScalarGridSpec(
        num_scalar_prefetch=0,
        grid=(B,),
        in_specs=[
            pl.BlockSpec((None, H + 2 * P, c_in), lambda b: (b, 0, 0)),  # x
            pl.BlockSpec((K, c_in, c1), lambda b: (0, 0, 0)),            # w1
            pl.BlockSpec((1, c1), lambda b: (0, 0)),                     # b1
            pl.BlockSpec((K, c1, c2), lambda b: (0, 0, 0)),              # w2
            pl.BlockSpec((1, c2), lambda b: (0, 0)),                     # b2
            pl.BlockSpec((K, c2, c3), lambda b: (0, 0, 0)),              # w3
            pl.BlockSpec((1, c3), lambda b: (0, 0)),                     # b3
            pl.BlockSpec((h3, c3, _N_PAD), lambda b: (0, 0, 0)),         # fc_w
            pl.BlockSpec((1, _N_PAD), lambda b: (0, 0)),                 # fc_b
        ],
        out_specs=(
            pl.BlockSpec((None, h3, c3), lambda b: (b, 0, 0)),       # features
            pl.BlockSpec((None, 1, _N_PAD), lambda b: (b, 0, 0)),    # logits
        ),
        scratch_shapes=[
            pltpu.VMEM((h1 + 2 * P, c1), jnp.float32),   # padded layer1 output
            pltpu.VMEM((h2 + 2 * P, c2), jnp.float32),   # padded layer2 output
        ],
    )

    feat_hc, logits_pad = pl.pallas_call(
        kernel,
        out_shape=(
            jax.ShapeDtypeStruct((B, h3, c3), jnp.float32),
            jax.ShapeDtypeStruct((B, 1, _N_PAD), jnp.float32),
        ),
        grid_spec=grid_spec,
        compiler_params=pltpu.CompilerParams(
            dimension_semantics=("parallel",)),          # v7x: batch across 2 TCs
    )(x, params["w1"], params["b1"], params["w2"], params["b2"],
      params["w3"], params["b3"], params["fc_w"], params["fc_b"])

    # PyTorch flatten order for NCHW (W == 1): flat[b, c*h3 + h] = act[b, c, h]
    flat = jnp.transpose(feat_hc, (0, 2, 1)).reshape(B, c3 * h3)
    logits = logits_pad[:, 0, :num_classes]
    return flat, logits


# ----------------------------- parameter init ------------------------------

def _folded_conv_params(key, c_in, c_out, k, eps=1e-5):
    ks = jax.random.split(key, 6)
    w = 0.1 * jax.random.normal(ks[0], (c_out, c_in, k), jnp.float32)
    b = 0.1 * jax.random.normal(ks[1], (c_out,), jnp.float32)
    gamma = 1.0 + 0.1 * jax.random.normal(ks[2], (c_out,), jnp.float32)
    beta = 0.1 * jax.random.normal(ks[3], (c_out,), jnp.float32)
    mean = 0.1 * jax.random.normal(ks[4], (c_out,), jnp.float32)
    var = 1.0 + 0.1 * jnp.abs(jax.random.normal(ks[5], (c_out,), jnp.float32))
    scale = gamma * jax.lax.rsqrt(var + eps)
    w_f = w * scale[:, None, None]            # fold eval-mode BN into the conv
    b_f = (b - mean) * scale + beta
    # pack for the kernel: (C_out, C_in, K) -> (K, C_in, C_out), bias (1, C_out)
    return jnp.transpose(w_f, (2, 1, 0)), b_f.reshape(1, c_out)


def init_params(key, input_channel, num_classes, *, feat_h=6, feat_c=256):
    k1, k2, k3, k4, k5 = jax.random.split(key, 5)
    w1, b1 = _folded_conv_params(k1, input_channel, 64, _CONV_K)
    w2, b2 = _folded_conv_params(k2, 64, 128, _CONV_K)
    w3, b3 = _folded_conv_params(k3, 128, feat_c, _CONV_K)

    # fc = Linear(feat_c*feat_h, num_classes); weight (N, C*H) with input index
    # c*feat_h + h (NCHW flatten).  Repack once to (H, C, N_pad), N padded to 128.
    fc_w = 0.05 * jax.random.normal(k4, (num_classes, feat_c * feat_h), jnp.float32)
    fc_b = 0.05 * jax.random.normal(k5, (num_classes,), jnp.float32)
    fcw = jnp.transpose(fc_w.reshape(num_classes, feat_c, feat_h), (2, 1, 0))
    fcw = jnp.pad(fcw, ((0, 0), (0, 0), (0, _N_PAD - num_classes)))
    fcb = jnp.pad(fc_b, (0, _N_PAD - num_classes)).reshape(1, _N_PAD)
    return dict(w1=w1, b1=b1, w2=w2, b2=b2, w3=w3, b3=b3, fc_w=fcw, fc_b=fcb)


# ------------------------- pure-JAX reference check -------------------------

def reference_forward(x_nchw, params, num_classes):
    """Pure-JAX reference using the same folded/packed parameters."""
    K, S, P = _CONV_K, _CONV_S, _CONV_P
    hp = jax.lax.Precision.HIGHEST

    def conv_bn_relu(x_bhc, w_p, b):
        _, h_in, _ = x_bhc.shape
        xp = jnp.pad(x_bhc, ((0, 0), (P, P), (0, 0)))
        h_out = (h_in + 2 * P - K) // S + 1
        acc = jnp.zeros((x_bhc.shape[0], h_out, w_p.shape[2]), jnp.float32)
        for k in range(K):
            xs = xp[:, k:k + S * (h_out - 1) + 1:S, :]
            acc = acc + jnp.einsum("bhc,co->bho", xs, w_p[k], precision=hp)
        return jnp.maximum(acc + b, 0.0)

    x = jnp.transpose(x_nchw[:, :, :, 0], (0, 2, 1))
    a1 = conv_bn_relu(x, params["w1"], params["b1"])
    a2 = conv_bn_relu(a1, params["w2"], params["b2"])
    a3 = conv_bn_relu(a2, params["w3"], params["b3"])            # (B, h3, 256)
    flat = jnp.transpose(a3, (0, 2, 1)).reshape(a3.shape[0], -1)
    out = jnp.einsum("bho,hon->bn", a3, params["fc_w"], precision=hp) + params["fc_b"]
    return flat, out[:, :num_classes]


# ---------------------------------- main ------------------------------------

if __name__ == "__main__":
    key = jax.random.PRNGKey(0)
    k_x, k_p = jax.random.split(key)

    B, C_IN, H, W = 2, 3, 200, 1          # WISDM-style input: flatten -> 256*6 = 1536
    NUM_CLASSES = 6

    x = jax.random.normal(k_x, (B, C_IN, H, W), jnp.float32)    # NCHW
    params = init_params(k_p, C_IN, NUM_CLASSES)

    fwd = jax.jit(cnn_forward, static_argnames=("num_classes",))
    flat, logits = fwd(x, params, num_classes=NUM_CLASSES)
    flat = jax.block_until_ready(flat)
    logits = jax.block_until_ready(logits)

    assert flat.shape == (B, 1536), flat.shape
    assert logits.shape == (B, NUM_CLASSES), logits.shape
    assert bool(jnp.all(jnp.isfinite(flat))) and bool(jnp.all(jnp.isfinite(logits)))

    flat_ref, logits_ref = reference_forward(x, params, NUM_CLASSES)
    assert bool(jnp.allclose(flat, flat_ref, rtol=1e-2, atol=1e-2)), \
        float(jnp.max(jnp.abs(flat - flat_ref)))
    assert bool(jnp.allclose(logits, logits_ref, rtol=1e-2, atol=1e-2)), \
        float(jnp.max(jnp.abs(logits - logits_ref)))

    print("KERNEL_OK")
</pallas_src>

<mosaic_0001>
module attributes {stable_mosaic.version = 11 : i64} {
  func.func @_fused_cnn_kernel(%arg0: i32, %arg1: memref<1x202x3xf32, #tpu.memory_space<vmem>>, %arg2: memref<6x3x64xf32, #tpu.memory_space<vmem>>, %arg3: memref<1x64xf32, #tpu.memory_space<vmem>>, %arg4: memref<6x64x128xf32, #tpu.memory_space<vmem>>, %arg5: memref<1x128xf32, #tpu.memory_space<vmem>>, %arg6: memref<6x128x256xf32, #tpu.memory_space<vmem>>, %arg7: memref<1x256xf32, #tpu.memory_space<vmem>>, %arg8: memref<6x256x128xf32, #tpu.memory_space<vmem>>, %arg9: memref<1x128xf32, #tpu.memory_space<vmem>>, %arg10: memref<1x6x256xf32, #tpu.memory_space<vmem>>, %arg11: memref<1x1x128xf32, #tpu.memory_space<vmem>>, %arg12: memref<68x64xf32, #tpu.memory_space<vmem>>, %arg13: memref<23x128xf32, #tpu.memory_space<vmem>>) attributes {dimension_semantics = [#tpu.dimension_semantics<parallel>], iteration_bounds = array<i64: 2>, scalar_prefetch = 0 : i64, scratch_operands = 2 : i64, tpu.core_type = #tpu.core_type<tc>, window_params = [{transform_indices = @transform_0, window_bounds = array<i64: 1, 202, 3>}, {pipeline_mode = #tpu.pipeline_mode<synchronous>, transform_indices = @transform_1, window_bounds = array<i64: 6, 3, 64>}, {pipeline_mode = #tpu.pipeline_mode<synchronous>, transform_indices = @transform_2, window_bounds = array<i64: 1, 64>}, {pipeline_mode = #tpu.pipeline_mode<synchronous>, transform_indices = @transform_3, window_bounds = array<i64: 6, 64, 128>}, {pipeline_mode = #tpu.pipeline_mode<synchronous>, transform_indices = @transform_4, window_bounds = array<i64: 1, 128>}, {pipeline_mode = #tpu.pipeline_mode<synchronous>, transform_indices = @transform_5, window_bounds = array<i64: 6, 128, 256>}, {pipeline_mode = #tpu.pipeline_mode<synchronous>, transform_indices = @transform_6, window_bounds = array<i64: 1, 256>}, {pipeline_mode = #tpu.pipeline_mode<synchronous>, transform_indices = @transform_7, window_bounds = array<i64: 6, 256, 128>}, {pipeline_mode = #tpu.pipeline_mode<synchronous>, transform_indices = @transform_8, window_bounds = array<i64: 1, 128>}, {transform_indices = @transform_9, window_bounds = array<i64: 1, 6, 256>}, {transform_indices = @transform_10, window_bounds = array<i64: 1, 1, 128>}]} {
    %cst = arith.constant 0.000000e+00 : f32
    %0 = vector.broadcast %cst : f32 to vector<66x64xf32>
    %c0 = arith.constant 0 : index
    %c0_0 = arith.constant 0 : index
    %c0_1 = arith.constant 0 : index
    %1 = tpu.strided_load %arg1[%c0, %c0_0, %c0_1] {strides = array<i32: 1, 3, 1>} : memref<1x202x3xf32, #tpu.memory_space<vmem>>, vector<1x66x3xf32>
    %2 = vector.shape_cast %1 : vector<1x66x3xf32> to vector<66x3xf32>
    %c0_2 = arith.constant 0 : index
    %c0_3 = arith.constant 0 : index
    %c0_4 = arith.constant 0 : index
    %3 = vector.load %arg2[%c0_2, %c0_3, %c0_4] : memref<6x3x64xf32, #tpu.memory_space<vmem>>, vector<1x3x64xf32>
    %4 = vector.shape_cast %3 : vector<1x3x64xf32> to vector<3x64xf32>
    %cst_5 = arith.constant dense<0.000000e+00> : vector<66x64xf32>
    %5 = tpu.matmul %2, %4, %cst_5 {dimension_numbers = #tpu.dot_dimension_numbers<[1], [0], [0], [1], [0, 0, 1, 1], [], []>} : vector<66x3xf32>, vector<3x64xf32>, vector<66x64xf32> -> vector<66x64xf32>
    %6 = arith.addf %0, %5 : vector<66x64xf32>
    %c0_6 = arith.constant 0 : index
    %c1 = arith.constant 1 : index
    %c0_7 = arith.constant 0 : index
    %7 = tpu.strided_load %arg1[%c0_6, %c1, %c0_7] {strides = array<i32: 1, 3, 1>} : memref<1x202x3xf32, #tpu.memory_space<vmem>>, vector<1x66x3xf32>
    %8 = vector.shape_cast %7 : vector<1x66x3xf32> to vector<66x3xf32>
    %c1_8 = arith.constant 1 : index
    %c0_9 = arith.constant 0 : index
    %c0_10 = arith.constant 0 : index
    %9 = vector.load %arg2[%c1_8, %c0_9, %c0_10] : memref<6x3x64xf32, #tpu.memory_space<vmem>>, vector<1x3x64xf32>
    %10 = vector.shape_cast %9 : vector<1x3x64xf32> to vector<3x64xf32>
    %cst_11 = arith.constant dense<0.000000e+00> : vector<66x64xf32>
    %11 = tpu.matmul %8, %10, %cst_11 {dimension_numbers = #tpu.dot_dimension_numbers<[1], [0], [0], [1], [0, 0, 1, 1], [], []>} : vector<66x3xf32>, vector<3x64xf32>, vector<66x64xf32> -> vector<66x64xf32>
    %12 = arith.addf %6, %11 : vector<66x64xf32>
    %c0_12 = arith.constant 0 : index
    %c2 = arith.constant 2 : index
    %c0_13 = arith.constant 0 : index
    %13 = tpu.strided_load %arg1[%c0_12, %c2, %c0_13] {strides = array<i32: 1, 3, 1>} : memref<1x202x3xf32, #tpu.memory_space<vmem>>, vector<1x66x3xf32>
    %14 = vector.shape_cast %13 : vector<1x66x3xf32> to vector<66x3xf32>
    %c2_14 = arith.constant 2 : index
    %c0_15 = arith.constant 0 : index
    %c0_16 = arith.constant 0 : index
    %15 = vector.load %arg2[%c2_14, %c0_15, %c0_16] : memref<6x3x64xf32, #tpu.memory_space<vmem>>, vector<1x3x64xf32>
    %16 = vector.shape_cast %15 : vector<1x3x64xf32> to vector<3x64xf32>
    %cst_17 = arith.constant dense<0.000000e+00> : vector<66x64xf32>
    %17 = tpu.matmul %14, %16, %cst_17 {dimension_numbers = #tpu.dot_dimension_numbers<[1], [0], [0], [1], [0, 0, 1, 1], [], []>} : vector<66x3xf32>, vector<3x64xf32>, vector<66x64xf32> -> vector<66x64xf32>
    %18 = arith.addf %12, %17 : vector<66x64xf32>
    %c0_18 = arith.constant 0 : index
    %c3 = arith.constant 3 : index
    %c0_19 = arith.constant 0 : index
    %19 = tpu.strided_load %arg1[%c0_18, %c3, %c0_19] {strides = array<i32: 1, 3, 1>} : memref<1x202x3xf32, #tpu.memory_space<vmem>>, vector<1x66x3xf32>
    %20 = vector.shape_cast %19 : vector<1x66x3xf32> to vector<66x3xf32>
    %c3_20 = arith.constant 3 : index
    %c0_21 = arith.constant 0 : index
    %c0_22 = arith.constant 0 : index
    %21 = vector.load %arg2[%c3_20, %c0_21, %c0_22] : memref<6x3x64xf32, #tpu.memory_space<vmem>>, vector<1x3x64xf32>
    %22 = vector.shape_cast %21 : vector<1x3x64xf32> to vector<3x64xf32>
    %cst_23 = arith.constant dense<0.000000e+00> : vector<66x64xf32>
    %23 = tpu.matmul %20, %22, %cst_23 {dimension_numbers = #tpu.dot_dimension_numbers<[1], [0], [0], [1], [0, 0, 1, 1], [], []>} : vector<66x3xf32>, vector<3x64xf32>, vector<66x64xf32> -> vector<66x64xf32>
    %24 = arith.addf %18, %23 : vector<66x64xf32>
    %c0_24 = arith.constant 0 : index
    %c4 = arith.constant 4 : index
    %c0_25 = arith.constant 0 : index
    %25 = tpu.strided_load %arg1[%c0_24, %c4, %c0_25] {strides = array<i32: 1, 3, 1>} : memref<1x202x3xf32, #tpu.memory_space<vmem>>, vector<1x66x3xf32>
    %26 = vector.shape_cast %25 : vector<1x66x3xf32> to vector<66x3xf32>
    %c4_26 = arith.constant 4 : index
    %c0_27 = arith.constant 0 : index
    %c0_28 = arith.constant 0 : index
    %27 = vector.load %arg2[%c4_26, %c0_27, %c0_28] : memref<6x3x64xf32, #tpu.memory_space<vmem>>, vector<1x3x64xf32>
    %28 = vector.shape_cast %27 : vector<1x3x64xf32> to vector<3x64xf32>
    %cst_29 = arith.constant dense<0.000000e+00> : vector<66x64xf32>
    %29 = tpu.matmul %26, %28, %cst_29 {dimension_numbers = #tpu.dot_dimension_numbers<[1], [0], [0], [1], [0, 0, 1, 1], [], []>} : vector<66x3xf32>, vector<3x64xf32>, vector<66x64xf32> -> vector<66x64xf32>
    %30 = arith.addf %24, %29 : vector<66x64xf32>
    %c0_30 = arith.constant 0 : index
    %c5 = arith.constant 5 : index
    %c0_31 = arith.constant 0 : index
    %31 = tpu.strided_load %arg1[%c0_30, %c5, %c0_31] {strides = array<i32: 1, 3, 1>} : memref<1x202x3xf32, #tpu.memory_space<vmem>>, vector<1x66x3xf32>
    %32 = vector.shape_cast %31 : vector<1x66x3xf32> to vector<66x3xf32>
    %c5_32 = arith.constant 5 : index
    %c0_33 = arith.constant 0 : index
    %c0_34 = arith.constant 0 : index
    %33 = vector.load %arg2[%c5_32, %c0_33, %c0_34] : memref<6x3x64xf32, #tpu.memory_space<vmem>>, vector<1x3x64xf32>
    %34 = vector.shape_cast %33 : vector<1x3x64xf32> to vector<3x64xf32>
    %cst_35 = arith.constant dense<0.000000e+00> : vector<66x64xf32>
    %35 = tpu.matmul %32, %34, %cst_35 {dimension_numbers = #tpu.dot_dimension_numbers<[1], [0], [0], [1], [0, 0, 1, 1], [], []>} : vector<66x3xf32>, vector<3x64xf32>, vector<66x64xf32> -> vector<66x64xf32>
    %36 = arith.addf %30, %35 : vector<66x64xf32>
    %c0_36 = arith.constant 0 : index
    %c0_37 = arith.constant 0 : index
    %37 = vector.load %arg3[%c0_36, %c0_37] : memref<1x64xf32, #tpu.memory_space<vmem>>, vector<1x64xf32>
    %38 = vector.broadcast %37 : vector<1x64xf32> to vector<66x64xf32>
    %39 = arith.addf %36, %38 : vector<66x64xf32>
    %cst_38 = arith.constant 0.000000e+00 : f32
    %40 = vector.broadcast %cst_38 : f32 to vector<66x64xf32>
    %41 = arith.maximumf %39, %40 : vector<66x64xf32>
    %cst_39 = arith.constant 0.000000e+00 : f32
    %42 = vector.broadcast %cst_39 : f32 to vector<1x64xf32>
    %c0_40 = arith.constant 0 : index
    %c0_41 = arith.constant 0 : index
    %43 = vector.load %arg12[%c0_40, %c0_41] : memref<68x64xf32, #tpu.memory_space<vmem>>, vector<1x64xf32>
    tpu.vector_store %arg12[%c0_40, %c0_41], %42 {strides = array<i32>} : memref<68x64xf32, #tpu.memory_space<vmem>>, vector<1x64xf32>,
    %c67 = arith.constant 67 : index
    %c0_42 = arith.constant 0 : index
    %44 = vector.load %arg12[%c67, %c0_42] : memref<68x64xf32, #tpu.memory_space<vmem>>, vector<1x64xf32>
    tpu.vector_store %arg12[%c67, %c0_42], %42 {strides = array<i32>} : memref<68x64xf32, #tpu.memory_space<vmem>>, vector<1x64xf32>,
    %c1_43 = arith.constant 1 : index
    %c0_44 = arith.constant 0 : index
    %45 = vector.load %arg12[%c1_43, %c0_44] : memref<68x64xf32, #tpu.memory_space<vmem>>, vector<66x64xf32>
    tpu.vector_store %arg12[%c1_43, %c0_44], %41 {strides = array<i32>} : memref<68x64xf32, #tpu.memory_space<vmem>>, vector<66x64xf32>,
    %cst_45 = arith.constant 0.000000e+00 : f32
    %46 = vector.broadcast %cst_45 : f32 to vector<21x128xf32>
    %c0_46 = arith.constant 0 : index
    %c0_47 = arith.constant 0 : index
    %47 = tpu.strided_load %arg12[%c0_46, %c0_47] {strides = array<i32: 3, 1>} : memref<68x64xf32, #tpu.memory_space<vmem>>, vector<21x64xf32>
    %c0_48 = arith.constant 0 : index
    %c0_49 = arith.constant 0 : index
    %c0_50 = arith.constant 0 : index
    %48 = vector.load %arg4[%c0_48, %c0_49, %c0_50] : memref<6x64x128xf32, #tpu.memory_space<vmem>>, vector<1x64x128xf32>
    %49 = vector.shape_cast %48 : vector<1x64x128xf32> to vector<64x128xf32>
    %cst_51 = arith.constant dense<0.000000e+00> : vector<21x128xf32>
    %50 = tpu.matmul %47, %49, %cst_51 {dimension_numbers = #tpu.dot_dimension_numbers<[1], [0], [0], [1], [0, 0, 1, 1], [], []>} : vector<21x64xf32>, vector<64x128xf32>, vector<21x128xf32> -> vector<21x128xf32>
    %51 = arith.addf %46, %50 : vector<21x128xf32>
    %c1_52 = arith.constant 1 : index
    %c0_53 = arith.constant 0 : index
    %52 = tpu.strided_load %arg12[%c1_52, %c0_53] {strides = array<i32: 3, 1>} : memref<68x64xf32, #tpu.memory_space<vmem>>, vector<21x64xf32>
    %c1_54 = arith.constant 1 : index
    %c0_55 = arith.constant 0 : index
    %c0_56 = arith.constant 0 : index
    %53 = vector.load %arg4[%c1_54, %c0_55, %c0_56] : memref<6x64x128xf32, #tpu.memory_space<vmem>>, vector<1x64x128xf32>
    %54 = vector.shape_cast %53 : vector<1x64x128xf32> to vector<64x128xf32>
    %cst_57 = arith.constant dense<0.000000e+00> : vector<21x128xf32>
    %55 = tpu.matmul %52, %54, %cst_57 {dimension_numbers = #tpu.dot_dimension_numbers<[1], [0], [0], [1], [0, 0, 1, 1], [], []>} : vector<21x64xf32>, vector<64x128xf32>, vector<21x128xf32> -> vector<21x128xf32>
    %56 = arith.addf %51, %55 : vector<21x128xf32>
    %c2_58 = arith.constant 2 : index
    %c0_59 = arith.constant 0 : index
    %57 = tpu.strided_load %arg12[%c2_58, %c0_59] {strides = array<i32: 3, 1>} : memref<68x64xf32, #tpu.memory_space<vmem>>, vector<21x64xf32>
    %c2_60 = arith.constant 2 : index
    %c0_61 = arith.constant 0 : index
    %c0_62 = arith.constant 0 : index
    %58 = vector.load %arg4[%c2_60, %c0_61, %c0_62] : memref<6x64x128xf32, #tpu.memory_space<vmem>>, vector<1x64x128xf32>
    %59 = vector.shape_cast %58 : vector<1x64x128xf32> to vector<64x128xf32>
    %cst_63 = arith.constant dense<0.000000e+00> : vector<21x128xf32>
    %60 = tpu.matmul %57, %59, %cst_63 {dimension_numbers = #tpu.dot_dimension_numbers<[1], [0], [0], [1], [0, 0, 1, 1], [], []>} : vector<21x64xf32>, vector<64x128xf32>, vector<21x128xf32> -> vector<21x128xf32>
    %61 = arith.addf %56, %60 : vector<21x128xf32>
    %c3_64 = arith.constant 3 : index
    %c0_65 = arith.constant 0 : index
    %62 = tpu.strided_load %arg12[%c3_64, %c0_65] {strides = array<i32: 3, 1>} : memref<68x64xf32, #tpu.memory_space<vmem>>, vector<21x64xf32>
    %c3_66 = arith.constant 3 : index
    %c0_67 = arith.constant 0 : index
    %c0_68 = arith.constant 0 : index
    %63 = vector.load %arg4[%c3_66, %c0_67, %c0_68] : memref<6x64x128xf32, #tpu.memory_space<vmem>>, vector<1x64x128xf32>
    %64 = vector.shape_cast %63 : vector<1x64x128xf32> to vector<64x128xf32>
    %cst_69 = arith.constant dense<0.000000e+00> : vector<21x128xf32>
    %65 = tpu.matmul %62, %64, %cst_69 {dimension_numbers = #tpu.dot_dimension_numbers<[1], [0], [0], [1], [0, 0, 1, 1], [], []>} : vector<21x64xf32>, vector<64x128xf32>, vector<21x128xf32> -> vector<21x128xf32>
    %66 = arith.addf %61, %65 : vector<21x128xf32>
    %c4_70 = arith.constant 4 : index
    %c0_71 = arith.constant 0 : index
    %67 = tpu.strided_load %arg12[%c4_70, %c0_71] {strides = array<i32: 3, 1>} : memref<68x64xf32, #tpu.memory_space<vmem>>, vector<21x64xf32>
    %c4_72 = arith.constant 4 : index
    %c0_73 = arith.constant 0 : index
    %c0_74 = arith.constant 0 : index
    %68 = vector.load %arg4[%c4_72, %c0_73, %c0_74] : memref<6x64x128xf32, #tpu.memory_space<vmem>>, vector<1x64x128xf32>
    %69 = vector.shape_cast %68 : vector<1x64x128xf32> to vector<64x128xf32>
    %cst_75 = arith.constant dense<0.000000e+00> : vector<21x128xf32>
    %70 = tpu.matmul %67, %69, %cst_75 {dimension_numbers = #tpu.dot_dimension_numbers<[1], [0], [0], [1], [0, 0, 1, 1], [], []>} : vector<21x64xf32>, vector<64x128xf32>, vector<21x128xf32> -> vector<21x128xf32>
    %71 = arith.addf %66, %70 : vector<21x128xf32>
    %c5_76 = arith.constant 5 : index
    %c0_77 = arith.constant 0 : index
    %72 = tpu.strided_load %arg12[%c5_76, %c0_77] {strides = array<i32: 3, 1>} : memref<68x64xf32, #tpu.memory_space<vmem>>, vector<21x64xf32>
    %c5_78 = arith.constant 5 : index
    %c0_79 = arith.constant 0 : index
    %c0_80 = arith.constant 0 : index
    %73 = vector.load %arg4[%c5_78, %c0_79, %c0_80] : memref<6x64x128xf32, #tpu.memory_space<vmem>>, vector<1x64x128xf32>
    %74 = vector.shape_cast %73 : vector<1x64x128xf32> to vector<64x128xf32>
    %cst_81 = arith.constant dense<0.000000e+00> : vector<21x128xf32>
    %75 = tpu.matmul %72, %74, %cst_81 {dimension_numbers = #tpu.dot_dimension_numbers<[1], [0], [0], [1], [0, 0, 1, 1], [], []>} : vector<21x64xf32>, vector<64x128xf32>, vector<21x128xf32> -> vector<21x128xf32>
    %76 = arith.addf %71, %75 : vector<21x128xf32>
    %c0_82 = arith.constant 0 : index
    %c0_83 = arith.constant 0 : index
    %77 = vector.load %arg5[%c0_82, %c0_83] : memref<1x128xf32, #tpu.memory_space<vmem>>, vector<1x128xf32>
    %78 = vector.broadcast %77 : vector<1x128xf32> to vector<21x128xf32>
    %79 = arith.addf %76, %78 : vector<21x128xf32>
    %cst_84 = arith.constant 0.000000e+00 : f32
    %80 = vector.broadcast %cst_84 : f32 to vector<21x128xf32>
    %81 = arith.maximumf %79, %80 : vector<21x128xf32>
    %cst_85 = arith.constant 0.000000e+00 : f32
    %82 = vector.broadcast %cst_85 : f32 to vector<1x128xf32>
    %c0_86 = arith.constant 0 : index
    %c0_87 = arith.constant 0 : index
    %83 = vector.load %arg13[%c0_86, %c0_87] : memref<23x128xf32, #tpu.memory_space<vmem>>, vector<1x128xf32>
    tpu.vector_store %arg13[%c0_86, %c0_87], %82 {strides = array<i32>} : memref<23x128xf32, #tpu.memory_space<vmem>>, vector<1x128xf32>,
    %c22 = arith.constant 22 : index
    %c0_88 = arith.constant 0 : index
    %84 = vector.load %arg13[%c22, %c0_88] : memref<23x128xf32, #tpu.memory_space<vmem>>, vector<1x128xf32>
    tpu.vector_store %arg13[%c22, %c0_88], %82 {strides = array<i32>} : memref<23x128xf32, #tpu.memory_space<vmem>>, vector<1x128xf32>,
    %c1_89 = arith.constant 1 : index
    %c0_90 = arith.constant 0 : index
    %85 = vector.load %arg13[%c1_89, %c0_90] : memref<23x128xf32, #tpu.memory_space<vmem>>, vector<21x128xf32>
    tpu.vector_store %arg13[%c1_89, %c0_90], %81 {strides = array<i32>} : memref<23x128xf32, #tpu.memory_space<vmem>>, vector<21x128xf32>,
    %cst_91 = arith.constant 0.000000e+00 : f32
    %86 = vector.broadcast %cst_91 : f32 to vector<6x256xf32>
    %c0_92 = arith.constant 0 : index
    %c0_93 = arith.constant 0 : index
    %87 = tpu.strided_load %arg13[%c0_92, %c0_93] {strides = array<i32: 3, 1>} : memref<23x128xf32, #tpu.memory_space<vmem>>, vector<6x128xf32>
    %c0_94 = arith.constant 0 : index
    %c0_95 = arith.constant 0 : index
    %c0_96 = arith.constant 0 : index
    %88 = vector.load %arg6[%c0_94, %c0_95, %c0_96] : memref<6x128x256xf32, #tpu.memory_space<vmem>>, vector<1x128x256xf32>
    %89 = vector.shape_cast %88 : vector<1x128x256xf32> to vector<128x256xf32>
    %cst_97 = arith.constant dense<0.000000e+00> : vector<6x256xf32>
    %90 = tpu.matmul %87, %89, %cst_97 {dimension_numbers = #tpu.dot_dimension_numbers<[1], [0], [0], [1], [0, 0, 1, 1], [], []>} : vector<6x128xf32>, vector<128x256xf32>, vector<6x256xf32> -> vector<6x256xf32>
    %91 = arith.addf %86, %90 : vector<6x256xf32>
    %c1_98 = arith.constant 1 : index
    %c0_99 = arith.constant 0 : index
    %92 = tpu.strided_load %arg13[%c1_98, %c0_99] {strides = array<i32: 3, 1>} : memref<23x128xf32, #tpu.memory_space<vmem>>, vector<6x128xf32>
    %c1_100 = arith.constant 1 : index
    %c0_101 = arith.constant 0 : index
    %c0_102 = arith.constant 0 : index
    %93 = vector.load %arg6[%c1_100, %c0_101, %c0_102] : memref<6x128x256xf32, #tpu.memory_space<vmem>>, vector<1x128x256xf32>
    %94 = vector.shape_cast %93 : vector<1x128x256xf32> to vector<128x256xf32>
    %cst_103 = arith.constant dense<0.000000e+00> : vector<6x256xf32>
    %95 = tpu.matmul %92, %94, %cst_103 {dimension_numbers = #tpu.dot_dimension_numbers<[1], [0], [0], [1], [0, 0, 1, 1], [], []>} : vector<6x128xf32>, vector<128x256xf32>, vector<6x256xf32> -> vector<6x256xf32>
    %96 = arith.addf %91, %95 : vector<6x256xf32>
    %c2_104 = arith.constant 2 : index
    %c0_105 = arith.constant 0 : index
    %97 = tpu.strided_load %arg13[%c2_104, %c0_105] {strides = array<i32: 3, 1>} : memref<23x128xf32, #tpu.memory_space<vmem>>, vector<6x128xf32>
    %c2_106 = arith.constant 2 : index
    %c0_107 = arith.constant 0 : index
    %c0_108 = arith.constant 0 : index
    %98 = vector.load %arg6[%c2_106, %c0_107, %c0_108] : memref<6x128x256xf32, #tpu.memory_space<vmem>>, vector<1x128x256xf32>
    %99 = vector.shape_cast %98 : vector<1x128x256xf32> to vector<128x256xf32>
    %cst_109 = arith.constant dense<0.000000e+00> : vector<6x256xf32>
    %100 = tpu.matmul %97, %99, %cst_109 {dimension_numbers = #tpu.dot_dimension_numbers<[1], [0], [0], [1], [0, 0, 1, 1], [], []>} : vector<6x128xf32>, vector<128x256xf32>, vector<6x256xf32> -> vector<6x256xf32>
    %101 = arith.addf %96, %100 : vector<6x256xf32>
    %c3_110 = arith.constant 3 : index
    %c0_111 = arith.constant 0 : index
    %102 = tpu.strided_load %arg13[%c3_110, %c0_111] {strides = array<i32: 3, 1>} : memref<23x128xf32, #tpu.memory_space<vmem>>, vector<6x128xf32>
    %c3_112 = arith.constant 3 : index
    %c0_113 = arith.constant 0 : index
    %c0_114 = arith.constant 0 : index
    %103 = vector.load %arg6[%c3_112, %c0_113, %c0_114] : memref<6x128x256xf32, #tpu.memory_space<vmem>>, vector<1x128x256xf32>
    %104 = vector.shape_cast %103 : vector<1x128x256xf32> to vector<128x256xf32>
    %cst_115 = arith.constant dense<0.000000e+00> : vector<6x256xf32>
    %105 = tpu.matmul %102, %104, %cst_115 {dimension_numbers = #tpu.dot_dimension_numbers<[1], [0], [0], [1], [0, 0, 1, 1], [], []>} : vector<6x128xf32>, vector<128x256xf32>, vector<6x256xf32> -> vector<6x256xf32>
    %106 = arith.addf %101, %105 : vector<6x256xf32>
    %c4_116 = arith.constant 4 : index
    %c0_117 = arith.constant 0 : index
    %107 = tpu.strided_load %arg13[%c4_116, %c0_117] {strides = array<i32: 3, 1>} : memref<23x128xf32, #tpu.memory_space<vmem>>, vector<6x128xf32>
    %c4_118 = arith.constant 4 : index
    %c0_119 = arith.constant 0 : index
    %c0_120 = arith.constant 0 : index
    %108 = vector.load %arg6[%c4_118, %c0_119, %c0_120] : memref<6x128x256xf32, #tpu.memory_space<vmem>>, vector<1x128x256xf32>
    %109 = vector.shape_cast %108 : vector<1x128x256xf32> to vector<128x256xf32>
    %cst_121 = arith.constant dense<0.000000e+00> : vector<6x256xf32>
    %110 = tpu.matmul %107, %109, %cst_121 {dimension_numbers = #tpu.dot_dimension_numbers<[1], [0], [0], [1], [0, 0, 1, 1], [], []>} : vector<6x128xf32>, vector<128x256xf32>, vector<6x256xf32> -> vector<6x256xf32>
    %111 = arith.addf %106, %110 : vector<6x256xf32>
    %c5_122 = arith.constant 5 : index
    %c0_123 = arith.constant 0 : index
    %112 = tpu.strided_load %arg13[%c5_122, %c0_123] {strides = array<i32: 3, 1>} : memref<23x128xf32, #tpu.memory_space<vmem>>, vector<6x128xf32>
    %c5_124 = arith.constant 5 : index
    %c0_125 = arith.constant 0 : index
    %c0_126 = arith.constant 0 : index
    %113 = vector.load %arg6[%c5_124, %c0_125, %c0_126] : memref<6x128x256xf32, #tpu.memory_space<vmem>>, vector<1x128x256xf32>
    %114 = vector.shape_cast %113 : vector<1x128x256xf32> to vector<128x256xf32>
    %cst_127 = arith.constant dense<0.000000e+00> : vector<6x256xf32>
    %115 = tpu.matmul %112, %114, %cst_127 {dimension_numbers = #tpu.dot_dimension_numbers<[1], [0], [0], [1], [0, 0, 1, 1], [], []>} : vector<6x128xf32>, vector<128x256xf32>, vector<6x256xf32> -> vector<6x256xf32>
    %116 = arith.addf %111, %115 : vector<6x256xf32>
    %c0_128 = arith.constant 0 : index
    %c0_129 = arith.constant 0 : index
    %117 = vector.load %arg7[%c0_128, %c0_129] : memref<1x256xf32, #tpu.memory_space<vmem>>, vector<1x256xf32>
    %118 = vector.broadcast %117 : vector<1x256xf32> to vector<6x256xf32>
    %119 = arith.addf %116, %118 : vector<6x256xf32>
    %cst_130 = arith.constant 0.000000e+00 : f32
    %120 = vector.broadcast %cst_130 : f32 to vector<6x256xf32>
    %121 = arith.maximumf %119, %120 : vector<6x256xf32>
    %c0_131 = arith.constant 0 : index
    %c0_132 = arith.constant 0 : index
    %c0_133 = arith.constant 0 : index
    %122 = vector.load %arg10[%c0_131, %c0_132, %c0_133] : memref<1x6x256xf32, #tpu.memory_space<vmem>>, vector<1x6x256xf32>
    %123 = vector.shape_cast %122 : vector<1x6x256xf32> to vector<6x256xf32>
    %124 = vector.shape_cast %121 : vector<6x256xf32> to vector<1x6x256xf32>
    tpu.vector_store %arg10[%c0_131, %c0_132, %c0_133], %124 {strides = array<i32>} : memref<1x6x256xf32, #tpu.memory_space<vmem>>, vector<1x6x256xf32>,
    %c0_134 = arith.constant 0 : index
    %c0_135 = arith.constant 0 : index
    %125 = vector.load %arg9[%c0_134, %c0_135] : memref<1x128xf32, #tpu.memory_space<vmem>>, vector<1x128xf32>
    %126 = vector.extract_strided_slice %121 {offsets = [0, 0], sizes = [1, 256], strides = [1, 1]} : vector<6x256xf32> to vector<1x256xf32>
    %c0_136 = arith.constant 0 : index
    %c0_137 = arith.constant 0 : index
    %c0_138 = arith.constant 0 : index
    %127 = vector.load %arg8[%c0_136, %c0_137, %c0_138] : memref<6x256x128xf32, #tpu.memory_space<vmem>>, vector<1x256x128xf32>
    %128 = vector.shape_cast %127 : vector<1x256x128xf32> to vector<256x128xf32>
    %cst_139 = arith.constant dense<0.000000e+00> : vector<1x128xf32>
    %129 = tpu.matmul %126, %128, %cst_139 {dimension_numbers = #tpu.dot_dimension_numbers<[1], [0], [0], [1], [0, 0, 1, 1], [], []>} : vector<1x256xf32>, vector<256x128xf32>, vector<1x128xf32> -> vector<1x128xf32>
    %130 = arith.addf %125, %129 : vector<1x128xf32>
    %131 = vector.extract_strided_slice %121 {offsets = [1, 0], sizes = [1, 256], strides = [1, 1]} : vector<6x256xf32> to vector<1x256xf32>
    %c1_140 = arith.constant 1 : index
    %c0_141 = arith.constant 0 : index
    %c0_142 = arith.constant 0 : index
    %132 = vector.load %arg8[%c1_140, %c0_141, %c0_142] : memref<6x256x128xf32, #tpu.memory_space<vmem>>, vector<1x256x128xf32>
    %133 = vector.shape_cast %132 : vector<1x256x128xf32> to vector<256x128xf32>
    %cst_143 = arith.constant dense<0.000000e+00> : vector<1x128xf32>
    %134 = tpu.matmul %131, %133, %cst_143 {dimension_numbers = #tpu.dot_dimension_numbers<[1], [0], [0], [1], [0, 0, 1, 1], [], []>} : vector<1x256xf32>, vector<256x128xf32>, vector<1x128xf32> -> vector<1x128xf32>
    %135 = arith.addf %130, %134 : vector<1x128xf32>
    %136 = vector.extract_strided_slice %121 {offsets = [2, 0], sizes = [1, 256], strides = [1, 1]} : vector<6x256xf32> to vector<1x256xf32>
    %c2_144 = arith.constant 2 : index
    %c0_145 = arith.constant 0 : index
    %c0_146 = arith.constant 0 : index
    %137 = vector.load %arg8[%c2_144, %c0_145, %c0_146] : memref<6x256x128xf32, #tpu.memory_space<vmem>>, vector<1x256x128xf32>
    %138 = vector.shape_cast %137 : vector<1x256x128xf32> to vector<256x128xf32>
    %cst_147 = arith.constant dense<0.000000e+00> : vector<1x128xf32>
    %139 = tpu.matmul %136, %138, %cst_147 {dimension_numbers = #tpu.dot_dimension_numbers<[1], [0], [0], [1], [0, 0, 1, 1], [], []>} : vector<1x256xf32>, vector<256x128xf32>, vector<1x128xf32> -> vector<1x128xf32>
    %140 = arith.addf %135, %139 : vector<1x128xf32>
    %141 = vector.extract_strided_slice %121 {offsets = [3, 0], sizes = [1, 256], strides = [1, 1]} : vector<6x256xf32> to vector<1x256xf32>
    %c3_148 = arith.constant 3 : index
    %c0_149 = arith.constant 0 : index
    %c0_150 = arith.constant 0 : index
    %142 = vector.load %arg8[%c3_148, %c0_149, %c0_150] : memref<6x256x128xf32, #tpu.memory_space<vmem>>, vector<1x256x128xf32>
    %143 = vector.shape_cast %142 : vector<1x256x128xf32> to vector<256x128xf32>
    %cst_151 = arith.constant dense<0.000000e+00> : vector<1x128xf32>
    %144 = tpu.matmul %141, %143, %cst_151 {dimension_numbers = #tpu.dot_dimension_numbers<[1], [0], [0], [1], [0, 0, 1, 1], [], []>} : vector<1x256xf32>, vector<256x128xf32>, vector<1x128xf32> -> vector<1x128xf32>
    %145 = arith.addf %140, %144 : vector<1x128xf32>
    %146 = vector.extract_strided_slice %121 {offsets = [4, 0], sizes = [1, 256], strides = [1, 1]} : vector<6x256xf32> to vector<1x256xf32>
    %c4_152 = arith.constant 4 : index
    %c0_153 = arith.constant 0 : index
    %c0_154 = arith.constant 0 : index
    %147 = vector.load %arg8[%c4_152, %c0_153, %c0_154] : memref<6x256x128xf32, #tpu.memory_space<vmem>>, vector<1x256x128xf32>
    %148 = vector.shape_cast %147 : vector<1x256x128xf32> to vector<256x128xf32>
    %cst_155 = arith.constant dense<0.000000e+00> : vector<1x128xf32>
    %149 = tpu.matmul %146, %148, %cst_155 {dimension_numbers = #tpu.dot_dimension_numbers<[1], [0], [0], [1], [0, 0, 1, 1], [], []>} : vector<1x256xf32>, vector<256x128xf32>, vector<1x128xf32> -> vector<1x128xf32>
    %150 = arith.addf %145, %149 : vector<1x128xf32>
    %151 = vector.extract_strided_slice %121 {offsets = [5, 0], sizes = [1, 256], strides = [1, 1]} : vector<6x256xf32> to vector<1x256xf32>
    %c5_156 = arith.constant 5 : index
    %c0_157 = arith.constant 0 : index
    %c0_158 = arith.constant 0 : index
    %152 = vector.load %arg8[%c5_156, %c0_157, %c0_158] : memref<6x256x128xf32, #tpu.memory_space<vmem>>, vector<1x256x128xf32>
    %153 = vector.shape_cast %152 : vector<1x256x128xf32> to vector<256x128xf32>
    %cst_159 = arith.constant dense<0.000000e+00> : vector<1x128xf32>
    %154 = tpu.matmul %151, %153, %cst_159 {dimension_numbers = #tpu.dot_dimension_numbers<[1], [0], [0], [1], [0, 0, 1, 1], [], []>} : vector<1x256xf32>, vector<256x128xf32>, vector<1x128xf32> -> vector<1x128xf32>
    %155 = arith.addf %150, %154 : vector<1x128xf32>
    %c0_160 = arith.constant 0 : index
    %c0_161 = arith.constant 0 : index
    %c0_162 = arith.constant 0 : index
    %156 = vector.load %arg11[%c0_160, %c0_161, %c0_162] : memref<1x1x128xf32, #tpu.memory_space<vmem>>, vector<1x1x128xf32>
    %157 = vector.shape_cast %156 : vector<1x1x128xf32> to vector<1x128xf32>
    %158 = vector.shape_cast %155 : vector<1x128xf32> to vector<1x1x128xf32>
    tpu.vector_store %arg11[%c0_160, %c0_161, %c0_162], %158 {strides = array<i32>} : memref<1x1x128xf32, #tpu.memory_space<vmem>>, vector<1x1x128xf32>,
    return
  }
  func.func @transform_0(%arg0: i32) -> (i32, i32, i32) {
    %c0_i32 = arith.constant 0 : i32
    %c0_i32_0 = arith.constant 0 : i32
    %c0_i32_1 = arith.constant 0 : i32
    return %arg0, %c0_i32, %c0_i32_0 : i32, i32, i32
  }
  func.func @transform_1(%arg0: i32) -> (i32, i32, i32) {
    %c0_i32 = arith.constant 0 : i32
    %c0_i32_0 = arith.constant 0 : i32
    %c0_i32_1 = arith.constant 0 : i32
    %c0_i32_2 = arith.constant 0 : i32
    return %c0_i32, %c0_i32_0, %c0_i32_1 : i32, i32, i32
  }
  func.func @transform_2(%arg0: i32) -> (i32, i32) {
    %c0_i32 = arith.constant 0 : i32
    %c0_i32_0 = arith.constant 0 : i32
    %c0_i32_1 = arith.constant 0 : i32
    return %c0_i32, %c0_i32_0 : i32, i32
  }
  func.func @transform_3(%arg0: i32) -> (i32, i32, i32) {
    %c0_i32 = arith.constant 0 : i32
    %c0_i32_0 = arith.constant 0 : i32
    %c0_i32_1 = arith.constant 0 : i32
    %c0_i32_2 = arith.constant 0 : i32
    return %c0_i32, %c0_i32_0, %c0_i32_1 : i32, i32, i32
  }
  func.func @transform_4(%arg0: i32) -> (i32, i32) {
    %c0_i32 = arith.constant 0 : i32
    %c0_i32_0 = arith.constant 0 : i32
    %c0_i32_1 = arith.constant 0 : i32
    return %c0_i32, %c0_i32_0 : i32, i32
  }
  func.func @transform_5(%arg0: i32) -> (i32, i32, i32) {
    %c0_i32 = arith.constant 0 : i32
    %c0_i32_0 = arith.constant 0 : i32
    %c0_i32_1 = arith.constant 0 : i32
    %c0_i32_2 = arith.constant 0 : i32
    return %c0_i32, %c0_i32_0, %c0_i32_1 : i32, i32, i32
  }
  func.func @transform_6(%arg0: i32) -> (i32, i32) {
    %c0_i32 = arith.constant 0 : i32
    %c0_i32_0 = arith.constant 0 : i32
    %c0_i32_1 = arith.constant 0 : i32
    return %c0_i32, %c0_i32_0 : i32, i32
  }
  func.func @transform_7(%arg0: i32) -> (i32, i32, i32) {
    %c0_i32 = arith.constant 0 : i32
    %c0_i32_0 = arith.constant 0 : i32
    %c0_i32_1 = arith.constant 0 : i32
    %c0_i32_2 = arith.constant 0 : i32
    return %c0_i32, %c0_i32_0, %c0_i32_1 : i32, i32, i32
  }
  func.func @transform_8(%arg0: i32) -> (i32, i32) {
    %c0_i32 = arith.constant 0 : i32
    %c0_i32_0 = arith.constant 0 : i32
    %c0_i32_1 = arith.constant 0 : i32
    return %c0_i32, %c0_i32_0 : i32, i32
  }
  func.func @transform_9(%arg0: i32) -> (i32, i32, i32) {
    %c0_i32 = arith.constant 0 : i32
    %c0_i32_0 = arith.constant 0 : i32
    %c0_i32_1 = arith.constant 0 : i32
    return %arg0, %c0_i32, %c0_i32_0 : i32, i32, i32
  }
  func.func @transform_10(%arg0: i32) -> (i32, i32, i32) {
    %c0_i32 = arith.constant 0 : i32
    %c0_i32_0 = arith.constant 0 : i32
    %c0_i32_1 = arith.constant 0 : i32
    return %arg0, %c0_i32, %c0_i32_0 : i32, i32, i32
  }
}

</mosaic_0001>

<bundles_post_ra>
// kernel: cnn_forward.1
= control target key start
LH: loop header
LB: loop body
LE: loop exit
PB: predicated region body
PF: predicated region fallthrough
CT: control target
= control target key end

     0   :  { %16 = vsyncpa [#allocation5], 0  ;;  %s5357_s0 = inlined_call_operand.vmem [shape: f32[2,202,3], index: 0, kind: input, shape index: {}]   ;;  %s5358_s1 = inlined_call_operand.vmem [shape: f32[6,3,64], index: 1, kind: input, shape index: {}]   ;;  %s5359_s2 = inlined_call_operand.vmem [shape: f32[1,64], index: 2, kind: input, shape index: {}]   ;;  %s5360_s3 = inlined_call_operand.vmem [shape: f32[6,64,128], index: 3, kind: input, shape index: {}]   ;;  %s5361_s4 = inlined_call_operand.vmem [shape: f32[1,128], index: 4, kind: input, shape index: {}]   ;;  %s5362_s5 = inlined_call_operand.hbm [shape: f32[6,128,256], index: 5, kind: input, shape index: {}]   ;;  %s5363_s6 = inlined_call_operand.vmem [shape: f32[1,256], index: 6, kind: input, shape index: {}]   ;;  %s5364_s7 = inlined_call_operand.hbm [shape: f32[6,256,128], index: 7, kind: input, shape index: {}]   ;;  %s5365_s8 = inlined_call_operand.vmem [shape: f32[1,128], index: 8, kind: input, shape index: {}]   ;;  %s5366_s9 = inlined_call_operand.vmem [shape: f32[2,6,256], index: 9, kind: output, shape index: {0}]   ;;  %s5367_s10 = inlined_call_operand.hbm [shape: f32[2,1,128], index: 10, kind: output, shape index: {1}]  }
   0x1   :  { %17 = vsyncpa [#allocation8], 0 }
   0x2   :  { %18 = vsyncpa [#allocation6], 0 }
   0x3   :  { %20 = vsyncpa [#allocation6 + $0x1], 0  ;;  %s4623_s13 = smov 0   ;;  %s4625_s14 = smov 0  }
   0x4   :  { %s4627_s15 = smov 0   ;;  %s4629_s16 = smov 0  }
   0x5 LB: > { %5370 = sst [smem:[#allocation13_spill]] %s4553_s15  ;;  %s4644_s17 = sadd.s32 4294967295, %s4557_s16   ;;  %s4557_s16 = sphi %s4629_s16, %s5385_s16   ;;  %s4553_s15 = sphi %s4627_s15, %s5382_s15   ;;  %s4549_s14 = sphi %s4625_s14, %s5384_s14   ;;  %s4545_s13 = sphi %s4623_s13, %s5383_s13  }
   0x6   : > { %s3517_s18 = sadd.s32 4294967294, %s4557_s16   ;;  %s4648_s19 = sadd.s32 1, %s4557_s16  }
   0x7   : > { %s253_s20 = sadd.s32 1, %s4553_s15  ;;  %s250_s21 = ssub.s32 %s4557_s16, %s4648_s19 }
   0x8   : > { %p263_p0 = scmp.ne.s32.totalorder %s4553_s15, %s4549_s14  ;;  %p251_p1 = scmp.eq.s32.totalorder %s250_s21, 0 }
   0x9   : > { %p264_p2 = scmp.eq.s32.totalorder %s4644_s17, 1  ;;  %p269_p3 = scmp.ne.s32.totalorder %s4549_s14, %s4545_s13 }
   0xa   : > { %p270_p4 = scmp.eq.s32.totalorder %s3517_s18, 1  ;;  %p3518_p7 = scmp.ge.s32.totalorder %s4557_s16, 1 }
   0xb   : > { %s4659_s22 = scalar_select %p251_p1, %s4553_s15, %s253_s20  }
   0xc   : > { %p4661_p5 = por %p264_p2, %p263_p0  ;;  %p4665_p6 = por %p270_p4, %p269_p3 }
   0xd   : > { %5371 = sst [smem:[#allocation14_spill]] %s4659_s22  ;;  %p277_p8 = scmp.lt.s32.totalorder %s4557_s16, 3 }
   0xe   : > { %s5373_s24 = scalar_select %p4665_p6, 1, 0 }
   0xf   : > { %p5368_p9 = scmp.eq.s32.totalorder %s4644_s17, 0  ;;  %p4672_p10 = pnand %p3518_p7, %p277_p8 }
  0x10   : > { %s4559_s26 = smov [#allocation4]   ;;  %s4560_s29 = smov [#allocation7]  }
  0x11   : > { %s301_s27 = sshll.u32 %s4559_s26, 4  ;;  %p4381_p11 = pneg %p4672_p10  ;;  %s302_s27 = int_to_ptr.vmem [resolvable:$true] %s301_s27 }
  0x12   : > { %s317_s30 = sshll.u32 %s4560_s29, 4  ;;  %s4448_s11 = scalar_lea.vmem %s302_s27, 24576  ;;  %s318_s30 = int_to_ptr.vmem [resolvable:$true] %s317_s30 }
  0x13   : > { %p4680_p12 = pnand %p5368_p9, %p4381_p11  ;;  %p4449_p0 = scmp.ne.s32.totalorder %s302_s27, %s4448_s11 }
  0x14   : > { %p4456_p3 = scmp.lt.s32.totalorder %s302_s27, %s302_s27  ;;  %p4457_p4 = scmp.lt.s32.totalorder %s4448_s11, %s4448_s11 }
  0x15   : > { %p4439_p13 = pneg %p4680_p12 }
  0x16   : > { %p4458_p7 = por %p4457_p4, %p4456_p3 }
  0x17   : > { %p4451_p1 = pnand %p4449_p0, %p4439_p13 }
  0x19   : > { %p4452_p2 = pneg %p4451_p1 }
  0x1b   : > { %p4459_p8 = pnand %p4458_p7, %p4452_p2 }
  0x1d   : > { %4462 = shalt.err (!%p4459_p8)
}
  0x1e   : > { %s4561_s12 = smov 256   ;;  %s4562_s18 = smov 16  }
  0x1f   : > { %4384 = dma.hbm_to_vmem [thread:$0]  (!%p4680_p12), %s5362_s5, 24576, %s302_s27, [#allocation5], %s4561_s12, %s4561_s12, %s4562_s18  }
  0x20   : > { %s4474_s26 = scalar_lea.vmem %s318_s30, 24576  ;;  %p4482_p9 = scmp.lt.s32.totalorder %s318_s30, %s318_s30 }
  0x21   : > { %p4475_p11 = scmp.ne.s32.totalorder %s318_s30, %s4474_s26  ;;  %p4483_p6 = scmp.lt.s32.totalorder %s4474_s26, %s4474_s26 }
  0x23   : > { %p4477_p0 = pnand %p4475_p11, %p4439_p13  ;;  %p4484_p3 = por %p4483_p6, %p4482_p9 }
  0x25   : > { %p4478_p1 = pneg %p4477_p0 }
  0x27   : > { %p4485_p2 = pnand %p4484_p3, %p4478_p1 }
  0x29   : > { %4488 = shalt.err (!%p4485_p2)
}
  0x2a   : > { %s4563_s29 = smov 128   ;;  %s4564_s11 = smov 8  }
  0x2b   : > { %4387 = dma.hbm_to_vmem [thread:$0]  (!%p4680_p12), %s5364_s7, 24576, %s318_s30, [#allocation8], %s4563_s29, %s4563_s29, %s4564_s11  }
  0x2c   : > { %344 = sbr.rel (%p4672_p10) target bundleno = 1160 (0x488), region = 56  ;;  %p5376_p4 = scmp.eq.s32.totalorder (!%p4672_p10), %s4644_s17, 0 }
  0x31   : > { %4532 = dma.done.wait (%p5376_p4), [#allocation5], 24576   ;;  %p5377_p13 = pmov %p5376_p4 }
  0x32   : > { %p5378_p6 = pmov %p5376_p4 }
  0x33   : > { %4534 = vsyncadd (%p5377_p13), [#allocation5], 4294942720 }
  0x34   : > { %4536 = dma.done.wait (%p5378_p6), [#allocation8], 24576   ;;  %p5379_p9 = pmov %p5376_p4 }
  0x35   : > { %p390_p7 = scmp.lt.s32.totalorder %s4644_s17, 1  ;;  %v4565_v0 = vmov 0.0   ;;  %vm4566_vm0 = vmmov 0   ;;  %vm466_vm1 = vcmask 1042432   ;;  %vm438_vm2 = vcmask 23552   ;;  %v3654_v61 = vld [vmem:[%s5360_s3 + $0x78] sm:$0xff] }
  0x36   : > { %4538 = vsyncadd (%p5379_p9), [#allocation8], 4294942720  ;;  %2082 = vst [vmem:[#allocation3] sm:$0x1] %v4565_v0  ;;  %4046 = vmatprep.subr.mxu0 %v4565_v0  ;;  %4048 = vmatprep.mubr.msk.f32.mxu0 %vm4566_vm0, %v4565_v0  ;;  %v3545_v1 = vld [vmem:[%s5358_s1 + $0x4] sm:$0x7] }
  0x37   : > { %4075 = vmatprep.subr.mxu1 %v4565_v0  ;;  %s4719_s15 = scalar_select %p390_p7, %s4644_s17, 1  ;;  %4077 = vmatprep.mubr.msk.f32.mxu1 %vm4566_vm0, %v4565_v0  ;;  %v417_v3 = vld [vmem:[%s5358_s1] sm:$0x7]  ;;  %v3575_v5 = vld [vmem:[%s5358_s1 + $0x8] sm:$0x7]  ;;  %v1447_v62 = vld [vmem:[%s5360_s3 + $0x38] sm:$0xff] }
  0x38   : > { %4047 = vmatpush3.msk.msra.mxu0 %vm466_vm1, %v3545_v1  ;;  %4076 = vmatpush3.msk.msra.mxu1 %vm466_vm1, %v417_v3  ;;  %v3595_v6 = vld [vmem:[%s5358_s1 + $0xc] sm:$0x7]  ;;  %v3615_v25 = vld [vmem:[%s5358_s1 + $0x10] sm:$0x7]  ;;  %v3635_v26 = vld [vmem:[%s5358_s1 + $0x14] sm:$0x7] }
  0x39   : > { %s4370_s22 = smul.u32 208, %s4719_s15  ;;  %4104 = vmatprep.subr.mxu0 %v4565_v0  ;;  %4133 = vmatprep.subr.mxu1 %v4565_v0  ;;  %v3653_v63 = vld [vmem:[%s5360_s3 + $0x70] sm:$0xff]  ;;  %v1445_v3 = vld [vmem:[%s5360_s3 + $0x28] sm:$0xff]  ;;  %vm1421_vm3 = vcmask 516096   ;;  %vm1424_vm4 = vcmask 523264   ;;  %vm1433_vm5 = vcmask 517120  }
  0x3a   : > { %v1446_v1 = vld [vmem:[%s5360_s3 + $0x30] sm:$0xff]  ;;  %1422 = vst.msk [vmem:[#allocation2] sm:$0x1] %vm1421_vm3, %v4565_v0  ;;  %s3709_s29 = sshll.u32 %s4719_s15, 4  ;;  %s388_s30 = sand.u32 1, %s4549_s14  }
  0x3b   : > { %s4727_s28 = scalar_lea.vmem %s5357_s0, %s4370_s22  ;;  %s399_s25 = scalar_lea.vmem %s5366_s9, %s3709_s29 }
  0x3c   : > { %v3536_v2 = vld [vmem:[%s4727_s28 + $0x1] ss:$3 sm:$0xff]  ;;  %v400_v4 = vld [vmem:[%s4727_s28] ss:$3 sm:$0xff]  ;;  %v3537_v7 = vld [vmem:[%s4727_s28 + $0x19] ss:$3 sm:$0xff] }
  0x3d   : > { %4049 = vmatmul.mubr.msk.f32.vlgmr.msra.gmra.mxu0 %vm438_vm2, %v3536_v2  ;;  %4078 = vmatmul.mubr.msk.f32.vlgmr.msra.gmra.mxu1 %vm438_vm2, %v400_v4  ;;  %v3528_v8 = vld [vmem:[%s4727_s28 + $0x18] ss:$3 sm:$0xff]  ;;  %v3538_v9 = vld [vmem:[%s4727_s28 + $0x31] ss:$3 sm:$0xff]  ;;  %v3529_v10 = vld [vmem:[%s4727_s28 + $0x30] ss:$3 sm:$0xff] }
  0x3e   : > { %4105 = vmatpush3.msk.msra.mxu0 %vm466_vm1, %v3575_v5  ;;  %4051 = vmatprep.mubr.msk.f32.mxu0 %vm4566_vm0, %v4565_v0  ;;  %v3539_v11 = vld [vmem:[%s4727_s28 + $0x49] ss:$3 sm:$0xff]  ;;  %v3530_v12 = vld [vmem:[%s4727_s28 + $0x48] ss:$3 sm:$0xff]  ;;  %v3540_v13 = vld [vmem:[%s4727_s28 + $0x61] ss:$3 sm:$0xff] }
  0x3f   : > { %4134 = vmatpush3.msk.msra.mxu1 %vm466_vm1, %v3595_v6  ;;  %4080 = vmatprep.mubr.msk.f32.mxu1 %vm4566_vm0, %v4565_v0  ;;  %v3531_v14 = vld [vmem:[%s4727_s28 + $0x60] ss:$3 sm:$0xff]  ;;  %v3541_v15 = vld [vmem:[%s4727_s28 + $0x79] ss:$3 sm:$0xff]  ;;  %v3532_v16 = vld [vmem:[%s4727_s28 + $0x78] ss:$3 sm:$0xff] }
  0x40   : > { %4162 = vmatprep.subr.mxu0 %v4565_v0  ;;  %4191 = vmatprep.subr.mxu1 %v4565_v0  ;;  %v3542_v17 = vld [vmem:[%s4727_s28 + $0x91] ss:$3 sm:$0xff]  ;;  %v3533_v18 = vld [vmem:[%s4727_s28 + $0x90] ss:$3 sm:$0xff]  ;;  %v3543_v19 = vld [vmem:[%s4727_s28 + $0xa9] ss:$3 sm:$0xff] }
  0x41   : > { %4052 = vmatmul.mubr.msk.f32.gmra.mxu0 %vm438_vm2, %v3537_v7  ;;  %4081 = vmatmul.mubr.msk.f32.gmra.mxu1 %vm438_vm2, %v3528_v8  ;;  %v3534_v20 = vld [vmem:[%s4727_s28 + $0xa8] ss:$3 sm:$0xff]  ;;  %v3544_v21 = vld [vmem:[%s4727_s28 + $0xc1] ss:$3 sm:$0x3]  ;;  %s3706_s12 = sshll.u32 %s4644_s17, 4 }
  0x42   : > { %4054 = vmatprep.mubr.msk.f32.mxu0 %vm4566_vm0, %v4565_v0  ;;  %4083 = vmatprep.mubr.msk.f32.mxu1 %vm4566_vm0, %v4565_v0  ;;  %v3535_v22 = vld [vmem:[%s4727_s28 + $0xc0] ss:$3 sm:$0x3]  ;;  %v3566_v23 = vld [vmem:[%s4727_s28 + $0x2] ss:$3 sm:$0xff]  ;;  %v3650_v6 = vld [vmem:[%s5360_s3 + $0x58] sm:$0xff]  ;;  %s3413_s26 = scalar_lea.hbm %s5367_s10, %s3706_s12 }
  0x43   : > { %v3586_v24 = vld [vmem:[%s4727_s28 + $0x3] ss:$3 sm:$0xff]  ;;  %v3587_v28 = vld [vmem:[%s4727_s28 + $0x1b] ss:$3 sm:$0xff]  ;;  %v3588_v30 = vld [vmem:[%s4727_s28 + $0x33] ss:$3 sm:$0xff] }
  0x44   : > { %v3567_v27 = vld [vmem:[%s4727_s28 + $0x1a] ss:$3 sm:$0xff]  ;;  %v3568_v29 = vld [vmem:[%s4727_s28 + $0x32] ss:$3 sm:$0xff]  ;;  %v3569_v31 = vld [vmem:[%s4727_s28 + $0x4a] ss:$3 sm:$0xff] }
  0x45   : > { %4055 = vmatmul.mubr.msk.f32.gmra.mxu0 %vm438_vm2, %v3538_v9  ;;  %4084 = vmatmul.mubr.msk.f32.gmra.mxu1 %vm438_vm2, %v3529_v10  ;;  %v3589_v32 = vld [vmem:[%s4727_s28 + $0x4b] ss:$3 sm:$0xff]  ;;  %v3590_v34 = vld [vmem:[%s4727_s28 + $0x63] ss:$3 sm:$0xff]  ;;  %v3591_v36 = vld [vmem:[%s4727_s28 + $0x7b] ss:$3 sm:$0xff] }
  0x46   : > { %4057 = vmatprep.mubr.msk.f32.mxu0 %vm4566_vm0, %v4565_v0  ;;  %4086 = vmatprep.mubr.msk.f32.mxu1 %vm4566_vm0, %v4565_v0  ;;  %v3570_v33 = vld [vmem:[%s4727_s28 + $0x62] ss:$3 sm:$0xff]  ;;  %v3571_v35 = vld [vmem:[%s4727_s28 + $0x7a] ss:$3 sm:$0xff]  ;;  %v3572_v37 = vld [vmem:[%s4727_s28 + $0x92] ss:$3 sm:$0xff] }
  0x47   : > { %v3592_v38 = vld [vmem:[%s4727_s28 + $0x93] ss:$3 sm:$0xff]  ;;  %v3593_v40 = vld [vmem:[%s4727_s28 + $0xab] ss:$3 sm:$0xff]  ;;  %v3628_v48 = vld [vmem:[%s4727_s28 + $0x35] ss:$3 sm:$0xff] }
  0x48   : > { %v3573_v39 = vld [vmem:[%s4727_s28 + $0xaa] ss:$3 sm:$0xff]  ;;  %v3574_v41 = vld [vmem:[%s4727_s28 + $0xc2] ss:$3 sm:$0x3]  ;;  %s389_s18 = scalar_lea.vmem [#allocation9], %s388_s30 }
  0x49   : > { %4058 = vmatmul.mubr.msk.f32.gmra.mxu0 %vm438_vm2, %v3539_v11  ;;  %4087 = vmatmul.mubr.msk.f32.gmra.mxu1 %vm438_vm2, %v3530_v12  ;;  %v3594_v42 = vld [vmem:[%s4727_s28 + $0xc3] ss:$3 sm:$0x3]  ;;  %v3606_v43 = vld [vmem:[%s4727_s28 + $0x4] ss:$3 sm:$0xff]  ;;  %s3415_s20 = sshll.u32 %s389_s18, 4  ;;  %s3416_s20 = int_to_ptr.vmem [resolvable:$true] %s3415_s20 }
  0x4a   : > { %4060 = vmatprep.mubr.msk.f32.mxu0 %vm4566_vm0, %v4565_v0  ;;  %4089 = vmatprep.mubr.msk.f32.mxu1 %vm4566_vm0, %v4565_v0  ;;  %v3626_v44 = vld [vmem:[%s4727_s28 + $0x5] ss:$3 sm:$0xff]  ;;  %v3627_v46 = vld [vmem:[%s4727_s28 + $0x1d] ss:$3 sm:$0xff]  ;;  %v3629_v50 = vld [vmem:[%s4727_s28 + $0x4d] ss:$3 sm:$0xff] }
  0x4b   : > { %v3607_v45 = vld [vmem:[%s4727_s28 + $0x1c] ss:$3 sm:$0xff]  ;;  %v3608_v47 = vld [vmem:[%s4727_s28 + $0x34] ss:$3 sm:$0xff]  ;;  %v3609_v49 = vld [vmem:[%s4727_s28 + $0x4c] ss:$3 sm:$0xff] }
  0x4c   : > { %v3610_v51 = vld [vmem:[%s4727_s28 + $0x64] ss:$3 sm:$0xff]  ;;  %v3630_v52 = vld [vmem:[%s4727_s28 + $0x65] ss:$3 sm:$0xff]  ;;  %v3631_v54 = vld [vmem:[%s4727_s28 + $0x7d] ss:$3 sm:$0xff] }
  0x4d   : > { %4061 = vmatmul.mubr.msk.f32.gmra.mxu0 %vm438_vm2, %v3540_v13  ;;  %4090 = vmatmul.mubr.msk.f32.gmra.mxu1 %vm438_vm2, %v3531_v14  ;;  %v3611_v53 = vld [vmem:[%s4727_s28 + $0x7c] ss:$3 sm:$0xff]  ;;  %v3612_v55 = vld [vmem:[%s4727_s28 + $0x94] ss:$3 sm:$0xff]  ;;  %v3632_v56 = vld [vmem:[%s4727_s28 + $0x95] ss:$3 sm:$0xff] }
  0x4e   : > { %4063 = vmatprep.mubr.msk.f32.mxu0 %vm4566_vm0, %v4565_v0  ;;  %4092 = vmatprep.mubr.msk.f32.mxu1 %vm4566_vm0, %v4565_v0  ;;  %v3613_v57 = vld [vmem:[%s4727_s28 + $0xac] ss:$3 sm:$0xff]  ;;  %v3633_v58 = vld [vmem:[%s4727_s28 + $0xad] ss:$3 sm:$0xff]  ;;  %s3400_s29 = scalar_lea.sflag [#allocation6], %s388_s30  ;;  %s4489_s11 = scalar_lea.vmem %s3416_s20, 16 }
  0x4f   : > { %v3614_v59 = vld [vmem:[%s4727_s28 + $0xc4] ss:$3 sm:$0x3]  ;;  %v3634_v60 = vld [vmem:[%s4727_s28 + $0xc5] ss:$3 sm:$0x3]  ;;  %p4490_p10 = scmp.ne.s32.totalorder %s3416_s20, %s4489_s11 }
  0x50   : > { %v3652_v2 = vld [vmem:[%s5360_s3 + $0x68] sm:$0xff]  ;;  %v3651_v4 = vld [vmem:[%s5360_s3 + $0x60] sm:$0xff]  ;;  %v1443_v7 = vld [vmem:[%s5360_s3 + $0x18] sm:$0xff]  ;;  %s4567_s22 = smov [#allocation9]  }
  0x51   : > { %4064 = vmatmul.mubr.msk.f32.gmra.mxu0 %vm438_vm2, %v3541_v15  ;;  %4093 = vmatmul.mubr.msk.f32.gmra.mxu1 %vm438_vm2, %v3532_v16  ;;  %v1444_v5 = vld [vmem:[%s5360_s3 + $0x20] sm:$0xff]  ;;  %v3649_v8 = vld [vmem:[%s5360_s3 + $0x50] sm:$0xff]  ;;  %v3648_v10 = vld [vmem:[%s5360_s3 + $0x48] sm:$0xff]  ;;  %p4491_p12 = pnand %p4490_p10, %p4661_p5 }
  0x52   : > { %4066 = vmatprep.mubr.msk.f32.mxu0 %vm4566_vm0, %v4565_v0  ;;  %4095 = vmatprep.mubr.msk.f32.mxu1 %vm4566_vm0, %v4565_v0  ;;  %v1442_v9 = vld [vmem:[%s5360_s3 + $0x10] sm:$0xff]  ;;  %v1441_v11 = vld [vmem:[%s5360_s3 + $0x8] sm:$0xff]  ;;  %v3647_v12 = vld [vmem:[%s5360_s3 + $0x40] sm:$0xff] }
  0x53   : > { %v1440_v13 = vld [vmem:[%s5360_s3] sm:$0xff]  ;;  %p4492_p8 = pneg %p4491_p12 }
  0x55   : > { %4067 = vmatmul.mubr.msk.f32.gmra.mxu0 %vm438_vm2, %v3542_v17  ;;  %4096 = vmatmul.mubr.msk.f32.gmra.mxu1 %vm438_vm2, %v3533_v18 }
  0x56   : > { %4069 = vmatprep.mubr.msk.f32.mxu0 %vm4566_vm0, %v4565_v0  ;;  %4098 = vmatprep.mubr.msk.f32.mxu1 %vm4566_vm0, %v4565_v0 }
  0x59   : > { %4070 = vmatmul.mubr.msk.f32.gmra.mxu0 %vm438_vm2, %v3543_v19  ;;  %4099 = vmatmul.mubr.msk.f32.gmra.mxu1 %vm438_vm2, %v3534_v20 }
  0x5a   : > { %4072 = vmatprep.mubr.msk.f32.mxu0 %vm4566_vm0, %v4565_v0  ;;  %4101 = vmatprep.mubr.msk.f32.mxu1 %vm4566_vm0, %v4565_v0 }
  0x5d   : > { %4073 = vmatmul.mubr.msk.f32.gmra.mxu0 %vm438_vm2, %v3544_v21  ;;  %4102 = vmatmul.mubr.msk.f32.gmra.mxu1 %vm438_vm2, %v3535_v22 }
  0x5e   : > { %4106 = vmatprep.mubr.msk.f32.mxu0 %vm4566_vm0, %v4565_v0  ;;  %4135 = vmatprep.mubr.msk.f32.mxu1 %vm4566_vm0, %v4565_v0 }
  0x61   : > { %4107 = vmatmul.mubr.msk.f32.vlgmr.msra.gmra.mxu0 %vm438_vm2, %v3566_v23  ;;  %4136 = vmatmul.mubr.msk.f32.vlgmr.msra.gmra.mxu1 %vm438_vm2, %v3586_v24 }
  0x62   : > { %4163 = vmatpush3.msk.msra.mxu0 %vm466_vm1, %v3615_v25  ;;  %4109 = vmatprep.mubr.msk.f32.mxu0 %vm4566_vm0, %v4565_v0 }
  0x63   : > { %4192 = vmatpush3.msk.msra.mxu1 %vm466_vm1, %v3635_v26  ;;  %4138 = vmatprep.mubr.msk.f32.mxu1 %vm4566_vm0, %v4565_v0 }
  0x64   : > { %4220 = vmatprep.subr.mxu0 %v4565_v0  ;;  %4245 = vmatprep.subr.mxu1 %v4565_v0 }
  0x65   : > { %4110 = vmatmul.mubr.msk.f32.gmra.mxu0 %vm438_vm2, %v3567_v27  ;;  %4139 = vmatmul.mubr.msk.f32.gmra.mxu1 %vm438_vm2, %v3587_v28 }
  0x66   : > { %4112 = vmatprep.mubr.msk.f32.mxu0 %vm4566_vm0, %v4565_v0  ;;  %4141 = vmatprep.mubr.msk.f32.mxu1 %vm4566_vm0, %v4565_v0 }
  0x69   : > { %4113 = vmatmul.mubr.msk.f32.gmra.mxu0 %vm438_vm2, %v3568_v29  ;;  %4142 = vmatmul.mubr.msk.f32.gmra.mxu1 %vm438_vm2, %v3588_v30 }
  0x6a   : > { %4115 = vmatprep.mubr.msk.f32.mxu0 %vm4566_vm0, %v4565_v0  ;;  %4144 = vmatprep.mubr.msk.f32.mxu1 %vm4566_vm0, %v4565_v0 }
  0x6d   : > { %4116 = vmatmul.mubr.msk.f32.gmra.mxu0 %vm438_vm2, %v3569_v31  ;;  %4145 = vmatmul.mubr.msk.f32.gmra.mxu1 %vm438_vm2, %v3589_v32 }
  0x6e   : > { %4118 = vmatprep.mubr.msk.f32.mxu0 %vm4566_vm0, %v4565_v0  ;;  %4147 = vmatprep.mubr.msk.f32.mxu1 %vm4566_vm0, %v4565_v0 }
  0x71   : > { %4119 = vmatmul.mubr.msk.f32.gmra.mxu0 %vm438_vm2, %v3570_v33  ;;  %4148 = vmatmul.mubr.msk.f32.gmra.mxu1 %vm438_vm2, %v3590_v34 }
  0x72   : > { %4121 = vmatprep.mubr.msk.f32.mxu0 %vm4566_vm0, %v4565_v0  ;;  %4150 = vmatprep.mubr.msk.f32.mxu1 %vm4566_vm0, %v4565_v0 }
  0x75   : > { %4122 = vmatmul.mubr.msk.f32.gmra.mxu0 %vm438_vm2, %v3571_v35  ;;  %4151 = vmatmul.mubr.msk.f32.gmra.mxu1 %vm438_vm2, %v3591_v36 }
  0x76   : > { %4124 = vmatprep.mubr.msk.f32.mxu0 %vm4566_vm0, %v4565_v0  ;;  %4153 = vmatprep.mubr.msk.f32.mxu1 %vm4566_vm0, %v4565_v0 }
  0x79   : > { %4125 = vmatmul.mubr.msk.f32.gmra.mxu0 %vm438_vm2, %v3572_v37  ;;  %4154 = vmatmul.mubr.msk.f32.gmra.mxu1 %vm438_vm2, %v3592_v38 }
  0x7a   : > { %4127 = vmatprep.mubr.msk.f32.mxu0 %vm4566_vm0, %v4565_v0  ;;  %4156 = vmatprep.mubr.msk.f32.mxu1 %vm4566_vm0, %v4565_v0 }
  0x7d   : > { %4128 = vmatmul.mubr.msk.f32.gmra.mxu0 %vm438_vm2, %v3573_v39  ;;  %4157 = vmatmul.mubr.msk.f32.gmra.mxu1 %vm438_vm2, %v3593_v40 }
  0x7e   : > { %4130 = vmatprep.mubr.msk.f32.mxu0 %vm4566_vm0, %v4565_v0  ;;  %4159 = vmatprep.mubr.msk.f32.mxu1 %vm4566_vm0, %v4565_v0 }
  0x81   : > { %4131 = vmatmul.mubr.msk.f32.gmra.mxu0 %vm438_vm2, %v3574_v41  ;;  %4160 = vmatmul.mubr.msk.f32.gmra.mxu1 %vm438_vm2, %v3594_v42 }
  0x82   : > { %4164 = vmatprep.mubr.msk.f32.mxu0 %vm4566_vm0, %v4565_v0  ;;  %4193 = vmatprep.mubr.msk.f32.mxu1 %vm4566_vm0, %v4565_v0 }
  0x85   : > { %4165 = vmatmul.mubr.msk.f32.vlgmr.msra.gmra.mxu0 %vm438_vm2, %v3606_v43  ;;  %4194 = vmatmul.mubr.msk.f32.vlgmr.msra.gmra.mxu1 %vm438_vm2, %v3626_v44 }
  0x86   : > { %4167 = vmatprep.mubr.msk.f32.mxu0 %vm4566_vm0, %v4565_v0  ;;  %4196 = vmatprep.mubr.msk.f32.mxu1 %vm4566_vm0, %v4565_v0 }
  0x87   : > { %4221 = vmatpush3.msra.mxu0 %v3654_v61  ;;  %4246 = vmatpush3.msra.mxu1 %v1447_v62 }
  0x88   : > { %4222 = vmatprep.subr.mxu0 %v4565_v0  ;;  %4247 = vmatprep.subr.mxu1 %v4565_v0 }
  0x89   : > { %4168 = vmatmul.mubr.msk.f32.gmra.mxu0 %vm438_vm2, %v3607_v45  ;;  %4197 = vmatmul.mubr.msk.f32.gmra.mxu1 %vm438_vm2, %v3627_v46 }
  0x8a   : > { %4170 = vmatprep.mubr.msk.f32.mxu0 %vm4566_vm0, %v4565_v0  ;;  %4199 = vmatprep.mubr.msk.f32.mxu1 %vm4566_vm0, %v4565_v0 }
  0x8b   : > { %4223 = vmatpush3.msra.mxu0 %v3653_v63  ;;  %4248 = vmatpush3.msra.mxu1 %v1446_v1 }
  0x8c   : > { %4224 = vmatprep.subr.mxu0 %v4565_v0  ;;  %4249 = vmatprep.subr.mxu1 %v4565_v0 }
  0x8d   : > { %4171 = vmatmul.mubr.msk.f32.gmra.mxu0 %vm438_vm2, %v3608_v47  ;;  %4200 = vmatmul.mubr.msk.f32.gmra.mxu1 %vm438_vm2, %v3628_v48 }
  0x8e   : > { %4173 = vmatprep.mubr.msk.f32.mxu0 %vm4566_vm0, %v4565_v0  ;;  %4202 = vmatprep.mubr.msk.f32.mxu1 %vm4566_vm0, %v4565_v0 }
  0x8f   : > { %4225 = vmatpush3.msra.mxu0 %v3652_v2  ;;  %4250 = vmatpush3.msra.mxu1 %v1445_v3 }
  0x90   : > { %4226 = vmatprep.subr.mxu0 %v4565_v0  ;;  %4251 = vmatprep.subr.mxu1 %v4565_v0 }
  0x91   : > { %4174 = vmatmul.mubr.msk.f32.gmra.mxu0 %vm438_vm2, %v3609_v49  ;;  %4203 = vmatmul.mubr.msk.f32.gmra.mxu1 %vm438_vm2, %v3629_v50 }
  0x92   : > { %4176 = vmatprep.mubr.msk.f32.mxu0 %vm4566_vm0, %v4565_v0  ;;  %4205 = vmatprep.mubr.msk.f32.mxu1 %vm4566_vm0, %v4565_v0 }
  0x93   : > { %4227 = vmatpush3.msra.mxu0 %v3651_v4  ;;  %4252 = vmatpush3.msra.mxu1 %v1444_v5 }
  0x94   : > { %4228 = vmatprep.subr.mxu0 %v4565_v0  ;;  %4253 = vmatprep.subr.mxu1 %v4565_v0 }
  0x95   : > { %4177 = vmatmul.mubr.msk.f32.gmra.mxu0 %vm438_vm2, %v3610_v51  ;;  %4206 = vmatmul.mubr.msk.f32.gmra.mxu1 %vm438_vm2, %v3630_v52 }
  0x96   : > { %4179 = vmatprep.mubr.msk.f32.mxu0 %vm4566_vm0, %v4565_v0  ;;  %4208 = vmatprep.mubr.msk.f32.mxu1 %vm4566_vm0, %v4565_v0 }
  0x97   : > { %4229 = vmatpush3.msra.mxu0 %v3650_v6  ;;  %4254 = vmatpush3.msra.mxu1 %v1443_v7 }
  0x98   : > { %4230 = vmatprep.subr.mxu0 %v4565_v0  ;;  %4255 = vmatprep.subr.mxu1 %v4565_v0 }
  0x99   : > { %4180 = vmatmul.mubr.msk.f32.gmra.mxu0 %vm438_vm2, %v3611_v53  ;;  %4209 = vmatmul.mubr.msk.f32.gmra.mxu1 %vm438_vm2, %v3631_v54 }
  0x9a   : > { %4182 = vmatprep.mubr.msk.f32.mxu0 %vm4566_vm0, %v4565_v0  ;;  %4211 = vmatprep.mubr.msk.f32.mxu1 %vm4566_vm0, %v4565_v0 }
  0x9b   : > { %4231 = vmatpush3.msra.mxu0 %v3649_v8  ;;  %4256 = vmatpush3.msra.mxu1 %v1442_v9 }
  0x9c   : > { %4232 = vmatprep.subr.mxu0 %v4565_v0  ;;  %4257 = vmatprep.subr.mxu1 %v4565_v0 }
  0x9d   : > { %4183 = vmatmul.mubr.msk.f32.gmra.mxu0 %vm438_vm2, %v3612_v55  ;;  %4212 = vmatmul.mubr.msk.f32.gmra.mxu1 %vm438_vm2, %v3632_v56 }
  0x9e   : > { %4185 = vmatprep.mubr.msk.f32.mxu0 %vm4566_vm0, %v4565_v0  ;;  %4214 = vmatprep.mubr.msk.f32.mxu1 %vm4566_vm0, %v4565_v0 }
  0x9f   : > { %4233 = vmatpush3.msra.mxu0 %v3648_v10  ;;  %4258 = vmatpush3.msra.mxu1 %v1441_v11 }
  0xa0   : > { %4234 = vmatprep.subr.mxu0 %v4565_v0  ;;  %4259 = vmatprep.subr.mxu1 %v4565_v0 }
  0xa1   : > { %4186 = vmatmul.mubr.msk.f32.gmra.mxu0 %vm438_vm2, %v3613_v57  ;;  %4215 = vmatmul.mubr.msk.f32.gmra.mxu1 %vm438_vm2, %v3633_v58 }
  0xa2   : > { %4188 = vmatprep.mubr.msk.f32.mxu0 %vm4566_vm0, %v4565_v0  ;;  %4217 = vmatprep.mubr.msk.f32.mxu1 %vm4566_vm0, %v4565_v0 }
  0xa3   : > { %4235 = vmatpush3.msra.mxu0 %v3647_v12  ;;  %4260 = vmatpush3.msra.mxu1 %v1440_v13 }
  0xa4   : > { %4270 = vmatprep.subr.mxu0 %v4565_v0  ;;  %4295 = vmatprep.subr.mxu1 %v4565_v0 }
  0xa5   : > { %4189 = vmatmul.mubr.msk.f32.gmra.mxu0 %vm438_vm2, %v3614_v59  ;;  %4218 = vmatmul.mubr.msk.f32.gmra.mxu1 %vm438_vm2, %v3634_v60 }
  0xa6   : > { %4236 = vmatprep.mubr.msk.f32.mxu0 %vm4566_vm0, %v4565_v0  ;;  %4261 = vmatprep.mubr.msk.f32.mxu1 %vm4566_vm0, %v4565_v0 }
  0xfd   : > { %v536_v14 = vpop.f32.mrf.mxu0  ;;  %v676_v15 = vpop.f32.mrf.mxu1 }
  0xfe   : > { %v5040_v16 = vadd.f32 %v676_v15, %v536_v14 }
  0xff   : > { %v4050_v17 = vpop.f32.mrf.mxu0  ;;  %v4079_v18 = vpop.f32.mrf.mxu1 }
 0x101   : > { %v541_v19 = vpop.f32.mrf.mxu0  ;;  %v681_v20 = vpop.f32.mrf.mxu1 }
 0x102   : > { %v5042_v21 = vadd.f32 %v681_v20, %v541_v19 }
 0x103   : > { %v4053_v22 = vpop.f32.mrf.mxu0  ;;  %v4082_v23 = vpop.f32.mrf.mxu1 }
 0x105   : > { %v546_v24 = vpop.f32.mrf.mxu0  ;;  %v686_v25 = vpop.f32.mrf.mxu1 }
 0x106   : > { %v5044_v26 = vadd.f32 %v686_v25, %v546_v24 }
 0x107   : > { %v4056_v27 = vpop.f32.mrf.mxu0  ;;  %v4085_v28 = vpop.f32.mrf.mxu1 }
 0x109   : > { %v551_v29 = vpop.f32.mrf.mxu0  ;;  %v691_v30 = vpop.f32.mrf.mxu1 }
 0x10a   : > { %v5046_v31 = vadd.f32 %v691_v30, %v551_v29 }
 0x10b   : > { %v4059_v32 = vpop.f32.mrf.mxu0  ;;  %v4088_v33 = vpop.f32.mrf.mxu1 }
 0x10d   : > { %v556_v34 = vpop.f32.mrf.mxu0  ;;  %v696_v35 = vpop.f32.mrf.mxu1 }
 0x10e   : > { %v5048_v36 = vadd.f32 %v696_v35, %v556_v34 }
 0x10f   : > { %v4062_v37 = vpop.f32.mrf.mxu0  ;;  %v4091_v38 = vpop.f32.mrf.mxu1 }
 0x111   : > { %v561_v39 = vpop.f32.mrf.mxu0  ;;  %v701_v40 = vpop.f32.mrf.mxu1 }
 0x112   : > { %v5050_v41 = vadd.f32 %v701_v40, %v561_v39 }
 0x113   : > { %v4065_v42 = vpop.f32.mrf.mxu0  ;;  %v4094_v43 = vpop.f32.mrf.mxu1 }
 0x115   : > { %v566_v44 = vpop.f32.mrf.mxu0  ;;  %v706_v45 = vpop.f32.mrf.mxu1 }
 0x116   : > { %v5052_v46 = vadd.f32 %v706_v45, %v566_v44  ;;  %v5077_v44 = vld [vmem:[%s5359_s2] ss:$0 sm:$0xff] }
 0x117   : > { %v4068_v47 = vpop.f32.mrf.mxu0  ;;  %v4097_v48 = vpop.f32.mrf.mxu1 }
 0x119   : > { %v571_v49 = vpop.f32.mrf.mxu0  ;;  %v711_v50 = vpop.f32.mrf.mxu1 }
 0x11a   : > { %v5054_v51 = vadd.f32 %v711_v50, %v571_v49 }
 0x11b   : > { %v4071_v52 = vpop.f32.mrf.mxu0  ;;  %v4100_v53 = vpop.f32.mrf.mxu1 }
 0x11d   : > { %v576_v54 = vpop.f32.mrf.mxu0  ;;  %v716_v55 = vpop.f32.mrf.mxu1 }
 0x11e   : > { %v5056_v56 = vadd.f32 %v716_v55, %v576_v54 }
 0x11f   : > { %v4074_v57 = vpop.f32.mrf.mxu0  ;;  %v4103_v58 = vpop.f32.mrf.mxu1 }
 0x121   : > { %v836_v59 = vpop.f32.mrf.mxu0  ;;  %v1005_v60 = vpop.f32.mrf.mxu1 }
 0x122   : > { %v880_v30 = vadd.f32 %v836_v59, %v5040_v16 }
 0x123   : > { %v4108_v61 = vpop.f32.mrf.mxu0  ;;  %v4137_v62 = vpop.f32.mrf.mxu1 }
 0x124   : > { %v1049_v37 = vadd.f32 %v1005_v60, %v880_v30 }
 0x125   : > { %v841_v63 = vpop.f32.mrf.mxu0  ;;  %v1010_v1 = vpop.f32.mrf.mxu1 }
 0x126   : > { %v881_v38 = vadd.f32 %v841_v63, %v5042_v21 }
 0x127   : > { %v4111_v2 = vpop.f32.mrf.mxu0  ;;  %v4140_v3 = vpop.f32.mrf.mxu1 }
 0x128   : > { %v1050_v16 = vadd.f32 %v1010_v1, %v881_v38 }
 0x129   : > { %v846_v4 = vpop.f32.mrf.mxu0  ;;  %v1015_v5 = vpop.f32.mrf.mxu1 }
 0x12a   : > { %v882_v47 = vadd.f32 %v846_v4, %v5044_v26 }
 0x12b   : > { %v4114_v6 = vpop.f32.mrf.mxu0  ;;  %v4143_v7 = vpop.f32.mrf.mxu1 }
 0x12c   : > { %v1051_v55 = vadd.f32 %v1015_v5, %v882_v47 }
 0x12d   : > { %v851_v8 = vpop.f32.mrf.mxu0  ;;  %v1020_v9 = vpop.f32.mrf.mxu1 }
 0x12e   : > { %v883_v57 = vadd.f32 %v851_v8, %v5046_v31 }
 0x12f   : > { %v4117_v10 = vpop.f32.mrf.mxu0  ;;  %v4146_v11 = vpop.f32.mrf.mxu1 }
 0x130   : > { %v1052_v2 = vadd.f32 %v1020_v9, %v883_v57 }
 0x131   : > { %v856_v12 = vpop.f32.mrf.mxu0  ;;  %v1025_v13 = vpop.f32.mrf.mxu1 }
 0x132   : > { %v884_v3 = vadd.f32 %v856_v12, %v5048_v36 }
 0x133   : > { %v4120_v14 = vpop.f32.mrf.mxu0  ;;  %v4149_v15 = vpop.f32.mrf.mxu1 }
 0x134   : > { %v1053_v14 = vadd.f32 %v1025_v13, %v884_v3 }
 0x135   : > { %v861_v17 = vpop.f32.mrf.mxu0  ;;  %v5058_v18 = vpop.f32.mrf.mxu1 }
 0x136   : > { %v885_v15 = vadd.f32 %v861_v17, %v5050_v41 }
 0x137   : > { %v4123_v19 = vpop.f32.mrf.mxu0  ;;  %v4152_v20 = vpop.f32.mrf.mxu1 }
 0x138   : > { %v1054_v30 = vadd.f32 %v5058_v18, %v885_v15  ;;  %v3663_v15 = vld [vmem:[%s5360_s3 + $0x90] sm:$0xff] }
 0x139   : > { %v5060_v22 = vpop.f32.mrf.mxu0  ;;  %v5062_v23 = vpop.f32.mrf.mxu1 }
 0x13b   : > { %v4126_v24 = vpop.f32.mrf.mxu0  ;;  %v4155_v25 = vpop.f32.mrf.mxu1 }
 0x13d   : > { %v5064_v27 = vpop.f32.mrf.mxu0  ;;  %v5066_v28 = vpop.f32.mrf.mxu1 }
 0x13f   : > { %v4129_v29 = vpop.f32.mrf.mxu0  ;;  %v4158_v32 = vpop.f32.mrf.mxu1 }
 0x140   : > { %v886_v32 = vadd.f32 %v5060_v22, %v5052_v46  ;;  %v3668_v46 = vld [vmem:[%s5360_s3 + $0xb8] sm:$0xff] }
 0x141   : > { %v5069_v33 = vpop.f32.mrf.mxu0  ;;  %v5071_v34 = vpop.f32.mrf.mxu1  ;;  %v3679_v22 = vld [vmem:[%s5360_s3 + $0xf8] sm:$0xff] }
 0x143   : > { %v4132_v35 = vpop.f32.mrf.mxu0  ;;  %v4161_v39 = vpop.f32.mrf.mxu1 }
 0x145   : > { %v1174_v40 = vpop.f32.mrf.mxu0  ;;  %v1343_v43 = vpop.f32.mrf.mxu1 }
 0x146   : > { %v1218_v42 = vadd.f32 %v1174_v40, %v1049_v37 }
 0x147   : > { %v4166_v45 = vpop.f32.mrf.mxu0  ;;  %v4195_v49 = vpop.f32.mrf.mxu1 }
 0x148   : > { %v1387_v48 = vadd.f32 %v1343_v43, %v1218_v42  ;;  %v1055_v42 = vadd.f32 %v5062_v23, %v886_v32  ;;  %v887_v43 = vadd.f32 %v5064_v27, %v5054_v51  ;;  %v3667_v27 = vld [vmem:[%s5360_s3 + $0xb0] sm:$0xff] }
 0x149   : > { %v1179_v50 = vpop.f32.mrf.mxu0  ;;  %v1348_v21 = vpop.f32.mrf.mxu1 }
 0x14a   : > { %v1403_v52 = vadd.f32 %v5077_v44, %v1387_v48  ;;  %v1219_v53 = vadd.f32 %v1179_v50, %v1050_v16 }
 0x14b   : > { %v4169_v54 = vpop.f32.mrf.mxu0  ;;  %v4198_v60 = vpop.f32.mrf.mxu1 }
 0x14c   : > { %v1412_v58 = vmax.f32 %v1403_v52, 0.0  ;;  %v1388_v59 = vadd.f32 %v1348_v21, %v1219_v53  ;;  %v3678_v52 = vld [vmem:[%s5360_s3 + $0xf0] sm:$0xff]  ;;  %v1056_v21 = vadd.f32 %v5066_v28, %v887_v43  ;;  %v888_v54 = vadd.f32 %v5069_v33, %v5056_v56  ;;  %v3666_v60 = vld [vmem:[%s5360_s3 + $0xa8] sm:$0xff] }
 0x14d   : > { %v1184_v61 = vpop.f32.mrf.mxu0  ;;  %v1353_v63 = vpop.f32.mrf.mxu1  ;;  %v3677_v28 = vld [vmem:[%s5360_s3 + $0xe8] sm:$0xff] }
 0x14e   : > { %1425 = vst.msk [vmem:[#allocation2 + $0x1] sm:$0xff] %vm1424_vm4, %v1412_v58  ;;  %v1404_v26 = vadd.f32 %v5077_v44, %v1388_v59  ;;  %v1220_v62 = vadd.f32 %v1184_v61, %v1051_v55 }
 0x14f   : > { %v4172_v1 = vpop.f32.mrf.mxu0  ;;  %v4201_v7 = vpop.f32.mrf.mxu1 }
 0x150   : > { %v1413_v4 = vmax.f32 %v1404_v26, 0.0  ;;  %v1389_v6 = vadd.f32 %v1353_v63, %v1220_v62  ;;  %v3665_v62 = vld [vmem:[%s5360_s3 + $0xa0] sm:$0xff]  ;;  %v1057_v1 = vadd.f32 %v5071_v34, %v888_v54  ;;  %v3664_v7 = vld [vmem:[%s5360_s3 + $0x98] sm:$0xff] }
 0x151   : > { %v1189_v5 = vpop.f32.mrf.mxu0  ;;  %v1358_v10 = vpop.f32.mrf.mxu1  ;;  %v3676_v63 = vld [vmem:[%s5360_s3 + $0xe0] sm:$0xff] }
 0x152   : > { %1426 = vst.msk [vmem:[#allocation2 + $0x9] sm:$0xff] %vm1424_vm4, %v1413_v4  ;;  %v1405_v31 = vadd.f32 %v5077_v44, %v1389_v6  ;;  %v1221_v8 = vadd.f32 %v1189_v5, %v1052_v2  ;;  %v3675_v5 = vld [vmem:[%s5360_s3 + $0xd8] sm:$0xff] }
 0x153   : > { %v4175_v11 = vpop.f32.mrf.mxu0  ;;  %v4204_v24 = vpop.f32.mrf.mxu1 }
 0x154   : > { %v1414_v19 = vmax.f32 %v1405_v31, 0.0  ;;  %v1390_v20 = vadd.f32 %v1358_v10, %v1221_v8 }
 0x155   : > { %v1194_v9 = vpop.f32.mrf.mxu0  ;;  %v1363_v25 = vpop.f32.mrf.mxu1 }
 0x156   : > { %1427 = vst.msk [vmem:[#allocation2 + $0x11] sm:$0xff] %vm1424_vm4, %v1414_v19  ;;  %v1406_v36 = vadd.f32 %v5077_v44, %v1390_v20  ;;  %v1222_v12 = vadd.f32 %v1194_v9, %v1053_v14  ;;  %v3674_v19 = vld [vmem:[%s5360_s3 + $0xd0] sm:$0xff] }
 0x157   : > { %v4178_v29 = vpop.f32.mrf.mxu0  ;;  %v4207_v37 = vpop.f32.mrf.mxu1 }
 0x158   : > { %v1415_v35 = vmax.f32 %v1406_v36, 0.0  ;;  %v1391_v13 = vadd.f32 %v1363_v25, %v1222_v12  ;;  %v3662_v12 = vld [vmem:[%s5360_s3 + $0x88] sm:$0xff]  ;;  %v3701_v37 = vld [vmem:[%s5360_s3 + $0x178] sm:$0xff] }
 0x159   : > { %v1199_v41 = vpop.f32.mrf.mxu0  ;;  %v1368_v39 = vpop.f32.mrf.mxu1  ;;  %v3673_v25 = vld [vmem:[%s5360_s3 + $0xc8] sm:$0xff] }
 0x15a   : > { %1428 = vst.msk [vmem:[#allocation2 + $0x19] sm:$0xff] %vm1424_vm4, %v1415_v35  ;;  %v1407_v17 = vadd.f32 %v5077_v44, %v1391_v13  ;;  %v1223_v38 = vadd.f32 %v1199_v41, %v1054_v30  ;;  %v3672_v30 = vld [vmem:[%s5360_s3 + $0xc0] sm:$0xff]  ;;  %v3690_v13 = vld [vmem:[%s5360_s3 + $0x138] sm:$0xff] }
 0x15b   : > { %v4181_v40 = vpop.f32.mrf.mxu0  ;;  %v4210_v16 = vpop.f32.mrf.mxu1 }
 0x15c   : > { %v1416_v18 = vmax.f32 %v1407_v17, 0.0  ;;  %v1392_v45 = vadd.f32 %v1368_v39, %v1223_v38  ;;  %v3689_v38 = vld [vmem:[%s5360_s3 + $0x130] sm:$0xff]  ;;  %v3688_v40 = vld [vmem:[%s5360_s3 + $0x128] sm:$0xff]  ;;  %v3698_v16 = vld [vmem:[%s5360_s3 + $0x160] sm:$0xff] }
 0x15d   : > { %v1204_v47 = vpop.f32.mrf.mxu0  ;;  %v1449_v48 = vld [vmem:[#allocation2 + $0x1] ss:$3 sm:$0xff]  ;;  %v1435_v49 = vld [vmem:[#allocation2] ss:$3 sm:$0xff]  ;;  %v1373_v51 = vpop.f32.mrf.mxu1  ;;  %v1642_v41 = vld [vmem:[#allocation2 + $0x2] ss:$3 sm:$0xff] }
 0x15e   : > { %1429 = vst.msk [vmem:[#allocation2 + $0x21] sm:$0xff] %vm1424_vm4, %v1416_v18  ;;  %v1408_v23 = vadd.f32 %v5077_v44, %v1392_v45  ;;  %v1224_v50 = vadd.f32 %v1204_v47, %v1055_v42  ;;  %4237 = vmatmul.mubr.msk.f32.vlgmr.msra.gmra.mxu0 %vm1424_vm4, %v1449_v48  ;;  %4262 = vmatmul.mubr.msk.f32.vlgmr.msra.gmra.mxu1 %vm1424_vm4, %v1435_v49  ;;  %v1749_v17 = vld [vmem:[#allocation2 + $0x3] ss:$3 sm:$0xff] }
 0x15f   : > { %v4184_v53 = vpop.f32.mrf.mxu0  ;;  %4271 = vmatpush3.msra.mxu0 %v3668_v46  ;;  %4296 = vmatpush3.msra.mxu1 %v3679_v22  ;;  %v4213_v58 = vpop.f32.mrf.mxu1  ;;  %v3700_v39 = vld [vmem:[%s5360_s3 + $0x170] sm:$0xff]  ;;  %v3699_v42 = vld [vmem:[%s5360_s3 + $0x168] sm:$0xff]  ;;  %v3687_v45 = vld [vmem:[%s5360_s3 + $0x120] sm:$0xff] }
 0x160   : > { %v1417_v55 = vmax.f32 %v1408_v23, 0.0  ;;  %v1393_v57 = vadd.f32 %v1373_v51, %v1224_v50  ;;  %4272 = vmatprep.subr.mxu0 %v4565_v0  ;;  %4297 = vmatprep.subr.mxu1 %v4565_v0  ;;  %v3686_v46 = vld [vmem:[%s5360_s3 + $0x118] sm:$0xff]  ;;  %v3685_v49 = vld [vmem:[%s5360_s3 + $0x110] sm:$0xff]  ;;  %v3684_v50 = vld [vmem:[%s5360_s3 + $0x108] sm:$0xff] }
 0x161   : > { %v1209_v59 = vpop.f32.mrf.mxu0  ;;  %4273 = vmatpush3.msra.mxu0 %v3667_v27  ;;  %4298 = vmatpush3.msra.mxu1 %v3678_v52  ;;  %v1378_v61 = vpop.f32.mrf.mxu1  ;;  %v3697_v22 = vld [vmem:[%s5360_s3 + $0x158] sm:$0xff]  ;;  %v3696_v23 = vld [vmem:[%s5360_s3 + $0x150] sm:$0xff]  ;;  %v3695_v51 = vld [vmem:[%s5360_s3 + $0x148] sm:$0xff] }
 0x162   : > { %1430 = vst.msk [vmem:[#allocation2 + $0x29] sm:$0xff] %vm1424_vm4, %v1417_v55  ;;  %v1409_v56 = vadd.f32 %v5077_v44, %v1393_v57  ;;  %v1225_v33 = vadd.f32 %v1209_v59, %v1056_v21  ;;  %4239 = vmatprep.mubr.msk.f32.mxu0 %vm4566_vm0, %v4565_v0  ;;  %4264 = vmatprep.mubr.msk.f32.mxu1 %vm4566_vm0, %v4565_v0  ;;  %v3683_v27 = vld [vmem:[%s5360_s3 + $0x100] sm:$0xff]  ;;  %v2154_v59 = vld [vmem:[#allocation4 + $0x1f8] sm:$0xff] }
 0x163   : > { %v4187_v26 = vpop.f32.mrf.mxu0  ;;  %4274 = vmatprep.subr.mxu0 %v4565_v0  ;;  %4299 = vmatprep.subr.mxu1 %v4565_v0  ;;  %v4216_v4 = vpop.f32.mrf.mxu1  ;;  %v3694_v52 = vld [vmem:[%s5360_s3 + $0x140] sm:$0xff] }
 0x164   : > { %v1418_v2 = vmax.f32 %v1409_v56, 0.0  ;;  %v1394_v3 = vadd.f32 %v1378_v61, %v1225_v33  ;;  %4275 = vmatpush3.msra.mxu0 %v3666_v60  ;;  %4300 = vmatpush3.msra.mxu1 %v3677_v28  ;;  %v1856_v53 = vld [vmem:[#allocation2 + $0x4] ss:$3 sm:$0xff]  ;;  %v1963_v21 = vld [vmem:[#allocation2 + $0x5] ss:$3 sm:$0xff] }
 0x165   : > { %v1214_v6 = vpop.f32.mrf.mxu0  ;;  %4276 = vmatprep.subr.mxu0 %v4565_v0  ;;  %4301 = vmatprep.subr.mxu1 %v4565_v0  ;;  %v1383_v8 = vpop.f32.mrf.mxu1  ;;  %v2119_v60 = vld [vmem:[#allocation4 + $0xf8] sm:$0xff]  ;;  %v2153_v28 = vld [vmem:[#allocation4 + $0x1f0] sm:$0xff]  ;;  %v2152_v33 = vld [vmem:[#allocation4 + $0x1e8] sm:$0xff] }
 0x166   : > { %1431 = vst.msk [vmem:[#allocation2 + $0x31] sm:$0xff] %vm1424_vm4, %v1418_v2  ;;  %v1410_v34 = vadd.f32 %v5077_v44, %v1394_v3  ;;  %v1226_v31 = vadd.f32 %v1214_v6, %v1057_v1  ;;  %4277 = vmatpush3.msra.mxu0 %v3665_v62  ;;  %4302 = vmatpush3.msra.mxu1 %v3676_v63  ;;  %v2118_v56 = vld [vmem:[#allocation4 + $0xf0] sm:$0xff]  ;;  %v2117_v61 = vld [vmem:[#allocation4 + $0xe8] sm:$0xff]  ;;  %v2151_v26 = vld [vmem:[#allocation4 + $0x1e0] sm:$0xff] }
 0x167   : > { %4278 = vmatprep.subr.mxu0 %v4565_v0  ;;  %4303 = vmatprep.subr.mxu1 %v4565_v0  ;;  %v4190_v10 = vpop.f32.mrf.mxu0  ;;  %v4219_v20 = vpop.f32.mrf.mxu1  ;;  %v2116_v62 = vld [vmem:[#allocation4 + $0xe0] sm:$0xff]  ;;  %v2150_v63 = vld [vmem:[#allocation4 + $0x1d8] sm:$0xff]  ;;  %v2149_v2 = vld [vmem:[#allocation4 + $0x1d0] sm:$0xff] }
 0x168   : > { %v1419_v11 = vmax.f32 %v1410_v34, 0.0  ;;  %v1395_v14 = vadd.f32 %v1383_v8, %v1226_v31  ;;  %4279 = vmatpush3.msra.mxu0 %v3664_v7  ;;  %4304 = vmatpush3.msra.mxu1 %v3675_v5  ;;  %v2115_v1 = vld [vmem:[#allocation4 + $0xd8] sm:$0xff]  ;;  %v2114_v3 = vld [vmem:[#allocation4 + $0xd0] sm:$0xff]  ;;  %v2148_v4 = vld [vmem:[#allocation4 + $0x1c8] sm:$0xff] }
 0x169   : > { %v1451_v24 = vld [vmem:[#allocation2 + $0x19] ss:$3 sm:$0xff]  ;;  %v1437_v9 = vld [vmem:[#allocation2 + $0x18] ss:$3 sm:$0xff]  ;;  %4280 = vmatprep.subr.mxu0 %v4565_v0  ;;  %4305 = vmatprep.subr.mxu1 %v4565_v0  ;;  %v1644_v43 = vld [vmem:[#allocation2 + $0x1a] ss:$3 sm:$0xff] }
 0x16a   : > { %1432 = vst.msk [vmem:[#allocation2 + $0x39] sm:$0xff] %vm1424_vm4, %v1419_v11  ;;  %v1411_v36 = vadd.f32 %v5077_v44, %v1395_v14  ;;  %4240 = vmatmul.mubr.msk.f32.gmra.mxu0 %vm1424_vm4, %v1451_v24  ;;  %4265 = vmatmul.mubr.msk.f32.gmra.mxu1 %vm1424_vm4, %v1437_v9  ;;  %v3661_v44 = vld [vmem:[%s5360_s3 + $0x80] sm:$0xff]  ;;  %v2113_v6 = vld [vmem:[#allocation4 + $0xc8] sm:$0xff]  ;;  %v2146_v34 = vld [vmem:[#allocation4 + $0x1b8] sm:$0xff] }
 0x16b   : > { %4281 = vmatpush3.msra.mxu0 %v3663_v15  ;;  %4306 = vmatpush3.msra.mxu1 %v3674_v19  ;;  %v1751_v18 = vld [vmem:[#allocation2 + $0x1b] ss:$3 sm:$0xff] }
 0x16c   : > { %v1420_v29 = vmax.f32 %v1411_v36, 0.0  ;;  %4242 = vmatprep.mubr.msk.f32.mxu0 %vm4566_vm0, %v4565_v0  ;;  %4267 = vmatprep.mubr.msk.f32.mxu1 %vm4566_vm0, %v4565_v0  ;;  %v2147_v7 = vld [vmem:[#allocation4 + $0x1c0] sm:$0xff]  ;;  %v2111_v31 = vld [vmem:[#allocation4 + $0xb8] sm:$0xff]  ;;  %v2145_v8 = vld [vmem:[#allocation4 + $0x1b0] sm:$0xff] }
 0x16d   : > { %4282 = vmatprep.subr.mxu0 %v4565_v0  ;;  %4307 = vmatprep.subr.mxu1 %v4565_v0  ;;  %v1858_v54 = vld [vmem:[#allocation2 + $0x1c] ss:$3 sm:$0xff]  ;;  %v1965_v55 = vld [vmem:[#allocation2 + $0x1d] ss:$3 sm:$0xff] }
 0x16e   : > { %1434 = vst.msk [vmem:[#allocation2 + $0x41] sm:$0x3] %vm1433_vm5, %v1420_v29  ;;  %4283 = vmatpush3.msra.mxu0 %v3662_v12  ;;  %4308 = vmatpush3.msra.mxu1 %v3673_v25  ;;  %v2112_v5 = vld [vmem:[#allocation4 + $0xc0] sm:$0xff]  ;;  %v2110_v10 = vld [vmem:[#allocation4 + $0xb0] sm:$0xff]  ;;  %v2144_v11 = vld [vmem:[#allocation4 + $0x1a8] sm:$0xff] }
 0x16f   : > { %4284 = vmatprep.subr.mxu0 %v4565_v0  ;;  %4309 = vmatprep.subr.mxu1 %v4565_v0  ;;  %v2109_v14 = vld [vmem:[#allocation4 + $0xa8] sm:$0xff]  ;;  %v2143_v15 = vld [vmem:[#allocation4 + $0x1a0] sm:$0xff]  ;;  %v2142_v20 = vld [vmem:[#allocation4 + $0x198] sm:$0xff] }
 0x170   : > { %4285 = vmatpush3.msra.mxu0 %v3661_v44  ;;  %4310 = vmatpush3.msra.mxu1 %v3672_v30  ;;  %v2108_v19 = vld [vmem:[#allocation4 + $0xa0] sm:$0xff]  ;;  %v2107_v24 = vld [vmem:[#allocation4 + $0x98] sm:$0xff]  ;;  %v2141_v9 = vld [vmem:[#allocation4 + $0x190] sm:$0xff] }
 0x171   : > { %v1453_v32 = vld [vmem:[#allocation2 + $0x31] ss:$3 sm:$0x1f]  ;;  %v1439_v35 = vld [vmem:[#allocation2 + $0x30] ss:$3 sm:$0x1f]  ;;  %4320 = vmatprep.subr.mxu0 %v4565_v0  ;;  %4345 = vmatprep.subr.mxu1 %v4565_v0 }
 0x172   : > { %4243 = vmatmul.mubr.msk.f32.gmra.mxu0 %vm1424_vm4, %v1453_v32  ;;  %4268 = vmatmul.mubr.msk.f32.gmra.mxu1 %vm1424_vm4, %v1439_v35  ;;  %v1646_v47 = vld [vmem:[#allocation2 + $0x32] ss:$3 sm:$0x1f]  ;;  %v1753_v48 = vld [vmem:[#allocation2 + $0x33] ss:$3 sm:$0x1f] }
 0x173   : > { %4286 = vmatprep.mubr.msk.f32.mxu0 %vm4566_vm0, %v4565_v0  ;;  %4311 = vmatprep.mubr.msk.f32.mxu1 %vm4566_vm0, %v4565_v0  ;;  %v1860_v57 = vld [vmem:[#allocation2 + $0x34] ss:$3 sm:$0x1f]  ;;  %v2140_v12 = vld [vmem:[#allocation4 + $0x188] sm:$0xff] }
 0x174   : > { %v2106_v36 = vld [vmem:[#allocation4 + $0x90] sm:$0xff]  ;;  %v2105_v25 = vld [vmem:[#allocation4 + $0x88] sm:$0xff]  ;;  %v2139_v29 = vld [vmem:[#allocation4 + $0x180] sm:$0xff] }
 0x175   : > { %v1967_v58 = vld [vmem:[#allocation2 + $0x35] ss:$3 sm:$0x1f] }
 0x176   : > { %4287 = vmatmul.mubr.msk.f32.vlgmr.msra.gmra.mxu0 %vm1424_vm4, %v1642_v41  ;;  %4312 = vmatmul.mubr.msk.f32.vlgmr.msra.gmra.mxu1 %vm1424_vm4, %v1749_v17  ;;  %v2104_v44 = vld [vmem:[#allocation4 + $0x80] sm:$0xff]  ;;  %v2138_v30 = vld [vmem:[#allocation4 + $0x178] sm:$0xff]  ;;  %v2137_v35 = vld [vmem:[#allocation4 + $0x170] sm:$0xff] }
 0x177   : > { %4321 = vmatpush3.msra.mxu0 %v3690_v13  ;;  %4346 = vmatpush3.msra.mxu1 %v3701_v37  ;;  %v2103_v32 = vld [vmem:[#allocation4 + $0x78] sm:$0xff]  ;;  %v2102_v13 = vld [vmem:[#allocation4 + $0x70] sm:$0xff]  ;;  %v2136_v37 = vld [vmem:[#allocation4 + $0x168] sm:$0xff] }
 0x178   : > { %4322 = vmatprep.subr.mxu0 %v4565_v0  ;;  %4347 = vmatprep.subr.mxu1 %v4565_v0  ;;  %v2101_v41 = vld [vmem:[#allocation4 + $0x68] sm:$0xff]  ;;  %v2135_v17 = vld [vmem:[#allocation4 + $0x160] sm:$0xff] }
 0x179   : > { %4323 = vmatpush3.msra.mxu0 %v3689_v38  ;;  %4348 = vmatpush3.msra.mxu1 %v3700_v39  ;;  %v2100_v38 = vld [vmem:[#allocation4 + $0x60] sm:$0xff]  ;;  %v2134_v39 = vld [vmem:[#allocation4 + $0x158] sm:$0xff] }
 0x17a   : > { %4289 = vmatprep.mubr.msk.f32.mxu0 %vm4566_vm0, %v4565_v0  ;;  %4314 = vmatprep.mubr.msk.f32.mxu1 %vm4566_vm0, %v4565_v0 }
 0x17b   : > { %4324 = vmatprep.subr.mxu0 %v4565_v0  ;;  %4349 = vmatprep.subr.mxu1 %v4565_v0 }
 0x17c   : > { %4290 = vmatmul.mubr.msk.f32.gmra.mxu0 %vm1424_vm4, %v1644_v43  ;;  %4315 = vmatmul.mubr.msk.f32.gmra.mxu1 %vm1424_vm4, %v1751_v18  ;;  %v2098_v43 = vld [vmem:[#allocation4 + $0x50] sm:$0xff]  ;;  %v2132_v18 = vld [vmem:[#allocation4 + $0x148] sm:$0xff] }
 0x17d   : > { %4325 = vmatpush3.msra.mxu0 %v3688_v40  ;;  %4350 = vmatpush3.msra.mxu1 %v3699_v42  ;;  %v2099_v40 = vld [vmem:[#allocation4 + $0x58] sm:$0xff]  ;;  %v2133_v42 = vld [vmem:[#allocation4 + $0x150] sm:$0xff] }
 0x17e   : > { %4326 = vmatprep.subr.mxu0 %v4565_v0  ;;  %4351 = vmatprep.subr.mxu1 %v4565_v0 }
 0x17f   : > { %4327 = vmatpush3.msra.mxu0 %v3687_v45  ;;  %4352 = vmatpush3.msra.mxu1 %v3698_v16  ;;  %v2097_v45 = vld [vmem:[#allocation4 + $0x48] sm:$0xff]  ;;  %v2131_v16 = vld [vmem:[#allocation4 + $0x140] sm:$0xff] }
 0x180   : > { %4292 = vmatprep.mubr.msk.f32.mxu0 %vm4566_vm0, %v4565_v0  ;;  %4317 = vmatprep.mubr.msk.f32.mxu1 %vm4566_vm0, %v4565_v0 }
 0x181   : > { %4328 = vmatprep.subr.mxu0 %v4565_v0  ;;  %4353 = vmatprep.subr.mxu1 %v4565_v0 }
 0x182   : > { %4293 = vmatmul.mubr.msk.f32.gmra.mxu0 %vm1424_vm4, %v1646_v47  ;;  %4318 = vmatmul.mubr.msk.f32.gmra.mxu1 %vm1424_vm4, %v1753_v48  ;;  %v2095_v47 = vld [vmem:[#allocation4 + $0x38] sm:$0xff]  ;;  %v2129_v48 = vld [vmem:[#allocation4 + $0x130] sm:$0xff] }
 0x183   : > { %4329 = vmatpush3.msra.mxu0 %v3686_v46  ;;  %4354 = vmatpush3.msra.mxu1 %v3697_v22  ;;  %v2096_v46 = vld [vmem:[#allocation4 + $0x40] sm:$0xff]  ;;  %v2130_v22 = vld [vmem:[#allocation4 + $0x138] sm:$0xff] }
 0x184   : > { %4330 = vmatprep.subr.mxu0 %v4565_v0  ;;  %4355 = vmatprep.subr.mxu1 %v4565_v0 }
 0x185   : > { %4331 = vmatpush3.msra.mxu0 %v3685_v49  ;;  %4356 = vmatpush3.msra.mxu1 %v3696_v23  ;;  %v2094_v49 = vld [vmem:[#allocation4 + $0x30] sm:$0xff]  ;;  %v2128_v23 = vld [vmem:[#allocation4 + $0x128] sm:$0xff] }
 0x186   : > { %4332 = vmatprep.subr.mxu0 %v4565_v0  ;;  %4357 = vmatprep.subr.mxu1 %v4565_v0 }
 0x187   : > { %4333 = vmatpush3.msra.mxu0 %v3684_v50  ;;  %4358 = vmatpush3.msra.mxu1 %v3695_v51  ;;  %v2093_v50 = vld [vmem:[#allocation4 + $0x28] sm:$0xff]  ;;  %v2127_v51 = vld [vmem:[#allocation4 + $0x120] sm:$0xff] }
 0x188   : > { %4334 = vmatprep.subr.mxu0 %v4565_v0  ;;  %4359 = vmatprep.subr.mxu1 %v4565_v0 }
 0x189   : > { %4335 = vmatpush3.msra.mxu0 %v3683_v27  ;;  %4336 = vmatprep.mubr.msk.f32.mxu0 %vm4566_vm0, %v4565_v0  ;;  %v2092_v27 = vld [vmem:[#allocation4 + $0x20] sm:$0xff] }
 0x18a   : > { %4360 = vmatpush3.msra.mxu1 %v3694_v52  ;;  %4361 = vmatprep.mubr.msk.f32.mxu1 %vm4566_vm0, %v4565_v0  ;;  %v2126_v52 = vld [vmem:[#allocation4 + $0x118] sm:$0xff] }
 0x18b   : > { %4337 = vmatmul.mubr.msk.f32.vlgmr.msra.gmra.mxu0 %vm1424_vm4, %v1856_v53  ;;  %4362 = vmatmul.mubr.msk.f32.vlgmr.msra.gmra.mxu1 %vm1424_vm4, %v1963_v21  ;;  %v2091_v53 = vld [vmem:[#allocation4 + $0x18] sm:$0xff]  ;;  %v2125_v21 = vld [vmem:[#allocation4 + $0x110] sm:$0xff] }
 0x18c   : > { %4339 = vmatprep.mubr.msk.f32.mxu0 %vm4566_vm0, %v4565_v0  ;;  %4364 = vmatprep.mubr.msk.f32.mxu1 %vm4566_vm0, %v4565_v0 }
 0x18d   : > { %2155 = vmatprep.subr.mxu0 %v2154_v59  ;;  %2226 = vmatprep.subr.mxu1 %v2119_v60  ;;  %v2088_v59 = vld [vmem:[#allocation4] sm:$0xff]  ;;  %v2331_v60 = vld [vmem:[#allocation4 + $0x2f8] sm:$0xff] }
 0x18e   : > { %2156 = vmatpush1.msra.mxu0 %v2153_v28  ;;  %2227 = vmatpush1.msra.mxu1 %v2118_v56  ;;  %v2439_v28 = vld [vmem:[#allocation4 + $0x3f8] sm:$0xff] }
 0x18f   : > { %4340 = vmatmul.mubr.msk.f32.gmra.mxu0 %vm1424_vm4, %v1858_v54  ;;  %4365 = vmatmul.mubr.msk.f32.gmra.mxu1 %vm1424_vm4, %v1965_v55  ;;  %v2090_v54 = vld [vmem:[#allocation4 + $0x10] sm:$0xff]  ;;  %v2124_v55 = vld [vmem:[#allocation4 + $0x108] sm:$0xff] }
 0x190   : > { %4342 = vmatprep.mubr.msk.f32.mxu0 %vm4566_vm0, %v4565_v0  ;;  %4367 = vmatprep.mubr.msk.f32.mxu1 %vm4566_vm0, %v4565_v0 }
 0x191   : > { %2157 = vmatprep.subr.mxu0 %v2152_v33  ;;  %2228 = vmatprep.subr.mxu1 %v2117_v61 }
 0x192   : > { %2158 = vmatpush1.msra.mxu0 %v2151_v26  ;;  %2229 = vmatpush1.msra.mxu1 %v2116_v62 }
 0x193   : > { %4343 = vmatmul.mubr.msk.f32.gmra.mxu0 %vm1424_vm4, %v1860_v57  ;;  %4368 = vmatmul.mubr.msk.f32.gmra.mxu1 %vm1424_vm4, %v1967_v58  ;;  %v2089_v57 = vld [vmem:[#allocation4 + $0x8] sm:$0xff]  ;;  %v2123_v58 = vld [vmem:[#allocation4 + $0x100] sm:$0xff] }
 0x194   : > { %2219 = vmatprep.mubr.f32.mxu0 %v4565_v0  ;;  %2290 = vmatprep.mubr.f32.mxu1 %v4565_v0 }
 0x195   : > { %2159 = vmatprep.subr.mxu0 %v2150_v63  ;;  %2230 = vmatprep.subr.mxu1 %v2115_v1 }
 0x196   : > { %2160 = vmatpush1.msra.mxu0 %v2149_v2  ;;  %2231 = vmatpush1.msra.mxu1 %v2114_v3 }
 0x197   : > { %2161 = vmatprep.subr.mxu0 %v2148_v4  ;;  %2232 = vmatprep.subr.mxu1 %v2113_v6 }
 0x198   : > { %2162 = vmatpush1.msra.mxu0 %v2147_v7  ;;  %2233 = vmatpush1.msra.mxu1 %v2112_v5 }
 0x199   : > { %2163 = vmatprep.subr.mxu0 %v2146_v34  ;;  %2234 = vmatprep.subr.mxu1 %v2111_v31 }
 0x19a   : > { %2164 = vmatpush1.msra.mxu0 %v2145_v8  ;;  %2235 = vmatpush1.msra.mxu1 %v2110_v10 }
 0x19b   : > { %2165 = vmatprep.subr.mxu0 %v2144_v11  ;;  %2236 = vmatprep.subr.mxu1 %v2109_v14 }
 0x19c   : > { %2166 = vmatpush1.msra.mxu0 %v2143_v15  ;;  %2237 = vmatpush1.msra.mxu1 %v2108_v19 }
 0x19d   : > { %2167 = vmatprep.subr.mxu0 %v2142_v20  ;;  %2238 = vmatprep.subr.mxu1 %v2107_v24 }
 0x19e   : > { %2168 = vmatpush1.msra.mxu0 %v2141_v9  ;;  %2239 = vmatpush1.msra.mxu1 %v2106_v36 }
 0x19f   : > { %2169 = vmatprep.subr.mxu0 %v2140_v12  ;;  %2240 = vmatprep.subr.mxu1 %v2105_v25 }
 0x1a0   : > { %2170 = vmatpush1.msra.mxu0 %v2139_v29  ;;  %2241 = vmatpush1.msra.mxu1 %v2104_v44 }
 0x1a1   : > { %2171 = vmatprep.subr.mxu0 %v2138_v30  ;;  %2242 = vmatprep.subr.mxu1 %v2103_v32 }
 0x1a2   : > { %2172 = vmatpush1.msra.mxu0 %v2137_v35  ;;  %2243 = vmatpush1.msra.mxu1 %v2102_v13 }
 0x1a3   : > { %2173 = vmatprep.subr.mxu0 %v2136_v37  ;;  %2244 = vmatprep.subr.mxu1 %v2101_v41  ;;  %v3705_v37 = vld [vmem:[%s5361_s4] ss:$0 sm:$0xff] }
 0x1a4   : > { %2174 = vmatpush1.msra.mxu0 %v2135_v17  ;;  %2245 = vmatpush1.msra.mxu1 %v2100_v38 }
 0x1a5   : > { %2175 = vmatprep.subr.mxu0 %v2134_v39  ;;  %2246 = vmatprep.subr.mxu1 %v2099_v40 }
 0x1a6   : > { %2176 = vmatpush1.msra.mxu0 %v2133_v42  ;;  %2247 = vmatpush1.msra.mxu1 %v2098_v43 }
 0x1a7   : > { %2177 = vmatprep.subr.mxu0 %v2132_v18  ;;  %2248 = vmatprep.subr.mxu1 %v2097_v45 }
 0x1a8   : > { %2178 = vmatpush1.msra.mxu0 %v2131_v16  ;;  %2249 = vmatpush1.msra.mxu1 %v2096_v46 }
 0x1a9   : > { %2179 = vmatprep.subr.mxu0 %v2130_v22  ;;  %2250 = vmatprep.subr.mxu1 %v2095_v47 }
 0x1aa   : > { %2180 = vmatpush1.msra.mxu0 %v2129_v48  ;;  %2251 = vmatpush1.msra.mxu1 %v2094_v49 }
 0x1ab   : > { %2181 = vmatprep.subr.mxu0 %v2128_v23  ;;  %2252 = vmatprep.subr.mxu1 %v2093_v50 }
 0x1ac   : > { %2182 = vmatpush1.msra.mxu0 %v2127_v51  ;;  %2253 = vmatpush1.msra.mxu1 %v2092_v27 }
 0x1ad   : > { %2183 = vmatprep.subr.mxu0 %v2126_v52  ;;  %2254 = vmatprep.subr.mxu1 %v2091_v53 }
 0x1ae   : > { %2184 = vmatpush1.msra.mxu0 %v2125_v21  ;;  %2255 = vmatpush1.msra.mxu1 %v2090_v54 }
 0x1af   : > { %2185 = vmatprep.subr.mxu0 %v2124_v55  ;;  %2256 = vmatprep.subr.mxu1 %v2089_v57  ;;  %v2330_v57 = vld [vmem:[#allocation4 + $0x2f0] sm:$0xff] }
 0x1b0   : > { %2186 = vmatpush1.msra.mxu0 %v2123_v58  ;;  %2257 = vmatpush1.msra.mxu1 %v2088_v59  ;;  %v2438_v58 = vld [vmem:[#allocation4 + $0x3f0] sm:$0xff]  ;;  %v2329_v59 = vld [vmem:[#allocation4 + $0x2e8] sm:$0xff] }
 0x1b1   : > { %2332 = vmatprep.subr.mxu0 %v2331_v60  ;;  %2440 = vmatprep.subr.mxu1 %v2439_v28  ;;  %v2437_v60 = vld [vmem:[#allocation4 + $0x3e8] sm:$0xff] }
 0x21e   : > { %v1538_v56 = vpop.f32.mrf.mxu0  ;;  %v1627_v33 = vpop.f32.mrf.mxu1 }
 0x21f   : > { %v1628_v24 = vadd.f32 %v1627_v33, %v1538_v56  ;;  %v2328_v33 = vld [vmem:[#allocation4 + $0x2e0] sm:$0xff] }
 0x220   : > { %v4238_v61 = vpop.f32.mrf.mxu0  ;;  %v4263_v26 = vpop.f32.mrf.mxu1 }
 0x221   : > { %v2436_v61 = vld [vmem:[#allocation4 + $0x3e0] sm:$0xff]  ;;  %v2327_v26 = vld [vmem:[#allocation4 + $0x2d8] sm:$0xff] }
 0x22a   : > { %v1543_v62 = vpop.f32.mrf.mxu0  ;;  %v1632_v63 = vpop.f32.mrf.mxu1 }
 0x22b   : > { %v1633_v25 = vadd.f32 %v1632_v63, %v1543_v62  ;;  %v2435_v62 = vld [vmem:[#allocation4 + $0x3d8] sm:$0xff]  ;;  %v2326_v63 = vld [vmem:[#allocation4 + $0x2d0] sm:$0xff] }
 0x22c   : > { %v4241_v1 = vpop.f32.mrf.mxu0  ;;  %v4266_v2 = vpop.f32.mrf.mxu1 }
 0x22d   : > { %v2434_v1 = vld [vmem:[#allocation4 + $0x3d0] sm:$0xff]  ;;  %v2325_v2 = vld [vmem:[#allocation4 + $0x2c8] sm:$0xff] }
 0x232   : > { %v1548_v3 = vpop.f32.mrf.mxu0  ;;  %v1637_v4 = vpop.f32.mrf.mxu1 }
 0x233   : > { %v1638_v35 = vadd.f32 %v1637_v4, %v1548_v3  ;;  %v2433_v3 = vld [vmem:[#allocation4 + $0x3c8] sm:$0xff]  ;;  %v2324_v4 = vld [vmem:[#allocation4 + $0x2c0] sm:$0xff] }
 0x234   : > { %v4244_v6 = vpop.f32.mrf.mxu0  ;;  %v4269_v7 = vpop.f32.mrf.mxu1 }
 0x235   : > { %v2432_v6 = vld [vmem:[#allocation4 + $0x3c0] sm:$0xff]  ;;  %v2323_v7 = vld [vmem:[#allocation4 + $0x2b8] sm:$0xff] }
 0x236   : > { %v1731_v5 = vpop.f32.mrf.mxu0  ;;  %v1838_v34 = vpop.f32.mrf.mxu1 }
 0x237   : > { %v1745_v12 = vadd.f32 %v1731_v5, %v1628_v24  ;;  %v2431_v5 = vld [vmem:[#allocation4 + $0x3b8] sm:$0xff]  ;;  %v2426_v24 = vld [vmem:[#allocation4 + $0x390] sm:$0xff] }
 0x238   : > { %v4288_v31 = vpop.f32.mrf.mxu0  ;;  %v4313_v8 = vpop.f32.mrf.mxu1 }
 0x239   : > { %v1852_v29 = vadd.f32 %v1838_v34, %v1745_v12  ;;  %v2322_v34 = vld [vmem:[#allocation4 + $0x2b0] sm:$0xff]  ;;  %v2321_v8 = vld [vmem:[#allocation4 + $0x2a8] sm:$0xff]  ;;  %v2316_v12 = vld [vmem:[#allocation4 + $0x280] sm:$0xff] }
 0x23a   : > { %v2430_v31 = vld [vmem:[#allocation4 + $0x3b0] sm:$0xff] }
 0x23c   : > { %v1736_v10 = vpop.f32.mrf.mxu0  ;;  %v1843_v11 = vpop.f32.mrf.mxu1 }
 0x23d   : > { %v1746_v44 = vadd.f32 %v1736_v10, %v1633_v25  ;;  %v2429_v10 = vld [vmem:[#allocation4 + $0x3a8] sm:$0xff]  ;;  %v2424_v25 = vld [vmem:[#allocation4 + $0x380] sm:$0xff] }
 0x23e   : > { %v4291_v14 = vpop.f32.mrf.mxu0  ;;  %v4316_v15 = vpop.f32.mrf.mxu1 }
 0x23f   : > { %v1853_v38 = vadd.f32 %v1843_v11, %v1746_v44  ;;  %v2320_v11 = vld [vmem:[#allocation4 + $0x2a0] sm:$0xff]  ;;  %v2319_v15 = vld [vmem:[#allocation4 + $0x298] sm:$0xff] }
 0x240   : > { %v2428_v14 = vld [vmem:[#allocation4 + $0x3a0] sm:$0xff]  ;;  %v2423_v44 = vld [vmem:[#allocation4 + $0x378] sm:$0xff] }
 0x242   : > { %v1741_v19 = vpop.f32.mrf.mxu0  ;;  %v1848_v20 = vpop.f32.mrf.mxu1 }
 0x243   : > { %v1747_v39 = vadd.f32 %v1741_v19, %v1638_v35  ;;  %v2427_v19 = vld [vmem:[#allocation4 + $0x398] sm:$0xff]  ;;  %v2313_v35 = vld [vmem:[#allocation4 + $0x268] sm:$0xff] }
 0x244   : > { %v4294_v9 = vpop.f32.mrf.mxu0  ;;  %v4319_v36 = vpop.f32.mrf.mxu1 }
 0x245   : > { %v1854_v22 = vadd.f32 %v1848_v20, %v1747_v39  ;;  %v2318_v20 = vld [vmem:[#allocation4 + $0x290] sm:$0xff]  ;;  %v2317_v9 = vld [vmem:[#allocation4 + $0x288] sm:$0xff] }
 0x246   : > { %v2425_v36 = vld [vmem:[#allocation4 + $0x388] sm:$0xff]  ;;  %v2310_v39 = vld [vmem:[#allocation4 + $0x250] sm:$0xff] }
 0x24b   : > { %v1945_v30 = vpop.f32.mrf.mxu0  ;;  %v2052_v32 = vpop.f32.mrf.mxu1 }
 0x24c   : > { %v1959_v13 = vadd.f32 %v1945_v30, %v1852_v29  ;;  %v2315_v29 = vld [vmem:[#allocation4 + $0x278] sm:$0xff]  ;;  %v2314_v30 = vld [vmem:[#allocation4 + $0x270] sm:$0xff] }
 0x24d   : > { %v4338_v41 = vpop.f32.mrf.mxu0  ;;  %v4363_v17 = vpop.f32.mrf.mxu1 }
 0x24e   : > { %v2066_v40 = vadd.f32 %v2052_v32, %v1959_v13  ;;  %v2422_v32 = vld [vmem:[#allocation4 + $0x370] sm:$0xff]  ;;  %v2421_v13 = vld [vmem:[#allocation4 + $0x368] sm:$0xff]  ;;  %v2420_v41 = vld [vmem:[#allocation4 + $0x360] sm:$0xff] }
 0x24f   : > { %v1950_v42 = vpop.f32.mrf.mxu0  ;;  %v2057_v43 = vpop.f32.mrf.mxu1  ;;  %v2311_v17 = vld [vmem:[#allocation4 + $0x258] sm:$0xff] }
 0x250   : > { %v2076_v18 = vadd.f32 %v3705_v37, %v2066_v40  ;;  %v1960_v45 = vadd.f32 %v1950_v42, %v1853_v38  ;;  %v2419_v38 = vld [vmem:[#allocation4 + $0x358] sm:$0xff]  ;;  %v2418_v40 = vld [vmem:[#allocation4 + $0x350] sm:$0xff]  ;;  %v2309_v42 = vld [vmem:[#allocation4 + $0x248] sm:$0xff] }
 0x251   : > { %v4341_v16 = vpop.f32.mrf.mxu0  ;;  %v4366_v46 = vpop.f32.mrf.mxu1 }
 0x252   : > { %v2079_v47 = vmax.f32 %v2076_v18, 0.0  ;;  %v2067_v48 = vadd.f32 %v2057_v43, %v1960_v45  ;;  %v2417_v43 = vld [vmem:[#allocation4 + $0x348] sm:$0xff]  ;;  %v2308_v18 = vld [vmem:[#allocation4 + $0x240] sm:$0xff]  ;;  %v2307_v16 = vld [vmem:[#allocation4 + $0x238] sm:$0xff] }
 0x253   : > { %v1955_v49 = vpop.f32.mrf.mxu0  ;;  %v2062_v23 = vpop.f32.mrf.mxu1  ;;  %v2416_v45 = vld [vmem:[#allocation4 + $0x340] sm:$0xff]  ;;  %v2415_v46 = vld [vmem:[#allocation4 + $0x338] sm:$0xff] }
 0x254   : > { %2084 = vst [vmem:[#allocation3 + $0x1] sm:$0xff] %v2079_v47  ;;  %v2077_v50 = vadd.f32 %v3705_v37, %v2067_v48  ;;  %v1961_v51 = vadd.f32 %v1955_v49, %v1854_v22  ;;  %v2306_v22 = vld [vmem:[#allocation4 + $0x230] sm:$0xff]  ;;  %v2305_v48 = vld [vmem:[#allocation4 + $0x228] sm:$0xff] }
 0x255   : > { %v4344_v27 = vpop.f32.mrf.mxu0  ;;  %v4369_v52 = vpop.f32.mrf.mxu1  ;;  %v2414_v47 = vld [vmem:[#allocation4 + $0x330] sm:$0xff]  ;;  %v2413_v49 = vld [vmem:[#allocation4 + $0x328] sm:$0xff] }
 0x256   : > { %v2080_v53 = vmax.f32 %v2077_v50, 0.0  ;;  %v2068_v21 = vadd.f32 %v2062_v23, %v1961_v51  ;;  %v2304_v23 = vld [vmem:[#allocation4 + $0x220] sm:$0xff]  ;;  %v2303_v51 = vld [vmem:[#allocation4 + $0x218] sm:$0xff]  ;;  %v2302_v52 = vld [vmem:[#allocation4 + $0x210] sm:$0xff] }
 0x257   : > { %v2412_v50 = vld [vmem:[#allocation4 + $0x320] sm:$0xff]  ;;  %v2411_v27 = vld [vmem:[#allocation4 + $0x318] sm:$0xff] }
 0x258   : > { %2085 = vst [vmem:[#allocation3 + $0x9] sm:$0xff] %v2080_v53  ;;  %v2078_v54 = vadd.f32 %v3705_v37, %v2068_v21  ;;  %v2312_v37 = vld [vmem:[#allocation4 + $0x260] sm:$0xff]  ;;  %v2410_v53 = vld [vmem:[#allocation4 + $0x310] sm:$0xff]  ;;  %v2301_v21 = vld [vmem:[#allocation4 + $0x208] sm:$0xff] }
 0x25a   : > { %v2081_v55 = vmax.f32 %v2078_v54, 0.0  ;;  %v2409_v54 = vld [vmem:[#allocation4 + $0x308] sm:$0xff] }
 0x25c   : > { %2086 = vst [vmem:[#allocation3 + $0x11] sm:$0x1f] %v2081_v55  ;;  %v2300_v55 = vld [vmem:[#allocation4 + $0x200] sm:$0xff] }
 0x25f   : > { %v2121_v28 = vld [vmem:[#allocation3 + $0x1] ss:$3 sm:$0x3f]  ;;  %v2087_v56 = vld [vmem:[#allocation3] ss:$3 sm:$0x3f] }
 0x260   : > { %2220 = vmatmul.mubr.f32.vlgmr.msra.gmra.mxu0 %v2121_v28  ;;  %2291 = vmatmul.mubr.f32.vlgmr.msra.gmra.mxu1 %v2087_v56  ;;  %v2654_v28 = vld [vmem:[#allocation4 + $0x5f0] sm:$0xff] }
 0x261   : > { %2333 = vmatpush1.msra.mxu0 %v2330_v57  ;;  %2441 = vmatpush1.msra.mxu1 %v2438_v58  ;;  %v2408_v57 = vld [vmem:[#allocation4 + $0x300] sm:$0xff]  ;;  %v2547_v58 = vld [vmem:[#allocation4 + $0x4f8] sm:$0xff] }
 0x262   : > { %2334 = vmatprep.subr.mxu0 %v2329_v59  ;;  %2442 = vmatprep.subr.mxu1 %v2437_v60  ;;  %v2655_v59 = vld [vmem:[#allocation4 + $0x5f8] sm:$0xff]  ;;  %v2546_v60 = vld [vmem:[#allocation4 + $0x4f0] sm:$0xff] }
 0x263   : > { %2335 = vmatpush1.msra.mxu0 %v2328_v33  ;;  %2443 = vmatpush1.msra.mxu1 %v2436_v61  ;;  %v2298_v56 = vld [vmem:[#allocation3 + $0x2] ss:$3 sm:$0x3f]  ;;  %v2406_v33 = vld [vmem:[#allocation3 + $0x3] ss:$3 sm:$0x3f] }
 0x264   : > { %2336 = vmatprep.subr.mxu0 %v2327_v26  ;;  %2444 = vmatprep.subr.mxu1 %v2435_v62  ;;  %v2545_v61 = vld [vmem:[#allocation4 + $0x4e8] sm:$0xff]  ;;  %v2544_v62 = vld [vmem:[#allocation4 + $0x4e0] sm:$0xff] }
 0x265   : > { %2337 = vmatpush1.msra.mxu0 %v2326_v63  ;;  %2445 = vmatpush1.msra.mxu1 %v2434_v1  ;;  %v2653_v26 = vld [vmem:[#allocation4 + $0x5e8] sm:$0xff]  ;;  %v2652_v63 = vld [vmem:[#allocation4 + $0x5e0] sm:$0xff]  ;;  %v2543_v1 = vld [vmem:[#allocation4 + $0x4d8] sm:$0xff] }
 0x266   : > { %2338 = vmatprep.subr.mxu0 %v2325_v2  ;;  %2446 = vmatprep.subr.mxu1 %v2433_v3  ;;  %v2651_v2 = vld [vmem:[#allocation4 + $0x5d8] sm:$0xff]  ;;  %v2542_v3 = vld [vmem:[#allocation4 + $0x4d0] sm:$0xff] }
 0x267   : > { %2339 = vmatpush1.msra.mxu0 %v2324_v4  ;;  %2447 = vmatpush1.msra.mxu1 %v2432_v6  ;;  %v2650_v4 = vld [vmem:[#allocation4 + $0x5d0] sm:$0xff]  ;;  %v2541_v6 = vld [vmem:[#allocation4 + $0x4c8] sm:$0xff] }
 0x268   : > { %2340 = vmatprep.subr.mxu0 %v2323_v7  ;;  %2448 = vmatprep.subr.mxu1 %v2431_v5  ;;  %v2649_v7 = vld [vmem:[#allocation4 + $0x5c8] sm:$0xff]  ;;  %v2540_v5 = vld [vmem:[#allocation4 + $0x4c0] sm:$0xff] }
 0x269   : > { %2341 = vmatpush1.msra.mxu0 %v2322_v34  ;;  %2449 = vmatpush1.msra.mxu1 %v2430_v31  ;;  %v2648_v34 = vld [vmem:[#allocation4 + $0x5c0] sm:$0xff]  ;;  %v2539_v31 = vld [vmem:[#allocation4 + $0x4b8] sm:$0xff] }
 0x26a   : > { %2342 = vmatprep.subr.mxu0 %v2321_v8  ;;  %2450 = vmatprep.subr.mxu1 %v2429_v10  ;;  %v2647_v8 = vld [vmem:[#allocation4 + $0x5b8] sm:$0xff]  ;;  %v2538_v10 = vld [vmem:[#allocation4 + $0x4b0] sm:$0xff] }
 0x26b   : > { %2343 = vmatpush1.msra.mxu0 %v2320_v11  ;;  %2451 = vmatpush1.msra.mxu1 %v2428_v14  ;;  %v2646_v11 = vld [vmem:[#allocation4 + $0x5b0] sm:$0xff]  ;;  %v2537_v14 = vld [vmem:[#allocation4 + $0x4a8] sm:$0xff] }
 0x26c   : > { %2344 = vmatprep.subr.mxu0 %v2319_v15  ;;  %2452 = vmatprep.subr.mxu1 %v2427_v19  ;;  %v2645_v15 = vld [vmem:[#allocation4 + $0x5a8] sm:$0xff]  ;;  %v2536_v19 = vld [vmem:[#allocation4 + $0x4a0] sm:$0xff] }
 0x26d   : > { %2345 = vmatpush1.msra.mxu0 %v2318_v20  ;;  %2453 = vmatpush1.msra.mxu1 %v2426_v24  ;;  %v2644_v20 = vld [vmem:[#allocation4 + $0x5a0] sm:$0xff]  ;;  %v2535_v24 = vld [vmem:[#allocation4 + $0x498] sm:$0xff] }
 0x26e   : > { %2346 = vmatprep.subr.mxu0 %v2317_v9  ;;  %2454 = vmatprep.subr.mxu1 %v2425_v36  ;;  %v2643_v9 = vld [vmem:[#allocation4 + $0x598] sm:$0xff]  ;;  %v2534_v36 = vld [vmem:[#allocation4 + $0x490] sm:$0xff] }
 0x26f   : > { %2347 = vmatpush1.msra.mxu0 %v2316_v12  ;;  %2455 = vmatpush1.msra.mxu1 %v2424_v25  ;;  %v2642_v12 = vld [vmem:[#allocation4 + $0x590] sm:$0xff]  ;;  %v2533_v25 = vld [vmem:[#allocation4 + $0x488] sm:$0xff] }
 0x270   : > { %2348 = vmatprep.subr.mxu0 %v2315_v29  ;;  %2456 = vmatprep.subr.mxu1 %v2423_v44  ;;  %v2641_v29 = vld [vmem:[#allocation4 + $0x588] sm:$0xff]  ;;  %v2532_v44 = vld [vmem:[#allocation4 + $0x480] sm:$0xff] }
 0x271   : > { %2349 = vmatpush1.msra.mxu0 %v2314_v30  ;;  %2457 = vmatpush1.msra.mxu1 %v2422_v32  ;;  %v2640_v30 = vld [vmem:[#allocation4 + $0x580] sm:$0xff]  ;;  %v2531_v32 = vld [vmem:[#allocation4 + $0x478] sm:$0xff] }
 0x272   : > { %2350 = vmatprep.subr.mxu0 %v2313_v35  ;;  %2458 = vmatprep.subr.mxu1 %v2421_v13  ;;  %v2639_v35 = vld [vmem:[#allocation4 + $0x578] sm:$0xff]  ;;  %v2530_v13 = vld [vmem:[#allocation4 + $0x470] sm:$0xff] }
 0x273   : > { %2351 = vmatpush1.msra.mxu0 %v2312_v37  ;;  %2459 = vmatpush1.msra.mxu1 %v2420_v41  ;;  %v2638_v37 = vld [vmem:[#allocation4 + $0x570] sm:$0xff]  ;;  %v2529_v41 = vld [vmem:[#allocation4 + $0x468] sm:$0xff] }
 0x274   : > { %2352 = vmatprep.subr.mxu0 %v2311_v17  ;;  %2460 = vmatprep.subr.mxu1 %v2419_v38  ;;  %v2637_v17 = vld [vmem:[#allocation4 + $0x568] sm:$0xff]  ;;  %v2528_v38 = vld [vmem:[#allocation4 + $0x460] sm:$0xff] }
 0x275   : > { %2353 = vmatpush1.msra.mxu0 %v2310_v39  ;;  %2461 = vmatpush1.msra.mxu1 %v2418_v40  ;;  %v2636_v39 = vld [vmem:[#allocation4 + $0x560] sm:$0xff]  ;;  %v2527_v40 = vld [vmem:[#allocation4 + $0x458] sm:$0xff] }
 0x276   : > { %2354 = vmatprep.subr.mxu0 %v2309_v42  ;;  %2462 = vmatprep.subr.mxu1 %v2417_v43  ;;  %v2635_v42 = vld [vmem:[#allocation4 + $0x558] sm:$0xff]  ;;  %v2526_v43 = vld [vmem:[#allocation4 + $0x450] sm:$0xff] }
 0x277   : > { %2355 = vmatpush1.msra.mxu0 %v2308_v18  ;;  %2463 = vmatpush1.msra.mxu1 %v2416_v45  ;;  %v2634_v18 = vld [vmem:[#allocation4 + $0x550] sm:$0xff]  ;;  %v2525_v45 = vld [vmem:[#allocation4 + $0x448] sm:$0xff] }
 0x278   : > { %2356 = vmatprep.subr.mxu0 %v2307_v16  ;;  %2464 = vmatprep.subr.mxu1 %v2415_v46  ;;  %v2633_v16 = vld [vmem:[#allocation4 + $0x548] sm:$0xff]  ;;  %v2524_v46 = vld [vmem:[#allocation4 + $0x440] sm:$0xff] }
 0x279   : > { %2357 = vmatpush1.msra.mxu0 %v2306_v22  ;;  %2465 = vmatpush1.msra.mxu1 %v2414_v47  ;;  %v2632_v22 = vld [vmem:[#allocation4 + $0x540] sm:$0xff]  ;;  %v2523_v47 = vld [vmem:[#allocation4 + $0x438] sm:$0xff] }
 0x27a   : > { %2358 = vmatprep.subr.mxu0 %v2305_v48  ;;  %2466 = vmatprep.subr.mxu1 %v2413_v49  ;;  %v2631_v48 = vld [vmem:[#allocation4 + $0x538] sm:$0xff]  ;;  %v2522_v49 = vld [vmem:[#allocation4 + $0x430] sm:$0xff] }
 0x27b   : > { %2359 = vmatpush1.msra.mxu0 %v2304_v23  ;;  %2467 = vmatpush1.msra.mxu1 %v2412_v50  ;;  %v2630_v23 = vld [vmem:[#allocation4 + $0x530] sm:$0xff]  ;;  %v2521_v50 = vld [vmem:[#allocation4 + $0x428] sm:$0xff] }
 0x27c   : > { %2360 = vmatprep.subr.mxu0 %v2303_v51  ;;  %2468 = vmatprep.subr.mxu1 %v2411_v27  ;;  %v2629_v51 = vld [vmem:[#allocation4 + $0x528] sm:$0xff]  ;;  %v2520_v27 = vld [vmem:[#allocation4 + $0x420] sm:$0xff] }
 0x27d   : > { %2361 = vmatpush1.msra.mxu0 %v2302_v52  ;;  %2469 = vmatpush1.msra.mxu1 %v2410_v53  ;;  %v2628_v52 = vld [vmem:[#allocation4 + $0x520] sm:$0xff]  ;;  %v2519_v53 = vld [vmem:[#allocation4 + $0x418] sm:$0xff] }
 0x27e   : > { %2362 = vmatprep.subr.mxu0 %v2301_v21  ;;  %2470 = vmatprep.subr.mxu1 %v2409_v54  ;;  %v2627_v21 = vld [vmem:[#allocation4 + $0x518] sm:$0xff]  ;;  %v2518_v54 = vld [vmem:[#allocation4 + $0x410] sm:$0xff] }
 0x27f   : > { %2363 = vmatpush1.msra.mxu0 %v2300_v55  ;;  %2396 = vmatprep.mubr.f32.mxu0 %v4565_v0  ;;  %v2626_v55 = vld [vmem:[#allocation4 + $0x510] sm:$0xff] }
 0x280   : > { %2471 = vmatpush1.msra.mxu1 %v2408_v57  ;;  %2504 = vmatprep.mubr.f32.mxu1 %v4565_v0  ;;  %v2517_v57 = vld [vmem:[#allocation4 + $0x408] sm:$0xff] }
 0x281   : > { %2397 = vmatmul.mubr.f32.vlgmr.msra.gmra.mxu0 %v2298_v56  ;;  %2505 = vmatmul.mubr.f32.vlgmr.msra.gmra.mxu1 %v2406_v33  ;;  %v2622_v56 = vld [vmem:[#allocation3 + $0x5] ss:$3 sm:$0x3f] }
 0x282   : > { %2548 = vmatprep.subr.mxu0 %v2547_v58  ;;  %2656 = vmatprep.subr.mxu1 %v2655_v59  ;;  %v2625_v58 = vld [vmem:[#allocation4 + $0x508] sm:$0xff]  ;;  %v2516_v59 = vld [vmem:[#allocation4 + $0x400] sm:$0xff]  ;;  %v2779_v33 = vld [vmem:[#allocation7 + $0xf8] sm:$0xff] }
 0x283   : > { %2549 = vmatpush1.msra.mxu0 %v2546_v60  ;;  %2657 = vmatpush1.msra.mxu1 %v2654_v28  ;;  %v2624_v60 = vld [vmem:[#allocation4 + $0x500] sm:$0xff]  ;;  %v2514_v28 = vld [vmem:[#allocation3 + $0x4] ss:$3 sm:$0x3f] }
 0x284   : > { %2550 = vmatprep.subr.mxu0 %v2545_v61  ;;  %2658 = vmatprep.subr.mxu1 %v2653_v26  ;;  %v2763_v61 = vld [vmem:[#allocation7 + $0x78] sm:$0xff]  ;;  %v2778_v26 = vld [vmem:[#allocation7 + $0xf0] sm:$0xff] }
 0x285   : > { %2551 = vmatpush1.msra.mxu0 %v2544_v62  ;;  %2659 = vmatpush1.msra.mxu1 %v2652_v63  ;;  %v2883_v62 = vld [vmem:[#allocation7 + $0x1f8] sm:$0xff]  ;;  %v2762_v63 = vld [vmem:[#allocation7 + $0x70] sm:$0xff] }
 0x286   : > { %2552 = vmatprep.subr.mxu0 %v2543_v1  ;;  %2660 = vmatprep.subr.mxu1 %v2651_v2  ;;  %v2867_v1 = vld [vmem:[#allocation7 + $0x178] sm:$0xff]  ;;  %v2777_v2 = vld [vmem:[#allocation7 + $0xe8] sm:$0xff] }
 0x287   : > { %2553 = vmatpush1.msra.mxu0 %v2542_v3  ;;  %2661 = vmatpush1.msra.mxu1 %v2650_v4  ;;  %v2882_v3 = vld [vmem:[#allocation7 + $0x1f0] sm:$0xff]  ;;  %v2761_v4 = vld [vmem:[#allocation7 + $0x68] sm:$0xff] }
 0x288   : > { %2554 = vmatprep.subr.mxu0 %v2541_v6  ;;  %2662 = vmatprep.subr.mxu1 %v2649_v7  ;;  %v2866_v6 = vld [vmem:[#allocation7 + $0x170] sm:$0xff]  ;;  %v2776_v7 = vld [vmem:[#allocation7 + $0xe0] sm:$0xff] }
 0x289   : > { %2555 = vmatpush1.msra.mxu0 %v2540_v5  ;;  %2663 = vmatpush1.msra.mxu1 %v2648_v34  ;;  %v2865_v5 = vld [vmem:[#allocation7 + $0x168] sm:$0xff]  ;;  %v2760_v34 = vld [vmem:[#allocation7 + $0x60] sm:$0xff] }
 0x28a   : > { %2556 = vmatprep.subr.mxu0 %v2539_v31  ;;  %2664 = vmatprep.subr.mxu1 %v2647_v8  ;;  %v2880_v31 = vld [vmem:[#allocation7 + $0x1e0] sm:$0xff]  ;;  %v2775_v8 = vld [vmem:[#allocation7 + $0xd8] sm:$0xff] }
 0x28b   : > { %2557 = vmatpush1.msra.mxu0 %v2538_v10  ;;  %2665 = vmatpush1.msra.mxu1 %v2646_v11  ;;  %v2864_v10 = vld [vmem:[#allocation7 + $0x160] sm:$0xff]  ;;  %v2759_v11 = vld [vmem:[#allocation7 + $0x58] sm:$0xff] }
 0x28c   : > { %2558 = vmatprep.subr.mxu0 %v2537_v14  ;;  %2666 = vmatprep.subr.mxu1 %v2645_v15  ;;  %v2879_v14 = vld [vmem:[#allocation7 + $0x1d8] sm:$0xff]  ;;  %v2774_v15 = vld [vmem:[#allocation7 + $0xd0] sm:$0xff] }
 0x28d   : > { %2559 = vmatpush1.msra.mxu0 %v2536_v19  ;;  %2667 = vmatpush1.msra.mxu1 %v2644_v20  ;;  %v2863_v19 = vld [vmem:[#allocation7 + $0x158] sm:$0xff]  ;;  %v2758_v20 = vld [vmem:[#allocation7 + $0x50] sm:$0xff] }
 0x28e   : > { %2560 = vmatprep.subr.mxu0 %v2535_v24  ;;  %2668 = vmatprep.subr.mxu1 %v2643_v9  ;;  %v2878_v24 = vld [vmem:[#allocation7 + $0x1d0] sm:$0xff]  ;;  %v2773_v9 = vld [vmem:[#allocation7 + $0xc8] sm:$0xff] }
 0x28f   : > { %2561 = vmatpush1.msra.mxu0 %v2534_v36  ;;  %2669 = vmatpush1.msra.mxu1 %v2642_v12  ;;  %v2862_v36 = vld [vmem:[#allocation7 + $0x150] sm:$0xff]  ;;  %v2757_v12 = vld [vmem:[#allocation7 + $0x48] sm:$0xff] }
 0x290   : > { %2562 = vmatprep.subr.mxu0 %v2533_v25  ;;  %2670 = vmatprep.subr.mxu1 %v2641_v29  ;;  %v2877_v25 = vld [vmem:[#allocation7 + $0x1c8] sm:$0xff]  ;;  %v2772_v29 = vld [vmem:[#allocation7 + $0xc0] sm:$0xff] }
 0x291   : > { %2563 = vmatpush1.msra.mxu0 %v2532_v44  ;;  %2671 = vmatpush1.msra.mxu1 %v2640_v30  ;;  %v2861_v44 = vld [vmem:[#allocation7 + $0x148] sm:$0xff]  ;;  %v2756_v30 = vld [vmem:[#allocation7 + $0x40] sm:$0xff] }
 0x292   : > { %2564 = vmatprep.subr.mxu0 %v2531_v32  ;;  %2672 = vmatprep.subr.mxu1 %v2639_v35  ;;  %v2876_v32 = vld [vmem:[#allocation7 + $0x1c0] sm:$0xff]  ;;  %v2771_v35 = vld [vmem:[#allocation7 + $0xb8] sm:$0xff] }
 0x293   : > { %2565 = vmatpush1.msra.mxu0 %v2530_v13  ;;  %2673 = vmatpush1.msra.mxu1 %v2638_v37  ;;  %v2860_v13 = vld [vmem:[#allocation7 + $0x140] sm:$0xff]  ;;  %v2755_v37 = vld [vmem:[#allocation7 + $0x38] sm:$0xff] }
 0x294   : > { %2566 = vmatprep.subr.mxu0 %v2529_v41  ;;  %2674 = vmatprep.subr.mxu1 %v2637_v17  ;;  %v2875_v41 = vld [vmem:[#allocation7 + $0x1b8] sm:$0xff]  ;;  %v2770_v17 = vld [vmem:[#allocation7 + $0xb0] sm:$0xff] }
 0x295   : > { %2567 = vmatpush1.msra.mxu0 %v2528_v38  ;;  %2675 = vmatpush1.msra.mxu1 %v2636_v39  ;;  %v2859_v38 = vld [vmem:[#allocation7 + $0x138] sm:$0xff]  ;;  %v2754_v39 = vld [vmem:[#allocation7 + $0x30] sm:$0xff] }
 0x296   : > { %2568 = vmatprep.subr.mxu0 %v2527_v40  ;;  %2676 = vmatprep.subr.mxu1 %v2635_v42  ;;  %v2874_v40 = vld [vmem:[#allocation7 + $0x1b0] sm:$0xff]  ;;  %v2769_v42 = vld [vmem:[#allocation7 + $0xa8] sm:$0xff] }
 0x297   : > { %2569 = vmatpush1.msra.mxu0 %v2526_v43  ;;  %2677 = vmatpush1.msra.mxu1 %v2634_v18  ;;  %v2753_v43 = vld [vmem:[#allocation7 + $0x28] sm:$0xff]  ;;  %v2858_v18 = vld [vmem:[#allocation7 + $0x130] sm:$0xff] }
 0x298   : > { %2570 = vmatprep.subr.mxu0 %v2525_v45  ;;  %2678 = vmatprep.subr.mxu1 %v2633_v16  ;;  %v2768_v45 = vld [vmem:[#allocation7 + $0xa0] sm:$0xff]  ;;  %v2873_v16 = vld [vmem:[#allocation7 + $0x1a8] sm:$0xff] }
 0x299   : > { %2571 = vmatpush1.msra.mxu0 %v2524_v46  ;;  %2679 = vmatpush1.msra.mxu1 %v2632_v22  ;;  %v2752_v46 = vld [vmem:[#allocation7 + $0x20] sm:$0xff]  ;;  %v2857_v22 = vld [vmem:[#allocation7 + $0x128] sm:$0xff] }
 0x29a   : > { %2572 = vmatprep.subr.mxu0 %v2523_v47  ;;  %2680 = vmatprep.subr.mxu1 %v2631_v48  ;;  %v2767_v47 = vld [vmem:[#allocation7 + $0x98] sm:$0xff]  ;;  %v2872_v48 = vld [vmem:[#allocation7 + $0x1a0] sm:$0xff] }
 0x29b   : > { %2573 = vmatpush1.msra.mxu0 %v2522_v49  ;;  %2681 = vmatpush1.msra.mxu1 %v2630_v23  ;;  %v2751_v49 = vld [vmem:[#allocation7 + $0x18] sm:$0xff]  ;;  %v2856_v23 = vld [vmem:[#allocation7 + $0x120] sm:$0xff] }
 0x29c   : > { %2574 = vmatprep.subr.mxu0 %v2521_v50  ;;  %2682 = vmatprep.subr.mxu1 %v2629_v51  ;;  %v2766_v50 = vld [vmem:[#allocation7 + $0x90] sm:$0xff]  ;;  %v2871_v51 = vld [vmem:[#allocation7 + $0x198] sm:$0xff] }
 0x29d   : > { %2575 = vmatpush1.msra.mxu0 %v2520_v27  ;;  %2683 = vmatpush1.msra.mxu1 %v2628_v52  ;;  %v2750_v27 = vld [vmem:[#allocation7 + $0x10] sm:$0xff]  ;;  %v2855_v52 = vld [vmem:[#allocation7 + $0x118] sm:$0xff] }
 0x29e   : > { %2576 = vmatprep.subr.mxu0 %v2519_v53  ;;  %2684 = vmatprep.subr.mxu1 %v2627_v21  ;;  %v2765_v53 = vld [vmem:[#allocation7 + $0x88] sm:$0xff]  ;;  %v2870_v21 = vld [vmem:[#allocation7 + $0x190] sm:$0xff] }
 0x29f   : > { %2577 = vmatpush1.msra.mxu0 %v2518_v54  ;;  %2685 = vmatpush1.msra.mxu1 %v2626_v55  ;;  %v2749_v54 = vld [vmem:[#allocation7 + $0x8] sm:$0xff]  ;;  %v2854_v55 = vld [vmem:[#allocation7 + $0x110] sm:$0xff] }
 0x2a0   : > { %2578 = vmatprep.subr.mxu0 %v2517_v57  ;;  %2686 = vmatprep.subr.mxu1 %v2625_v58  ;;  %v2764_v57 = vld [vmem:[#allocation7 + $0x80] sm:$0xff]  ;;  %v2869_v58 = vld [vmem:[#allocation7 + $0x188] sm:$0xff] }
 0x2a1   : > { %2579 = vmatpush1.msra.mxu0 %v2516_v59  ;;  %2612 = vmatprep.mubr.f32.mxu0 %v4565_v0  ;;  %v2748_v59 = vld [vmem:[#allocation7] sm:$0xff] }
 0x2a2   : > { %2687 = vmatpush1.msra.mxu1 %v2624_v60  ;;  %2720 = vmatprep.mubr.f32.mxu1 %v4565_v0  ;;  %v2881_v0 = vld [vmem:[#allocation7 + $0x1e8] sm:$0xff] }
 0x2a3   : > { %2613 = vmatmul.mubr.f32.vlgmr.msra.gmra.mxu0 %v2514_v28  ;;  %2721 = vmatmul.mubr.f32.vlgmr.msra.gmra.mxu1 %v2622_v56  ;;  %v2853_v60 = vld [vmem:[#allocation7 + $0x108] sm:$0xff]  ;;  %v2868_v28 = vld [vmem:[#allocation7 + $0x180] sm:$0xff]  ;;  %v2993_v56 = vld [vmem:[#allocation7 + $0x2f8] sm:$0xff] }
 0x2a4   : > { %3836 = vmatprep.subr.mxu0 %v2779_v33  ;;  %3871 = vmatprep.subr.mxu1 %v2883_v62  ;;  %v2852_v33 = vld [vmem:[#allocation7 + $0x100] sm:$0xff] }
 0x2a5   : > { %3837 = vmatpush3.msra.mxu0 %v2763_v61  ;;  %3872 = vmatpush3.msra.mxu1 %v2867_v1  ;;  %v3101_v61 = vld [vmem:[#allocation7 + $0x3f8] sm:$0xff]  ;;  %v2731_v1 = vlaneseq }
 0x2a6   : > { %3838 = vmatprep.subr.mxu0 %v2778_v26  ;;  %3873 = vmatprep.subr.mxu1 %v2882_v3 }
 0x2a7   : > { %3839 = vmatpush3.msra.mxu0 %v2762_v63  ;;  %3874 = vmatpush3.msra.mxu1 %v2866_v6  ;;  %v2732_v6 = vshrl.u32 %v2731_v1, 7  ;;  %v2969_v1 = vld [vmem:[#allocation7 + $0x238] sm:$0xff] }
 0x2a8   : > { %3840 = vmatprep.subr.mxu0 %v2777_v2  ;;  %3875 = vmatprep.subr.mxu1 %v2881_v0 }
 0x2a9   : > { %3841 = vmatpush3.msra.mxu0 %v2761_v4  ;;  %3876 = vmatpush3.msra.mxu1 %v2865_v5 }
 0x2aa   : > { %3842 = vmatprep.subr.mxu0 %v2776_v7  ;;  %3877 = vmatprep.subr.mxu1 %v2880_v31 }
 0x2ab   : > { %3843 = vmatpush3.msra.mxu0 %v2760_v34  ;;  %3878 = vmatpush3.msra.mxu1 %v2864_v10 }
 0x2ac   : > { %3844 = vmatprep.subr.mxu0 %v2775_v8  ;;  %3879 = vmatprep.subr.mxu1 %v2879_v14  ;;  %v2733_v8 = vsub.s32 0, %v2732_v6 }
 0x2ad   : > { %3845 = vmatpush3.msra.mxu0 %v2759_v11  ;;  %3880 = vmatpush3.msra.mxu1 %v2863_v19  ;;  %v2729_v11 = vld [vmem:[%s5363_s6] sm:$0x3] }
 0x2ae   : > { %3846 = vmatprep.subr.mxu0 %v2774_v15  ;;  %3881 = vmatprep.subr.mxu1 %v2878_v24  ;;  %v2737_v15 = vsub.s32 1, %v2732_v6  ;;  %v2968_v6 = vld [vmem:[#allocation7 + $0x230] sm:$0xff] }
 0x2af   : > { %3847 = vmatpush3.msra.mxu0 %v2758_v20  ;;  %3882 = vmatpush3.msra.mxu1 %v2862_v36  ;;  %v2734_v36 = vrot.slane %v2729_v11, %v2733_v8  ;;  %v2982_v8 = vld [vmem:[#allocation7 + $0x2a0] sm:$0xff] }
 0x2b0   : > { %3848 = vmatprep.subr.mxu0 %v2773_v9  ;;  %3883 = vmatprep.subr.mxu1 %v2877_v25 }
 0x2b1   : > { %3849 = vmatpush3.msra.mxu0 %v2757_v12  ;;  %3884 = vmatpush3.msra.mxu1 %v2861_v44  ;;  %v2738_v44 = vrot.slane %v2729_v11, %v2737_v15  ;;  %v2966_v11 = vld [vmem:[#allocation7 + $0x220] sm:$0xff]  ;;  %v2981_v15 = vld [vmem:[#allocation7 + $0x298] sm:$0xff] }
 0x2b2   : > { %3850 = vmatprep.subr.mxu0 %v2772_v29  ;;  %3885 = vmatprep.subr.mxu1 %v2876_v32 }
 0x2b3   : > { %3851 = vmatpush3.msra.mxu0 %v2756_v30  ;;  %3886 = vmatpush3.msra.mxu1 %v2860_v13 }
 0x2b4   : > { %3852 = vmatprep.subr.mxu0 %v2771_v35  ;;  %3887 = vmatprep.subr.mxu1 %v2875_v41 }
 0x2b5   : > { %3853 = vmatpush3.msra.mxu0 %v2755_v37  ;;  %3888 = vmatpush3.msra.mxu1 %v2859_v38 }
 0x2b6   : > { %3854 = vmatprep.subr.mxu0 %v2770_v17  ;;  %3889 = vmatprep.subr.mxu1 %v2874_v40  ;;  %v2977_v17 = vld [vmem:[#allocation7 + $0x278] sm:$0xff] }
 0x2b7   : > { %3855 = vmatpush3.msra.mxu0 %v2754_v39  ;;  %3890 = vmatpush3.msra.mxu1 %v2858_v18  ;;  %v2992_v39 = vld [vmem:[#allocation7 + $0x2f0] sm:$0xff]  ;;  %v3085_v18 = vld [vmem:[#allocation7 + $0x378] sm:$0xff] }
 0x2b8   : > { %3856 = vmatprep.subr.mxu0 %v2769_v42  ;;  %3891 = vmatprep.subr.mxu1 %v2873_v16  ;;  %v2976_v42 = vld [vmem:[#allocation7 + $0x270] sm:$0xff] }
 0x2b9   : > { %3857 = vmatpush3.msra.mxu0 %v2753_v43  ;;  %3892 = vmatpush3.msra.mxu1 %v2857_v22  ;;  %v3100_v16 = vld [vmem:[#allocation7 + $0x3f0] sm:$0xff]  ;;  %v2975_v22 = vld [vmem:[#allocation7 + $0x268] sm:$0xff] }
 0x2ba   : > { %3858 = vmatprep.subr.mxu0 %v2768_v45  ;;  %3893 = vmatprep.subr.mxu1 %v2872_v48  ;;  %v2991_v45 = vld [vmem:[#allocation7 + $0x2e8] sm:$0xff]  ;;  %v2990_v48 = vld [vmem:[#allocation7 + $0x2e0] sm:$0xff] }
 0x2bb   : > { %3859 = vmatpush3.msra.mxu0 %v2752_v46  ;;  %3894 = vmatpush3.msra.mxu1 %v2856_v23  ;;  %v2974_v23 = vld [vmem:[#allocation7 + $0x260] sm:$0xff] }
 0x2bc   : > { %3860 = vmatprep.subr.mxu0 %v2767_v47  ;;  %3895 = vmatprep.subr.mxu1 %v2871_v51  ;;  %v3084_v47 = vld [vmem:[#allocation7 + $0x370] sm:$0xff]  ;;  %v2989_v51 = vld [vmem:[#allocation7 + $0x2d8] sm:$0xff] }
 0x2bd   : > { %3861 = vmatpush3.msra.mxu0 %v2751_v49  ;;  %3896 = vmatpush3.msra.mxu1 %v2855_v52  ;;  %v3099_v49 = vld [vmem:[#allocation7 + $0x3e8] sm:$0xff]  ;;  %v2973_v52 = vld [vmem:[#allocation7 + $0x258] sm:$0xff] }
 0x2be   : > { %3862 = vmatprep.subr.mxu0 %v2766_v50  ;;  %3897 = vmatprep.subr.mxu1 %v2870_v21  ;;  %v3083_v50 = vld [vmem:[#allocation7 + $0x368] sm:$0xff]  ;;  %v2988_v21 = vld [vmem:[#allocation7 + $0x2d0] sm:$0xff] }
 0x2bf   : > { %3863 = vmatpush3.msra.mxu0 %v2750_v27  ;;  %3898 = vmatpush3.msra.mxu1 %v2854_v55  ;;  %v3098_v27 = vld [vmem:[#allocation7 + $0x3e0] sm:$0xff]  ;;  %v2972_v55 = vld [vmem:[#allocation7 + $0x250] sm:$0xff] }
 0x2c0   : > { %3864 = vmatprep.subr.mxu0 %v2765_v53  ;;  %3899 = vmatprep.subr.mxu1 %v2869_v58  ;;  %v3082_v53 = vld [vmem:[#allocation7 + $0x360] sm:$0xff]  ;;  %v2987_v58 = vld [vmem:[#allocation7 + $0x2c8] sm:$0xff] }
 0x2c1   : > { %3865 = vmatpush3.msra.mxu0 %v2749_v54  ;;  %3900 = vmatpush3.msra.mxu1 %v2853_v60  ;;  %v3097_v54 = vld [vmem:[#allocation7 + $0x3d8] sm:$0xff]  ;;  %v2971_v60 = vld [vmem:[#allocation7 + $0x248] sm:$0xff] }
 0x2c2   : > { %3866 = vmatprep.subr.mxu0 %v2764_v57  ;;  %3901 = vmatprep.subr.mxu1 %v2868_v28  ;;  %v3081_v57 = vld [vmem:[#allocation7 + $0x358] sm:$0xff]  ;;  %v3080_v28 = vld [vmem:[#allocation7 + $0x350] sm:$0xff] }
 0x2c3   : > { %3867 = vmatpush3.msra.mxu0 %v2748_v59  ;;  %3902 = vmatpush3.msra.mxu1 %v2852_v33  ;;  %v3096_v59 = vld [vmem:[#allocation7 + $0x3d0] sm:$0xff]  ;;  %v3095_v33 = vld [vmem:[#allocation7 + $0x3c8] sm:$0xff] }
 0x2c4   : > { %3906 = vmatprep.subr.mxu0 %v2993_v56  ;;  %3941 = vmatprep.subr.mxu1 %v3101_v61  ;;  %v2986_v56 = vld [vmem:[#allocation7 + $0x2c0] sm:$0xff] }
 0x2c5   : > { %v2970_v61 = vld [vmem:[#allocation7 + $0x240] sm:$0xff] }
 0x320   : > { %v2221_v26 = vpop.f32.mrf.mxu0  ;;  %v2292_v62 = vpop.f32.mrf.mxu1 }
 0x321   : > { %v2293_v4 = vadd.f32 %v2292_v62, %v2221_v26  ;;  %v3079_v26 = vld [vmem:[#allocation7 + $0x348] sm:$0xff]  ;;  %v2985_v62 = vld [vmem:[#allocation7 + $0x2b8] sm:$0xff] }
 0x322   : > { %v2223_v63 = vpop.f32.mrf.mxu0  ;;  %v2294_v3 = vpop.f32.mrf.mxu1 }
 0x323   : > { %v2295_v5 = vadd.f32 %v2294_v3, %v2223_v63  ;;  %v3094_v63 = vld [vmem:[#allocation7 + $0x3c0] sm:$0xff]  ;;  %v2984_v3 = vld [vmem:[#allocation7 + $0x2b0] sm:$0xff] }
 0x341   : > { %v2398_v2 = vpop.f32.mrf.mxu0  ;;  %v2506_v0 = vpop.f32.mrf.mxu1 }
 0x342   : > { %v2403_v34 = vadd.f32 %v2398_v2, %v2293_v4  ;;  %v3078_v2 = vld [vmem:[#allocation7 + $0x340] sm:$0xff]  ;;  %v3093_v4 = vld [vmem:[#allocation7 + $0x3b8] sm:$0xff] }
 0x343   : > { %v2400_v7 = vpop.f32.mrf.mxu0  ;;  %v2508_v10 = vpop.f32.mrf.mxu1 }
 0x344   : > { %v2404_v31 = vadd.f32 %v2400_v7, %v2295_v5  ;;  %v2511_v14 = vadd.f32 %v2506_v0, %v2403_v34  ;;  %v3077_v0 = vld [vmem:[#allocation7 + $0x338] sm:$0xff]  ;;  %v2983_v7 = vld [vmem:[#allocation7 + $0x2a8] sm:$0xff]  ;;  %v3092_v5 = vld [vmem:[#allocation7 + $0x3b0] sm:$0xff] }
 0x345   : > { %v2967_v34 = vld [vmem:[#allocation7 + $0x228] sm:$0xff] }
 0x346   : > { %v2512_v24 = vadd.f32 %v2508_v10, %v2404_v31  ;;  %v3076_v31 = vld [vmem:[#allocation7 + $0x330] sm:$0xff]  ;;  %v3091_v10 = vld [vmem:[#allocation7 + $0x3a8] sm:$0xff] }
 0x363   : > { %v2614_v19 = vpop.f32.mrf.mxu0  ;;  %v2722_v20 = vpop.f32.mrf.mxu1 }
 0x364   : > { %v2619_v9 = vadd.f32 %v2614_v19, %v2511_v14  ;;  %v3075_v14 = vld [vmem:[#allocation7 + $0x328] sm:$0xff]  ;;  %v3090_v19 = vld [vmem:[#allocation7 + $0x3a0] sm:$0xff] }
 0x365   : > { %v2616_v12 = vpop.f32.mrf.mxu0  ;;  %v2724_v30 = vpop.f32.mrf.mxu1 }
 0x366   : > { %v2727_v25 = vadd.f32 %v2722_v20, %v2619_v9  ;;  %v2620_v29 = vadd.f32 %v2616_v12, %v2512_v24  ;;  %v2965_v20 = vld [vmem:[#allocation7 + $0x218] sm:$0xff]  ;;  %v3074_v24 = vld [vmem:[#allocation7 + $0x320] sm:$0xff]  ;;  %v2980_v9 = vld [vmem:[#allocation7 + $0x290] sm:$0xff] }
 0x367   : > { %v2964_v12 = vld [vmem:[#allocation7 + $0x210] sm:$0xff] }
 0x368   : > { %v2741_v32 = vadd.f32 %v2734_v36, %v2727_v25  ;;  %v2728_v35 = vadd.f32 %v2724_v30, %v2620_v29  ;;  %v3089_v36 = vld [vmem:[#allocation7 + $0x398] sm:$0xff]  ;;  %v2979_v29 = vld [vmem:[#allocation7 + $0x288] sm:$0xff] }
 0x369   : > { %v3073_v25 = vld [vmem:[#allocation7 + $0x318] sm:$0xff]  ;;  %v2963_v30 = vld [vmem:[#allocation7 + $0x208] sm:$0xff] }
 0x36a   : > { %v5302_v13 = vmax.f32 %v2741_v32, 0.0  ;;  %v2742_v37 = vadd.f32 %v2738_v44, %v2728_v35  ;;  %v3088_v44 = vld [vmem:[#allocation7 + $0x390] sm:$0xff]  ;;  %v2978_v35 = vld [vmem:[#allocation7 + $0x280] sm:$0xff] }
 0x36b   : > { %v3072_v32 = vld [vmem:[#allocation7 + $0x310] sm:$0xff] }
 0x36c   : > { %2745 = vst [vmem:[%s399_s25] sm:$0x3f] %v5302_v13  ;;  %v5305_v41 = vmax.f32 %v2742_v37, 0.0  ;;  %v2886_v43 = vrot.slane %v5302_v13, 1  ;;  %v3087_v37 = vld [vmem:[#allocation7 + $0x388] sm:$0xff] }
 0x36e   : > { %2746 = vst [vmem:[%s399_s25 + $0x8] sm:$0x3f] %v5305_v41  ;;  %2844 = vmatprep.mubr.f32.mxu0 %v5305_v41  ;;  %v2887_v38 = vrot.slane %v5305_v41, 1  ;;  %v2995_v40 = vrot.slane %v5305_v41, 2  ;;  %v3103_v46 = vrot.slane %v5305_v41, 3  ;;  %s4493_s25 = sshll.u32 %s4567_s22, 4  ;;  %s4494_s25 = int_to_ptr.vmem [resolvable:$false] %s4493_s25 }
 0x36f   : > { %2845 = vmatmul.mubr.f32.vlgmr.msra.gmra.mxu0 %v5302_v13  ;;  %s4495_s17 = scalar_lea.vmem %s4494_s25, 32  ;;  %p4496_p11 = scmp.lt.s32.totalorder %s3416_s20, %s4494_s25 }
 0x370   : > { %3907 = vmatpush3.msra.mxu0 %v2977_v17  ;;  %2954 = vmatprep.mubr.f32.mxu1 %v2887_v38  ;;  %v2962_v17 = vld [vmem:[#allocation7 + $0x200] sm:$0xff]  ;;  %v3071_v38 = vld [vmem:[#allocation7 + $0x308] sm:$0xff]  ;;  %p4497_p0 = scmp.lt.s32.totalorder %s4495_s17, %s4489_s11 }
 0x371   : > { %3908 = vmatprep.subr.mxu0 %v2992_v39  ;;  %3062 = vmatprep.mubr.f32.mxu0 %v2995_v40  ;;  %v3086_v39 = vld [vmem:[#allocation7 + $0x380] sm:$0xff]  ;;  %v2994_v40 = vrot.slane %v5302_v13, 2 }
 0x372   : > { %2955 = vmatmul.mubr.f32.vlgmr.msra.gmra.mxu1 %v2886_v43  ;;  %3909 = vmatpush3.msra.mxu0 %v2976_v42  ;;  %v3209_v42 = vld [vmem:[#allocation7 + $0x4f8] sm:$0xff]  ;;  %v3070_v43 = vld [vmem:[#allocation7 + $0x300] sm:$0xff]  ;;  %p4498_p1 = por %p4497_p0, %p4496_p11 }
 0x373   : > { %3942 = vmatpush3.msra.mxu1 %v3085_v18  ;;  %3910 = vmatprep.subr.mxu0 %v2991_v45  ;;  %v3193_v18 = vld [vmem:[#allocation7 + $0x478] sm:$0xff]  ;;  %v3211_v45 = vrot.slane %v5305_v41, 4 }
 0x374   : > { %3943 = vmatprep.subr.mxu1 %v3100_v16  ;;  %3170 = vmatprep.mubr.f32.mxu1 %v3103_v46  ;;  %v3208_v16 = vld [vmem:[#allocation7 + $0x4f0] sm:$0xff]  ;;  %v3102_v46 = vrot.slane %v5302_v13, 3  ;;  %p4499_p3 = pnand %p4498_p1, %p4492_p8 }
 0x375   : > { %3911 = vmatpush3.msra.mxu0 %v2975_v22  ;;  %3944 = vmatpush3.msra.mxu1 %v3084_v47  ;;  %v3317_v22 = vld [vmem:[#allocation7 + $0x5f8] sm:$0xff]  ;;  %v3192_v47 = vld [vmem:[#allocation7 + $0x470] sm:$0xff] }
 0x376   : > { %3912 = vmatprep.subr.mxu0 %v2990_v48  ;;  %3945 = vmatprep.subr.mxu1 %v3099_v49  ;;  %v3301_v48 = vld [vmem:[#allocation7 + $0x578] sm:$0xff]  ;;  %v3319_v49 = vrot.slane %v5305_v41, 5 }
 0x377   : > { %3913 = vmatpush3.msra.mxu0 %v2974_v23  ;;  %3946 = vmatpush3.msra.mxu1 %v3083_v50  ;;  %v3207_v23 = vld [vmem:[#allocation7 + $0x4e8] sm:$0xff]  ;;  %v3316_v50 = vld [vmem:[#allocation7 + $0x5f0] sm:$0xff]  ;;  %v3189_v41 = vld [vmem:[#allocation7 + $0x458] sm:$0xff] }
 0x378   : > { %3914 = vmatprep.subr.mxu0 %v2989_v51  ;;  %3947 = vmatprep.subr.mxu1 %v3098_v27  ;;  %v3191_v51 = vld [vmem:[#allocation7 + $0x468] sm:$0xff]  ;;  %v3300_v27 = vld [vmem:[#allocation7 + $0x570] sm:$0xff] }
 0x379   : > { %3915 = vmatpush3.msra.mxu0 %v2973_v52  ;;  %3948 = vmatpush3.msra.mxu1 %v3082_v53  ;;  %v3206_v52 = vld [vmem:[#allocation7 + $0x4e0] sm:$0xff]  ;;  %v3315_v53 = vld [vmem:[#allocation7 + $0x5e8] sm:$0xff] }
 0x37a   : > { %3916 = vmatprep.subr.mxu0 %v2988_v21  ;;  %3949 = vmatprep.subr.mxu1 %v3097_v54  ;;  %v3190_v21 = vld [vmem:[#allocation7 + $0x460] sm:$0xff]  ;;  %v3299_v54 = vld [vmem:[#allocation7 + $0x568] sm:$0xff] }
 0x37b   : > { %3917 = vmatpush3.msra.mxu0 %v2972_v55  ;;  %3950 = vmatpush3.msra.mxu1 %v3081_v57  ;;  %v3205_v55 = vld [vmem:[#allocation7 + $0x4d8] sm:$0xff]  ;;  %v3314_v57 = vld [vmem:[#allocation7 + $0x5e0] sm:$0xff] }
 0x37c   : > { %3918 = vmatprep.subr.mxu0 %v2987_v58  ;;  %3951 = vmatprep.subr.mxu1 %v3096_v59  ;;  %v3298_v58 = vld [vmem:[#allocation7 + $0x560] sm:$0xff]  ;;  %v3204_v59 = vld [vmem:[#allocation7 + $0x4d0] sm:$0xff] }
 0x37d   : > { %3919 = vmatpush3.msra.mxu0 %v2971_v60  ;;  %3952 = vmatpush3.msra.mxu1 %v3080_v28  ;;  %v3313_v60 = vld [vmem:[#allocation7 + $0x5d8] sm:$0xff]  ;;  %v3188_v28 = vld [vmem:[#allocation7 + $0x450] sm:$0xff] }
 0x37e   : > { %3920 = vmatprep.subr.mxu0 %v2986_v56  ;;  %3953 = vmatprep.subr.mxu1 %v3095_v33  ;;  %v3297_v56 = vld [vmem:[#allocation7 + $0x558] sm:$0xff]  ;;  %v3203_v33 = vld [vmem:[#allocation7 + $0x4c8] sm:$0xff] }
 0x37f   : > { %3921 = vmatpush3.msra.mxu0 %v2970_v61  ;;  %3954 = vmatpush3.msra.mxu1 %v3079_v26  ;;  %v3312_v61 = vld [vmem:[#allocation7 + $0x5d0] sm:$0xff]  ;;  %v3187_v26 = vld [vmem:[#allocation7 + $0x448] sm:$0xff] }
 0x380   : > { %3922 = vmatprep.subr.mxu0 %v2985_v62  ;;  %3955 = vmatprep.subr.mxu1 %v3094_v63  ;;  %v3296_v62 = vld [vmem:[#allocation7 + $0x550] sm:$0xff]  ;;  %v3202_v63 = vld [vmem:[#allocation7 + $0x4c0] sm:$0xff] }
 0x381   : > { %3923 = vmatpush3.msra.mxu0 %v2969_v1  ;;  %3956 = vmatpush3.msra.mxu1 %v3078_v2  ;;  %v3311_v1 = vld [vmem:[#allocation7 + $0x5c8] sm:$0xff]  ;;  %v3186_v2 = vld [vmem:[#allocation7 + $0x440] sm:$0xff] }
 0x382   : > { %3924 = vmatprep.subr.mxu0 %v2984_v3  ;;  %3957 = vmatprep.subr.mxu1 %v3093_v4  ;;  %v3295_v3 = vld [vmem:[#allocation7 + $0x548] sm:$0xff]  ;;  %v3201_v4 = vld [vmem:[#allocation7 + $0x4b8] sm:$0xff] }
 0x383   : > { %3925 = vmatpush3.msra.mxu0 %v2968_v6  ;;  %3958 = vmatpush3.msra.mxu1 %v3077_v0  ;;  %v3310_v6 = vld [vmem:[#allocation7 + $0x5c0] sm:$0xff]  ;;  %v3185_v0 = vld [vmem:[#allocation7 + $0x438] sm:$0xff] }
 0x384   : > { %3926 = vmatprep.subr.mxu0 %v2983_v7  ;;  %3959 = vmatprep.subr.mxu1 %v3092_v5  ;;  %v3294_v7 = vld [vmem:[#allocation7 + $0x540] sm:$0xff]  ;;  %v3200_v5 = vld [vmem:[#allocation7 + $0x4b0] sm:$0xff] }
 0x385   : > { %3927 = vmatpush3.msra.mxu0 %v2967_v34  ;;  %3960 = vmatpush3.msra.mxu1 %v3076_v31  ;;  %v3309_v34 = vld [vmem:[#allocation7 + $0x5b8] sm:$0xff]  ;;  %v3184_v31 = vld [vmem:[#allocation7 + $0x430] sm:$0xff] }
 0x386   : > { %3928 = vmatprep.subr.mxu0 %v2982_v8  ;;  %3961 = vmatprep.subr.mxu1 %v3091_v10  ;;  %v3293_v8 = vld [vmem:[#allocation7 + $0x538] sm:$0xff]  ;;  %v3199_v10 = vld [vmem:[#allocation7 + $0x4a8] sm:$0xff] }
 0x387   : > { %3929 = vmatpush3.msra.mxu0 %v2966_v11  ;;  %3962 = vmatpush3.msra.mxu1 %v3075_v14  ;;  %v3308_v11 = vld [vmem:[#allocation7 + $0x5b0] sm:$0xff]  ;;  %v3183_v14 = vld [vmem:[#allocation7 + $0x428] sm:$0xff] }
 0x388   : > { %3930 = vmatprep.subr.mxu0 %v2981_v15  ;;  %3963 = vmatprep.subr.mxu1 %v3090_v19  ;;  %v3292_v15 = vld [vmem:[#allocation7 + $0x530] sm:$0xff]  ;;  %v3198_v19 = vld [vmem:[#allocation7 + $0x4a0] sm:$0xff] }
 0x389   : > { %3931 = vmatpush3.msra.mxu0 %v2965_v20  ;;  %3964 = vmatpush3.msra.mxu1 %v3074_v24  ;;  %v3307_v20 = vld [vmem:[#allocation7 + $0x5a8] sm:$0xff]  ;;  %v3182_v24 = vld [vmem:[#allocation7 + $0x420] sm:$0xff] }
 0x38a   : > { %3932 = vmatprep.subr.mxu0 %v2980_v9  ;;  %3965 = vmatprep.subr.mxu1 %v3089_v36  ;;  %v3291_v9 = vld [vmem:[#allocation7 + $0x528] sm:$0xff]  ;;  %v3197_v36 = vld [vmem:[#allocation7 + $0x498] sm:$0xff] }
 0x38b   : > { %3933 = vmatpush3.msra.mxu0 %v2964_v12  ;;  %3966 = vmatpush3.msra.mxu1 %v3073_v25  ;;  %v3306_v12 = vld [vmem:[#allocation7 + $0x5a0] sm:$0xff]  ;;  %v3181_v25 = vld [vmem:[#allocation7 + $0x418] sm:$0xff] }
 0x38c   : > { %3934 = vmatprep.subr.mxu0 %v2979_v29  ;;  %3967 = vmatprep.subr.mxu1 %v3088_v44  ;;  %v3290_v29 = vld [vmem:[#allocation7 + $0x520] sm:$0xff]  ;;  %v3196_v44 = vld [vmem:[#allocation7 + $0x490] sm:$0xff] }
 0x38d   : > { %3935 = vmatpush3.msra.mxu0 %v2963_v30  ;;  %3968 = vmatpush3.msra.mxu1 %v3072_v32  ;;  %v3305_v30 = vld [vmem:[#allocation7 + $0x598] sm:$0xff]  ;;  %v3180_v32 = vld [vmem:[#allocation7 + $0x410] sm:$0xff] }
 0x38e   : > { %3936 = vmatprep.subr.mxu0 %v2978_v35  ;;  %3969 = vmatprep.subr.mxu1 %v3087_v37  ;;  %v3289_v35 = vld [vmem:[#allocation7 + $0x518] sm:$0xff]  ;;  %v3195_v37 = vld [vmem:[#allocation7 + $0x488] sm:$0xff] }
 0x38f   : > { %3937 = vmatpush3.msra.mxu0 %v2962_v17  ;;  %3970 = vmatpush3.msra.mxu1 %v3071_v38  ;;  %v3304_v17 = vld [vmem:[#allocation7 + $0x590] sm:$0xff]  ;;  %v3179_v38 = vld [vmem:[#allocation7 + $0x408] sm:$0xff] }
 0x390   : > { %3063 = vmatmul.mubr.f32.vlgmr.msra.gmra.mxu0 %v2994_v40  ;;  %3971 = vmatprep.subr.mxu1 %v3086_v39  ;;  %v3288_v39 = vld [vmem:[#allocation7 + $0x510] sm:$0xff]  ;;  %v3194_v40 = vld [vmem:[#allocation7 + $0x480] sm:$0xff] }
 0x391   : > { %3976 = vmatprep.subr.mxu0 %v3209_v42  ;;  %3972 = vmatpush3.msra.mxu1 %v3070_v43  ;;  %v3303_v42 = vld [vmem:[#allocation7 + $0x588] sm:$0xff]  ;;  %v3178_v43 = vld [vmem:[#allocation7 + $0x400] sm:$0xff] }
 0x392   : > { %3977 = vmatpush3.msra.mxu0 %v3193_v18  ;;  %3278 = vmatprep.mubr.f32.mxu0 %v3211_v45  ;;  %v3287_v18 = vld [vmem:[#allocation7 + $0x508] sm:$0xff]  ;;  %v3302_v45 = vld [vmem:[#allocation7 + $0x580] sm:$0xff] }
 0x393   : > { %3171 = vmatmul.mubr.f32.vlgmr.msra.gmra.mxu1 %v3102_v46  ;;  %3978 = vmatprep.subr.mxu0 %v3208_v16  ;;  %v3210_v16 = vrot.slane %v5302_v13, 4  ;;  %v3286_v46 = vld [vmem:[#allocation7 + $0x500] sm:$0xff] }
 0x394   : > { %4011 = vmatprep.subr.mxu1 %v3317_v22  ;;  %3979 = vmatpush3.msra.mxu0 %v3192_v47  ;;  %v3318_v22 = vrot.slane %v5302_v13, 5 }
 0x395   : > { %4012 = vmatpush3.msra.mxu1 %v3301_v48  ;;  %3386 = vmatprep.mubr.f32.mxu1 %v3319_v49 }
 0x396   : > { %3980 = vmatprep.subr.mxu0 %v3207_v23  ;;  %4013 = vmatprep.subr.mxu1 %v3316_v50 }
 0x397   : > { %3981 = vmatpush3.msra.mxu0 %v3191_v51  ;;  %4014 = vmatpush3.msra.mxu1 %v3300_v27  ;;  %v2747_v51 = vld [vmem:[%s5365_s8] sm:$0x1] }
 0x398   : > { %3982 = vmatprep.subr.mxu0 %v3206_v52  ;;  %4015 = vmatprep.subr.mxu1 %v3315_v53 }
 0x399   : > { %3983 = vmatpush3.msra.mxu0 %v3190_v21  ;;  %4016 = vmatpush3.msra.mxu1 %v3299_v54 }
 0x39a   : > { %3984 = vmatprep.subr.mxu0 %v3205_v55  ;;  %4017 = vmatprep.subr.mxu1 %v3314_v57 }
 0x39b   : > { %3985 = vmatpush3.msra.mxu0 %v3189_v41  ;;  %4018 = vmatpush3.msra.mxu1 %v3298_v58 }
 0x39c   : > { %3986 = vmatprep.subr.mxu0 %v3204_v59  ;;  %4019 = vmatprep.subr.mxu1 %v3313_v60 }
 0x39d   : > { %3987 = vmatpush3.msra.mxu0 %v3188_v28  ;;  %4020 = vmatpush3.msra.mxu1 %v3297_v56 }
 0x39e   : > { %3988 = vmatprep.subr.mxu0 %v3203_v33  ;;  %4021 = vmatprep.subr.mxu1 %v3312_v61 }
 0x39f   : > { %3989 = vmatpush3.msra.mxu0 %v3187_v26  ;;  %4022 = vmatpush3.msra.mxu1 %v3296_v62 }
 0x3a0   : > { %3990 = vmatprep.subr.mxu0 %v3202_v63  ;;  %4023 = vmatprep.subr.mxu1 %v3311_v1 }
 0x3a1   : > { %3991 = vmatpush3.msra.mxu0 %v3186_v2  ;;  %4024 = vmatpush3.msra.mxu1 %v3295_v3 }
 0x3a2   : > { %3992 = vmatprep.subr.mxu0 %v3201_v4  ;;  %4025 = vmatprep.subr.mxu1 %v3310_v6 }
 0x3a3   : > { %3993 = vmatpush3.msra.mxu0 %v3185_v0  ;;  %4026 = vmatpush3.msra.mxu1 %v3294_v7 }
 0x3a4   : > { %3994 = vmatprep.subr.mxu0 %v3200_v5  ;;  %4027 = vmatprep.subr.mxu1 %v3309_v34 }
 0x3a5   : > { %3995 = vmatpush3.msra.mxu0 %v3184_v31  ;;  %4028 = vmatpush3.msra.mxu1 %v3293_v8 }
 0x3a6   : > { %3996 = vmatprep.subr.mxu0 %v3199_v10  ;;  %4029 = vmatprep.subr.mxu1 %v3308_v11 }
 0x3a7   : > { %3997 = vmatpush3.msra.mxu0 %v3183_v14  ;;  %4030 = vmatpush3.msra.mxu1 %v3292_v15 }
 0x3a8   : > { %3998 = vmatprep.subr.mxu0 %v3198_v19  ;;  %4031 = vmatprep.subr.mxu1 %v3307_v20 }
 0x3a9   : > { %3999 = vmatpush3.msra.mxu0 %v3182_v24  ;;  %4032 = vmatpush3.msra.mxu1 %v3291_v9 }
 0x3aa   : > { %4000 = vmatprep.subr.mxu0 %v3197_v36  ;;  %4033 = vmatprep.subr.mxu1 %v3306_v12 }
 0x3ab   : > { %4001 = vmatpush3.msra.mxu0 %v3181_v25  ;;  %4034 = vmatpush3.msra.mxu1 %v3290_v29 }
 0x3ac   : > { %4002 = vmatprep.subr.mxu0 %v3196_v44  ;;  %4035 = vmatprep.subr.mxu1 %v3305_v30 }
 0x3ad   : > { %4003 = vmatpush3.msra.mxu0 %v3180_v32  ;;  %4036 = vmatpush3.msra.mxu1 %v3289_v35 }
 0x3ae   : > { %4004 = vmatprep.subr.mxu0 %v3195_v37  ;;  %4037 = vmatprep.subr.mxu1 %v3304_v17 }
 0x3af   : > { %4005 = vmatpush3.msra.mxu0 %v3179_v38  ;;  %4038 = vmatpush3.msra.mxu1 %v3288_v39 }
 0x3b0   : > { %4006 = vmatprep.subr.mxu0 %v3194_v40  ;;  %4039 = vmatprep.subr.mxu1 %v3303_v42 }
 0x3b1   : > { %4007 = vmatpush3.msra.mxu0 %v3178_v43  ;;  %4040 = vmatpush3.msra.mxu1 %v3287_v18 }
 0x3b2   : > { %3279 = vmatmul.mubr.f32.vlgmr.msra.gmra.mxu0 %v3210_v16  ;;  %4041 = vmatprep.subr.mxu1 %v3302_v45 }
 0x3b3   : > { %4042 = vmatpush3.msra.mxu1 %v3286_v46 }
 0x3b4   : > { %3387 = vmatmul.mubr.f32.vlgmr.msra.gmra.mxu1 %v3318_v22 }
 0x42f   : > { %v3868_v47 = vpop.f32.mrf.mxu0 }
 0x431   : > { %v3869_v48 = vpop.f32.mrf.mxu0 }
 0x432   : > { %v3903_v49 = vpop.f32.mrf.mxu1  ;;  %v3870_v50 = vadd.f32 %v3869_v48, %v3868_v47 }
 0x434   : > { %v3904_v27 = vpop.f32.mrf.mxu1  ;;  %v2850_v21 = vadd.f32 %v3870_v50, %v2747_v51 }
 0x435   : > { %v3905_v54 = vadd.f32 %v3904_v27, %v3903_v49 }
 0x437   : > { %v2960_v57 = vadd.f32 %v3905_v54, %v2850_v21 }
 0x450   : > { %v3938_v23 = vpop.f32.mrf.mxu0 }
 0x452   : > { %v3939_v52 = vpop.f32.mrf.mxu0 }
 0x453   : > { %v3973_v53 = vpop.f32.mrf.mxu1  ;;  %v3940_v55 = vadd.f32 %v3939_v52, %v3938_v23 }
 0x455   : > { %v3974_v13 = vpop.f32.mrf.mxu1  ;;  %v3068_v41 = vadd.f32 %v3940_v55, %v2960_v57 }
 0x456   : > { %v3975_v58 = vadd.f32 %v3974_v13, %v3973_v53 }
 0x458   : > { %v3176_v56 = vadd.f32 %v3975_v58, %v3068_v41 }
 0x472   : > { %v4008_v59 = vpop.f32.mrf.mxu0 }
 0x474   : > { %v4009_v60 = vpop.f32.mrf.mxu0  ;;  %v4043_v28 = vpop.f32.mrf.mxu1 }
 0x475   : > { %v4010_v33 = vadd.f32 %v4009_v60, %v4008_v59 }
 0x476   : > { %v4044_v61 = vpop.f32.mrf.mxu1 }
 0x477   : > { %v3284_v26 = vadd.f32 %v4010_v33, %v3176_v56  ;;  %v4045_v62 = vadd.f32 %v4044_v61, %v4043_v28 }
 0x479   : > { %v3392_v63 = vadd.f32 %v4045_v62, %v3284_v26 }
 0x47b   : > { %3393 = vst [vmem:[%s389_s18] sm:$0x1] %v3392_v63 }
 0x47c   : > { %4502 = shalt.err (!%p4499_p3)
}
 0x47d   : > { %s4503_s15 = scalar_lea.hbm %s3413_s26, 16  ;;  %s4507_s12 = scalar_lea.hbm %s5367_s10, 32 }
 0x47e   : > { %p4504_p2 = scmp.ne.s32.totalorder %s3413_s26, %s4503_s15  ;;  %p4508_p6 = scmp.lt.s32.totalorder %s3413_s26, %s5367_s10 }
 0x47f   : > { %p4509_p9 = scmp.lt.s32.totalorder %s4507_s12, %s4503_s15 }
 0x480   : > { %p4505_p4 = pnand %p4504_p2, %p4661_p5 }
 0x481   : > { %p4510_p7 = por %p4509_p9, %p4508_p6 }
 0x482   : > { %p4506_p13 = pneg %p4505_p4 }
 0x484   : > { %p4511_p10 = pnand %p4510_p7, %p4506_p13 }
 0x486   : > { %4514 = shalt.err (!%p4511_p10)
}
 0x487   : > { %4379 = dma.vmem_to_hbm [thread:$0]  (%p4661_p5), %s3416_s20, 16, %s3413_s26, %s3400_s29  }
 0x488 PF: > { %p4396_p12 = scmp.ge.s32.totalorder %s4557_s16, 2  ;;  %s3435_s28 = sand.u32 1, %s4545_s13  }
 0x489   : > { %p5380_p8 = scmp.ne.s32.totalorder %s5373_s24, 0  ;;  %s3436_s11 = scalar_lea.sflag [#allocation6], %s3435_s28 }
 0x48b   : > { %p4389_p11 = pnand %p4396_p12, %p5380_p8 }
 0x48d   : > { %p4390_p0 = pneg %p4389_p11 }
 0x48f   : > { %4540 = dma.done.wait (%p4390_p0), %s3436_s11, 16  }
 0x490   : > { %4542 = vsyncadd (%p4390_p0), %s3436_s11, 4294967280  ;;  %s5381_s22 = sld [smem:[#allocation13_spill]]  ;;  %p23_p1 = scmp.ge.s32.totalorder %s4648_s19, 4  }
 0x491   : > { %s5382_s15 = sld [smem:[#allocation14_spill]]  ;;  %s5383_s13 = smov %s4549_s14 }
 0x492   : > { %s5385_s16 = smov %s4648_s19  ;;  %25 = sbr.rel (!%p23_p1) target bundleno = 5 (0x5), region = 207 }
 0x496   : > { %s5384_s14 = smov %s5381_s22 }
 0x497   :  { %3440 = vsyncpa [#allocation5], 1 }
 0x498   :  { %3442 = vsyncpa [#allocation5 + $0x1], 1 }
 0x499   :  { %3443 = vsyncpa [#allocation8], 1 }
 0x49a   :  { %3444 = vsyncpa [#allocation6], 1 }
 0x49b   :  { %3446 = vsyncpa [#allocation6 + $0x1], 1 }

</bundles_post_ra>
